<compile_context>
chip_gen: v6e
topology: v6e:2x2x1
jax: 0.10.0
libtpu: 0.0.40
codegen_flags: <defaults>
</compile_context>

<pallas_src>
import jax
import jax.numpy as jnp
from jax.experimental import pallas as pl
from jax.experimental.pallas import tpu as pltpu

IN_FEATURES = 3 * 64 * 64   # 12288
HIDDEN = 64
OUT = 6
DEFAULT_TB = 128            # batch-tile rows when B is large (8-divisible)


def mlp_kernel(x_ref, w1_ref, b1_ref, w2_ref, b2_ref, o_ref):
    """One batch tile: full-K matmul + bias + ReLU + tiny second matmul + bias."""
    h = jnp.dot(x_ref[...], w1_ref[...], preferred_element_type=jnp.float32)
    h = jnp.maximum(h + b1_ref[...], 0.0)                     # (TB, 64) + (1, 64)
    o = jnp.dot(h, w2_ref[...], preferred_element_type=jnp.float32)
    o_ref[...] = (o + b2_ref[...]).astype(o_ref.dtype)


def mlp_forward(x, w1, b1, w2, b2, *, tb=DEFAULT_TB):
    """x: (B, 3, 64, 64) float32 -> (B, 6) float32."""
    B = x.shape[0]
    x2d = x.reshape(B, -1)                                    # (B, 12288), torch .view

    if B <= tb:
        # Single grid step; batch block equals the full array dim (any B is legal).
        TB = B
        B_pad = B
    else:
        # Tile over batch; TB is 8-divisible, pad B up so it divides evenly.
        TB = tb
        n_b = pl.cdiv(B, TB)
        B_pad = n_b * TB
        if B_pad != B:
            x2d = jnp.pad(x2d, ((0, B_pad - B), (0, 0)))
    n_b = B_pad // TB

    grid_spec = pltpu.PrefetchScalarGridSpec(
        num_scalar_prefetch=0,
        grid=(n_b,),
        in_specs=[
            # x: the only streamed operand, tiled along batch only (full K).
            pl.BlockSpec((TB, IN_FEATURES), lambda i: (i, 0)),
            # Weights / biases: resident in VMEM (constant index_map).
            pl.BlockSpec((IN_FEATURES, HIDDEN), lambda i: (0, 0)),
            pl.BlockSpec((1, HIDDEN), lambda i: (0, 0)),
            pl.BlockSpec((HIDDEN, OUT), lambda i: (0, 0)),
            pl.BlockSpec((1, OUT), lambda i: (0, 0)),
        ],
        out_specs=pl.BlockSpec((TB, OUT), lambda i: (i, 0)),
    )

    out = pl.pallas_call(
        mlp_kernel,
        out_shape=jax.ShapeDtypeStruct((B_pad, OUT), jnp.float32),
        grid_spec=grid_spec,
        compiler_params=pltpu.CompilerParams(
            # Independent batch tiles -> parallel (lets v7x use both TCs).
            dimension_semantics=("parallel",),
            # Headroom for x double-buffer (2 x TB x 12288 f32) + resident W1;
            # ~19 MiB at TB=128 -> 32 MiB limit is safe on v5e/v6e/v7x.
            vmem_limit_bytes=32 * 1024 * 1024,
        ),
    )(x2d, w1, b1, w2, b2)

    return out[:B]


def init_params(key):
    """Parameter init mirroring the PyTorch module (weights stored as (in, out)).

    linear1: normal(std=0.01) weight and bias (as in __init__).
    linear2: PyTorch default uniform(-1/sqrt(fan_in), 1/sqrt(fan_in)).
    """
    k1, k2, k3, k4 = jax.random.split(key, 4)
    w1 = 0.01 * jax.random.normal(k1, (IN_FEATURES, HIDDEN), jnp.float32)
    b1 = 0.01 * jax.random.normal(k2, (1, HIDDEN), jnp.float32)
    bound = 1.0 / jnp.sqrt(jnp.float32(HIDDEN))
    w2 = jax.random.uniform(k3, (HIDDEN, OUT), jnp.float32, -bound, bound)
    b2 = jax.random.uniform(k4, (1, OUT), jnp.float32, -bound, bound)
    return w1, b1, w2, b2


def _reference(x, w1, b1, w2, b2):
    B = x.shape[0]
    return jnp.maximum(x.reshape(B, -1) @ w1 + b1, 0.0) @ w2 + b2


if __name__ == "__main__":
    key = jax.random.PRNGKey(0)
    kx, kx2, kp = jax.random.split(key, 3)

    w1, b1, w2, b2 = init_params(kp)

    # Small demo batch (single grid step path).
    B = 2
    x = jax.random.normal(kx, (B, 3, 64, 64), jnp.float32)
    out = jax.block_until_ready(mlp_forward(x, w1, b1, w2, b2))
    ref = _reference(x, w1, b1, w2, b2)
    assert out.shape == (B, OUT)
    assert jnp.allclose(out, ref, atol=1e-4, rtol=1e-4)

    # Exercise the batch-tiled path (multiple grid steps + padding) at small scale.
    B2 = 12
    x2 = jax.random.normal(kx2, (B2, 3, 64, 64), jnp.float32)
    out2 = jax.block_until_ready(mlp_forward(x2, w1, b1, w2, b2, tb=8))
    ref2 = _reference(x2, w1, b1, w2, b2)
    assert out2.shape == (B2, OUT)
    assert jnp.allclose(out2, ref2, atol=1e-4, rtol=1e-4)

    print("KERNEL_OK")
</pallas_src>

<mosaic_0001>
module attributes {stable_mosaic.version = 11 : i64} {
  func.func @mlp_kernel(%arg0: i32, %arg1: memref<2x12288xf32, #tpu.memory_space<vmem>>, %arg2: memref<12288x64xf32, #tpu.memory_space<vmem>>, %arg3: memref<1x64xf32, #tpu.memory_space<vmem>>, %arg4: memref<64x6xf32, #tpu.memory_space<vmem>>, %arg5: memref<1x6xf32, #tpu.memory_space<vmem>>, %arg6: memref<2x6xf32, #tpu.memory_space<vmem>>) attributes {dimension_semantics = [#tpu.dimension_semantics<parallel>], iteration_bounds = array<i64: 1>, scalar_prefetch = 0 : i64, scratch_operands = 0 : i64, tpu.core_type = #tpu.core_type<tc>, window_params = [{transform_indices = @transform_0, window_bounds = array<i64: 2, 12288>}, {pipeline_mode = #tpu.pipeline_mode<synchronous>, transform_indices = @transform_1, window_bounds = array<i64: 12288, 64>}, {pipeline_mode = #tpu.pipeline_mode<synchronous>, transform_indices = @transform_2, window_bounds = array<i64: 1, 64>}, {pipeline_mode = #tpu.pipeline_mode<synchronous>, transform_indices = @transform_3, window_bounds = array<i64: 64, 6>}, {pipeline_mode = #tpu.pipeline_mode<synchronous>, transform_indices = @transform_4, window_bounds = array<i64: 1, 6>}, {transform_indices = @transform_5, window_bounds = array<i64: 2, 6>}]} {
    %c0 = arith.constant 0 : index
    %c0_0 = arith.constant 0 : index
    %0 = vector.load %arg1[%c0, %c0_0] : memref<2x12288xf32, #tpu.memory_space<vmem>>, vector<2x12288xf32>
    %c0_1 = arith.constant 0 : index
    %c0_2 = arith.constant 0 : index
    %1 = vector.load %arg2[%c0_1, %c0_2] : memref<12288x64xf32, #tpu.memory_space<vmem>>, vector<12288x64xf32>
    %cst = arith.constant dense<0.000000e+00> : vector<2x64xf32>
    %2 = tpu.matmul %0, %1, %cst {dimension_numbers = #tpu.dot_dimension_numbers<[1], [0], [0], [1], [0, 0, 1, 1], [], []>} : vector<2x12288xf32>, vector<12288x64xf32>, vector<2x64xf32> -> vector<2x64xf32>
    %c0_3 = arith.constant 0 : index
    %c0_4 = arith.constant 0 : index
    %3 = vector.load %arg3[%c0_3, %c0_4] : memref<1x64xf32, #tpu.memory_space<vmem>>, vector<1x64xf32>
    %4 = vector.broadcast %3 : vector<1x64xf32> to vector<2x64xf32>
    %5 = arith.addf %2, %4 : vector<2x64xf32>
    %cst_5 = arith.constant 0.000000e+00 : f32
    %6 = vector.broadcast %cst_5 : f32 to vector<2x64xf32>
    %7 = arith.maximumf %5, %6 : vector<2x64xf32>
    %c0_6 = arith.constant 0 : index
    %c0_7 = arith.constant 0 : index
    %8 = vector.load %arg4[%c0_6, %c0_7] : memref<64x6xf32, #tpu.memory_space<vmem>>, vector<64x6xf32>
    %cst_8 = arith.constant dense<0.000000e+00> : vector<2x6xf32>
    %9 = tpu.matmul %7, %8, %cst_8 {dimension_numbers = #tpu.dot_dimension_numbers<[1], [0], [0], [1], [0, 0, 1, 1], [], []>} : vector<2x64xf32>, vector<64x6xf32>, vector<2x6xf32> -> vector<2x6xf32>
    %c0_9 = arith.constant 0 : index
    %c0_10 = arith.constant 0 : index
    %10 = vector.load %arg5[%c0_9, %c0_10] : memref<1x6xf32, #tpu.memory_space<vmem>>, vector<1x6xf32>
    %11 = vector.broadcast %10 : vector<1x6xf32> to vector<2x6xf32>
    %12 = arith.addf %9, %11 : vector<2x6xf32>
    %c0_11 = arith.constant 0 : index
    %c0_12 = arith.constant 0 : index
    %13 = vector.load %arg6[%c0_11, %c0_12] : memref<2x6xf32, #tpu.memory_space<vmem>>, vector<2x6xf32>
    tpu.vector_store %arg6[%c0_11, %c0_12], %12 {strides = array<i32>} : memref<2x6xf32, #tpu.memory_space<vmem>>, vector<2x6xf32>,
    return
  }
  func.func @transform_0(%arg0: i32) -> (i32, i32) {
    %c0_i32 = arith.constant 0 : i32
    %c0_i32_0 = arith.constant 0 : i32
    return %arg0, %c0_i32 : i32, i32
  }
  func.func @transform_1(%arg0: i32) -> (i32, i32) {
    %c0_i32 = arith.constant 0 : i32
    %c0_i32_0 = arith.constant 0 : i32
    %c0_i32_1 = arith.constant 0 : i32
    return %c0_i32, %c0_i32_0 : i32, i32
  }
  func.func @transform_2(%arg0: i32) -> (i32, i32) {
    %c0_i32 = arith.constant 0 : i32
    %c0_i32_0 = arith.constant 0 : i32
    %c0_i32_1 = arith.constant 0 : i32
    return %c0_i32, %c0_i32_0 : i32, i32
  }
  func.func @transform_3(%arg0: i32) -> (i32, i32) {
    %c0_i32 = arith.constant 0 : i32
    %c0_i32_0 = arith.constant 0 : i32
    %c0_i32_1 = arith.constant 0 : i32
    return %c0_i32, %c0_i32_0 : i32, i32
  }
  func.func @transform_4(%arg0: i32) -> (i32, i32) {
    %c0_i32 = arith.constant 0 : i32
    %c0_i32_0 = arith.constant 0 : i32
    %c0_i32_1 = arith.constant 0 : i32
    return %c0_i32, %c0_i32_0 : i32, i32
  }
  func.func @transform_5(%arg0: i32) -> (i32, i32) {
    %c0_i32 = arith.constant 0 : i32
    %c0_i32_0 = arith.constant 0 : i32
    return %arg0, %c0_i32 : i32, i32
  }
}

</mosaic_0001>

<bundles_post_ra>
// kernel: tpu_custom_call.1
= control target key start
LH: loop header
LB: loop body
LE: loop exit
PB: predicated region body
PF: predicated region fallthrough
CT: control target
= control target key end

     0   :  { %v7343_v30 = vmov 1983009808   ;;  %v1616_v32 = vlaneseq  ;;  %s12140_s0 = inlined_call_operand.vmem [shape: f32[2,12288], index: 0, kind: input, shape index: {}]   ;;  %s12141_s1 = inlined_call_operand.vmem [shape: f32[12288,64], index: 1, kind: input, shape index: {}]   ;;  %s12142_s2 = inlined_call_operand.vmem [shape: f32[1,64], index: 2, kind: input, shape index: {}]   ;;  %s12143_s3 = inlined_call_operand.vmem [shape: f32[64,6], index: 3, kind: input, shape index: {}]   ;;  %s12144_s4 = inlined_call_operand.vmem [shape: f32[1,6], index: 4, kind: input, shape index: {}]   ;;  %s12145_s5 = inlined_call_operand.hbm [shape: f32[2,6], index: 5, kind: output, shape index: {}]  }
   0x1   :  { %v76_v0 = vld [vmem:[%s12141_s1 + $0xf8] sm:$0xff]  ;;  %v75_v4 = vld [vmem:[%s12141_s1 + $0xf0] sm:$0xff]  ;;  %v74_v8 = vld [vmem:[%s12141_s1 + $0xe8] sm:$0xff]  ;;  %v1614_v31 = vunpack.c.l.s4 %v7343_v30 }
   0x2   :  { %v108_v1 = vld [vmem:[%s12141_s1 + $0x1f8] sm:$0xff]  ;;  %5585 = vmatprep.subr.mxu0 %v76_v0  ;;  %v107_v5 = vld [vmem:[%s12141_s1 + $0x1f0] sm:$0xff]  ;;  %v106_v9 = vld [vmem:[%s12141_s1 + $0x1e8] sm:$0xff]  ;;  %v1617_v42 = vshrl.u32 %v1616_v32, 7 }
   0x3   :  { %v60_v2 = vld [vmem:[%s12141_s1 + $0x78] sm:$0xff]  ;;  %5620 = vmatprep.subr.mxu1 %v108_v1  ;;  %v59_v6 = vld [vmem:[%s12141_s1 + $0x70] sm:$0xff]  ;;  %v58_v10 = vld [vmem:[%s12141_s1 + $0x68] sm:$0xff]  ;;  %v1615_v41 = vunpack.c.0.s8 %v1614_v31 }
   0x4   :  { %v92_v3 = vld [vmem:[%s12141_s1 + $0x178] sm:$0xff]  ;;  %5586 = vmatpush3.msra.mxu0 %v60_v2  ;;  %v91_v7 = vld [vmem:[%s12141_s1 + $0x170] sm:$0xff]  ;;  %v90_v11 = vld [vmem:[%s12141_s1 + $0x168] sm:$0xff] }
   0x5   :  { %5621 = vmatpush3.msra.mxu1 %v92_v3  ;;  %5587 = vmatprep.subr.mxu0 %v75_v4  ;;  %v73_v12 = vld [vmem:[%s12141_s1 + $0xe0] sm:$0xff]  ;;  %v72_v16 = vld [vmem:[%s12141_s1 + $0xd8] sm:$0xff]  ;;  %v71_v20 = vld [vmem:[%s12141_s1 + $0xd0] sm:$0xff]  ;;  %v7515_v51 = vsub.s32 %v1615_v41, %v1617_v42 }
   0x6   :  { %5622 = vmatprep.subr.mxu1 %v107_v5  ;;  %5588 = vmatpush3.msra.mxu0 %v59_v6  ;;  %v105_v13 = vld [vmem:[%s12141_s1 + $0x1e0] sm:$0xff]  ;;  %v104_v17 = vld [vmem:[%s12141_s1 + $0x1d8] sm:$0xff]  ;;  %v103_v21 = vld [vmem:[%s12141_s1 + $0x1d0] sm:$0xff] }
   0x7   :  { %5623 = vmatpush3.msra.mxu1 %v91_v7  ;;  %5589 = vmatprep.subr.mxu0 %v74_v8  ;;  %v57_v14 = vld [vmem:[%s12141_s1 + $0x60] sm:$0xff]  ;;  %v56_v18 = vld [vmem:[%s12141_s1 + $0x58] sm:$0xff]  ;;  %v55_v22 = vld [vmem:[%s12141_s1 + $0x50] sm:$0xff] }
   0x8   :  { %5624 = vmatprep.subr.mxu1 %v106_v9  ;;  %v89_v15 = vld [vmem:[%s12141_s1 + $0x160] sm:$0xff]  ;;  %5590 = vmatpush3.msra.mxu0 %v58_v10  ;;  %v88_v19 = vld [vmem:[%s12141_s1 + $0x158] sm:$0xff]  ;;  %v87_v23 = vld [vmem:[%s12141_s1 + $0x150] sm:$0xff] }
   0x9   :  { %5625 = vmatpush3.msra.mxu1 %v90_v11  ;;  %5591 = vmatprep.subr.mxu0 %v73_v12  ;;  %v70_v24 = vld [vmem:[%s12141_s1 + $0xc8] sm:$0xff]  ;;  %v69_v28 = vld [vmem:[%s12141_s1 + $0xc0] sm:$0xff]  ;;  %v68_v35 = vld [vmem:[%s12141_s1 + $0xb8] sm:$0xff] }
   0xa   :  { %5626 = vmatprep.subr.mxu1 %v105_v13  ;;  %5592 = vmatpush3.msra.mxu0 %v57_v14  ;;  %v102_v25 = vld [vmem:[%s12141_s1 + $0x1c8] sm:$0xff]  ;;  %v101_v29 = vld [vmem:[%s12141_s1 + $0x1c0] sm:$0xff]  ;;  %v100_v36 = vld [vmem:[%s12141_s1 + $0x1b8] sm:$0xff] }
   0xb   :  { %5627 = vmatpush3.msra.mxu1 %v89_v15  ;;  %5593 = vmatprep.subr.mxu0 %v72_v16  ;;  %v54_v26 = vld [vmem:[%s12141_s1 + $0x48] sm:$0xff]  ;;  %v53_v33 = vld [vmem:[%s12141_s1 + $0x40] sm:$0xff]  ;;  %v52_v37 = vld [vmem:[%s12141_s1 + $0x38] sm:$0xff] }
   0xc   :  { %5628 = vmatprep.subr.mxu1 %v104_v17  ;;  %5594 = vmatpush3.msra.mxu0 %v56_v18  ;;  %v86_v27 = vld [vmem:[%s12141_s1 + $0x148] sm:$0xff]  ;;  %v85_v34 = vld [vmem:[%s12141_s1 + $0x140] sm:$0xff]  ;;  %v84_v38 = vld [vmem:[%s12141_s1 + $0x138] sm:$0xff] }
   0xd   :  { %5629 = vmatpush3.msra.mxu1 %v88_v19  ;;  %5595 = vmatprep.subr.mxu0 %v71_v20  ;;  %v67_v39 = vld [vmem:[%s12141_s1 + $0xb0] sm:$0xff]  ;;  %v66_v45 = vld [vmem:[%s12141_s1 + $0xa8] sm:$0xff]  ;;  %v65_v49 = vld [vmem:[%s12141_s1 + $0xa0] sm:$0xff] }
   0xe   :  { %5630 = vmatprep.subr.mxu1 %v103_v21  ;;  %5596 = vmatpush3.msra.mxu0 %v55_v22  ;;  %v99_v40 = vld [vmem:[%s12141_s1 + $0x1b0] sm:$0xff]  ;;  %v98_v46 = vld [vmem:[%s12141_s1 + $0x1a8] sm:$0xff]  ;;  %v97_v50 = vld [vmem:[%s12141_s1 + $0x1a0] sm:$0xff] }
   0xf   :  { %5631 = vmatpush3.msra.mxu1 %v87_v23  ;;  %5597 = vmatprep.subr.mxu0 %v70_v24  ;;  %v51_v43 = vld [vmem:[%s12141_s1 + $0x30] sm:$0xff]  ;;  %v50_v47 = vld [vmem:[%s12141_s1 + $0x28] sm:$0xff]  ;;  %v49_v52 = vld [vmem:[%s12141_s1 + $0x20] sm:$0xff] }
  0x10   :  { %5632 = vmatprep.subr.mxu1 %v102_v25  ;;  %5598 = vmatpush3.msra.mxu0 %v54_v26  ;;  %v83_v44 = vld [vmem:[%s12141_s1 + $0x130] sm:$0xff]  ;;  %v82_v48 = vld [vmem:[%s12141_s1 + $0x128] sm:$0xff]  ;;  %v81_v53 = vld [vmem:[%s12141_s1 + $0x120] sm:$0xff] }
  0x11   :  { %5633 = vmatpush3.msra.mxu1 %v86_v27  ;;  %5599 = vmatprep.subr.mxu0 %v69_v28  ;;  %v21_v54 = vld [vmem:[%s12140_s0] sm:$0xff]  ;;  %v64_v55 = vld [vmem:[%s12141_s1 + $0x98] sm:$0xff]  ;;  %v63_v60 = vld [vmem:[%s12141_s1 + $0x90] sm:$0xff] }
  0x12   :  { %5634 = vmatprep.subr.mxu1 %v101_v29  ;;  %5600 = vmatpush3.msra.mxu0 %v53_v33  ;;  %v96_v56 = vld [vmem:[%s12141_s1 + $0x198] sm:$0xff]  ;;  %v1612_v57 = vcombine.high %v21_v54, %v21_v54  ;;  %v95_v61 = vld [vmem:[%s12141_s1 + $0x190] sm:$0xff]  ;;  %v1619_v62 = vrot.slane %v21_v54, %v7515_v51  ;;  %v62_v1 = vld [vmem:[%s12141_s1 + $0x88] sm:$0xff] }
  0x13   :  { %5635 = vmatpush3.msra.mxu1 %v85_v34  ;;  %5601 = vmatprep.subr.mxu0 %v68_v35  ;;  %v48_v58 = vld [vmem:[%s12141_s1 + $0x18] sm:$0xff]  ;;  %v47_v63 = vld [vmem:[%s12141_s1 + $0x10] sm:$0xff]  ;;  %v94_v2 = vld [vmem:[%s12141_s1 + $0x188] sm:$0xff] }
  0x14   :  { %5636 = vmatprep.subr.mxu1 %v100_v36  ;;  %5602 = vmatpush3.msra.mxu0 %v52_v37  ;;  %v80_v59 = vld [vmem:[%s12141_s1 + $0x118] sm:$0xff]  ;;  %v79_v0 = vld [vmem:[%s12141_s1 + $0x110] sm:$0xff]  ;;  %v1626_v3 = vrot.slane %v1612_v57, %v7515_v51  ;;  %v46_v4 = vld [vmem:[%s12141_s1 + $0x8] sm:$0xff]  ;;  %v1627_v8 = vcombine.high %v1619_v62, %v1619_v62 }
  0x15   :  { %5637 = vmatpush3.msra.mxu1 %v84_v38  ;;  %5603 = vmatprep.subr.mxu0 %v67_v39  ;;  %v78_v5 = vld [vmem:[%s12141_s1 + $0x108] sm:$0xff]  ;;  %v61_v6 = vld [vmem:[%s12141_s1 + $0x80] sm:$0xff]  ;;  %v140_v12 = vld [vmem:[%s12141_s1 + $0x2f8] sm:$0xff] }
  0x16   :  { %5638 = vmatprep.subr.mxu1 %v99_v40  ;;  %5604 = vmatpush3.msra.mxu0 %v51_v43  ;;  %v93_v7 = vld [vmem:[%s12141_s1 + $0x180] sm:$0xff]  ;;  %v1628_v11 = vcombine.high %v1626_v3, %v1626_v3  ;;  %v172_v13 = vld [vmem:[%s12141_s1 + $0x3f8] sm:$0xff]  ;;  %v139_v16 = vld [vmem:[%s12141_s1 + $0x2f0] sm:$0xff] }
  0x17   :  { %5639 = vmatpush3.msra.mxu1 %v83_v44  ;;  %5605 = vmatprep.subr.mxu0 %v66_v45  ;;  %v45_v9 = vld [vmem:[%s12141_s1] sm:$0xff]  ;;  %v124_v14 = vld [vmem:[%s12141_s1 + $0x278] sm:$0xff]  ;;  %v171_v17 = vld [vmem:[%s12141_s1 + $0x3f0] sm:$0xff] }
  0x18   :  { %5640 = vmatprep.subr.mxu1 %v98_v46  ;;  %5606 = vmatpush3.msra.mxu0 %v50_v47  ;;  %v77_v10 = vld [vmem:[%s12141_s1 + $0x100] sm:$0xff]  ;;  %v156_v15 = vld [vmem:[%s12141_s1 + $0x378] sm:$0xff]  ;;  %v123_v18 = vld [vmem:[%s12141_s1 + $0x270] sm:$0xff] }
  0x19   :  { %5641 = vmatpush3.msra.mxu1 %v82_v48  ;;  %5607 = vmatprep.subr.mxu0 %v65_v49  ;;  %v155_v19 = vld [vmem:[%s12141_s1 + $0x370] sm:$0xff]  ;;  %v138_v20 = vld [vmem:[%s12141_s1 + $0x2e8] sm:$0xff]  ;;  %v137_v24 = vld [vmem:[%s12141_s1 + $0x2e0] sm:$0xff] }
  0x1a   :  { %5642 = vmatprep.subr.mxu1 %v97_v50  ;;  %5608 = vmatpush3.msra.mxu0 %v49_v52  ;;  %v170_v21 = vld [vmem:[%s12141_s1 + $0x3e8] sm:$0xff]  ;;  %v169_v25 = vld [vmem:[%s12141_s1 + $0x3e0] sm:$0xff]  ;;  %v136_v28 = vld [vmem:[%s12141_s1 + $0x2d8] sm:$0xff] }
  0x1b   :  { %5643 = vmatpush3.msra.mxu1 %v81_v53  ;;  %5609 = vmatprep.subr.mxu0 %v64_v55  ;;  %v122_v22 = vld [vmem:[%s12141_s1 + $0x268] sm:$0xff]  ;;  %v121_v26 = vld [vmem:[%s12141_s1 + $0x260] sm:$0xff]  ;;  %v168_v29 = vld [vmem:[%s12141_s1 + $0x3d8] sm:$0xff] }
  0x1c   :  { %5644 = vmatprep.subr.mxu1 %v96_v56  ;;  %5610 = vmatpush3.msra.mxu0 %v48_v58  ;;  %v154_v23 = vld [vmem:[%s12141_s1 + $0x368] sm:$0xff]  ;;  %v153_v27 = vld [vmem:[%s12141_s1 + $0x360] sm:$0xff]  ;;  %v120_v30 = vld [vmem:[%s12141_s1 + $0x258] sm:$0xff] }
  0x1d   :  { %5645 = vmatpush3.msra.mxu1 %v80_v59  ;;  %5611 = vmatprep.subr.mxu0 %v63_v60  ;;  %v152_v31 = vld [vmem:[%s12141_s1 + $0x358] sm:$0xff]  ;;  %v135_v32 = vld [vmem:[%s12141_s1 + $0x2d0] sm:$0xff]  ;;  %v134_v36 = vld [vmem:[%s12141_s1 + $0x2c8] sm:$0xff] }
  0x1e   :  { %5646 = vmatprep.subr.mxu1 %v95_v61  ;;  %5612 = vmatpush3.msra.mxu0 %v47_v63  ;;  %v167_v33 = vld [vmem:[%s12141_s1 + $0x3d0] sm:$0xff]  ;;  %v166_v37 = vld [vmem:[%s12141_s1 + $0x3c8] sm:$0xff]  ;;  %v133_v40 = vld [vmem:[%s12141_s1 + $0x2c0] sm:$0xff] }
  0x1f   :  { %5647 = vmatpush3.msra.mxu1 %v79_v0  ;;  %5613 = vmatprep.subr.mxu0 %v62_v1  ;;  %v119_v34 = vld [vmem:[%s12141_s1 + $0x250] sm:$0xff]  ;;  %v118_v38 = vld [vmem:[%s12141_s1 + $0x248] sm:$0xff]  ;;  %v165_v41 = vld [vmem:[%s12141_s1 + $0x3c0] sm:$0xff] }
  0x20   :  { %5648 = vmatprep.subr.mxu1 %v94_v2  ;;  %5614 = vmatpush3.msra.mxu0 %v46_v4  ;;  %v151_v35 = vld [vmem:[%s12141_s1 + $0x350] sm:$0xff]  ;;  %v150_v39 = vld [vmem:[%s12141_s1 + $0x348] sm:$0xff]  ;;  %v117_v42 = vld [vmem:[%s12141_s1 + $0x240] sm:$0xff] }
  0x21   :  { %5649 = vmatpush3.msra.mxu1 %v78_v5  ;;  %5615 = vmatprep.subr.mxu0 %v61_v6  ;;  %v149_v43 = vld [vmem:[%s12141_s1 + $0x340] sm:$0xff]  ;;  %v132_v44 = vld [vmem:[%s12141_s1 + $0x2b8] sm:$0xff]  ;;  %v131_v48 = vld [vmem:[%s12141_s1 + $0x2b0] sm:$0xff] }
  0x22   :  { %5650 = vmatprep.subr.mxu1 %v93_v7  ;;  %5616 = vmatpush3.msra.mxu0 %v45_v9  ;;  %v164_v45 = vld [vmem:[%s12141_s1 + $0x3b8] sm:$0xff]  ;;  %v163_v49 = vld [vmem:[%s12141_s1 + $0x3b0] sm:$0xff]  ;;  %v130_v53 = vld [vmem:[%s12141_s1 + $0x2a8] sm:$0xff] }
  0x23   :  { %2180 = vmatprep.mubr.f32.mxu0 %v1627_v8  ;;  %5651 = vmatpush3.msra.mxu1 %v77_v10  ;;  %v116_v46 = vld [vmem:[%s12141_s1 + $0x238] sm:$0xff]  ;;  %v115_v50 = vld [vmem:[%s12141_s1 + $0x230] sm:$0xff]  ;;  %v162_v54 = vld [vmem:[%s12141_s1 + $0x3a8] sm:$0xff] }
  0x24   :  { %2181 = vmatmul.mubr.f32.vlgmr.msra.gmra.mxu0 %v1619_v62  ;;  %2250 = vmatprep.mubr.f32.mxu1 %v1628_v11  ;;  %v148_v47 = vld [vmem:[%s12141_s1 + $0x338] sm:$0xff]  ;;  %v147_v52 = vld [vmem:[%s12141_s1 + $0x330] sm:$0xff]  ;;  %v114_v55 = vld [vmem:[%s12141_s1 + $0x228] sm:$0xff] }
  0x25   :  { %5655 = vmatprep.subr.mxu0 %v140_v12  ;;  %5690 = vmatprep.subr.mxu1 %v172_v13  ;;  %v146_v56 = vld [vmem:[%s12141_s1 + $0x328] sm:$0xff]  ;;  %v129_v58 = vld [vmem:[%s12141_s1 + $0x2a0] sm:$0xff]  ;;  %v128_v62 = vld [vmem:[%s12141_s1 + $0x298] sm:$0xff] }
  0x26   :  { %2251 = vmatmul.mubr.f32.vlgmr.msra.gmra.mxu1 %v1626_v3  ;;  %5656 = vmatpush3.msra.mxu0 %v124_v14  ;;  %v22_v57 = vld [vmem:[%s12140_s0 + $0x8] sm:$0xff]  ;;  %v161_v59 = vld [vmem:[%s12141_s1 + $0x3a0] sm:$0xff]  ;;  %v160_v63 = vld [vmem:[%s12141_s1 + $0x398] sm:$0xff] }
  0x27   :  { %5691 = vmatpush3.msra.mxu1 %v156_v15  ;;  %5657 = vmatprep.subr.mxu0 %v139_v16  ;;  %v113_v60 = vld [vmem:[%s12141_s1 + $0x220] sm:$0xff]  ;;  %v1629_v0 = vcombine.high %v22_v57, %v22_v57  ;;  %v112_v1 = vld [vmem:[%s12141_s1 + $0x218] sm:$0xff]  ;;  %v127_v3 = vld [vmem:[%s12141_s1 + $0x290] sm:$0xff]  ;;  %v1636_v5 = vrot.slane %v22_v57, %v7515_v51 }
  0x28   :  { %5692 = vmatprep.subr.mxu1 %v171_v17  ;;  %5658 = vmatpush3.msra.mxu0 %v123_v18  ;;  %v145_v61 = vld [vmem:[%s12141_s1 + $0x320] sm:$0xff]  ;;  %v144_v2 = vld [vmem:[%s12141_s1 + $0x318] sm:$0xff]  ;;  %v159_v4 = vld [vmem:[%s12141_s1 + $0x390] sm:$0xff] }
  0x29   :  { %5693 = vmatpush3.msra.mxu1 %v155_v19  ;;  %5659 = vmatprep.subr.mxu0 %v138_v20  ;;  %v111_v6 = vld [vmem:[%s12141_s1 + $0x210] sm:$0xff]  ;;  %v126_v8 = vld [vmem:[%s12141_s1 + $0x288] sm:$0xff]  ;;  %v1643_v10 = vrot.slane %v1629_v0, %v7515_v51  ;;  %v125_v13 = vld [vmem:[%s12141_s1 + $0x280] sm:$0xff]  ;;  %v1644_v15 = vcombine.high %v1636_v5, %v1636_v5 }
  0x2a   :  { %5694 = vmatprep.subr.mxu1 %v170_v21  ;;  %5660 = vmatpush3.msra.mxu0 %v122_v22  ;;  %v143_v7 = vld [vmem:[%s12141_s1 + $0x310] sm:$0xff]  ;;  %v158_v9 = vld [vmem:[%s12141_s1 + $0x388] sm:$0xff]  ;;  %v157_v14 = vld [vmem:[%s12141_s1 + $0x380] sm:$0xff] }
  0x2b   :  { %5695 = vmatpush3.msra.mxu1 %v154_v23  ;;  %5661 = vmatprep.subr.mxu0 %v137_v24  ;;  %v110_v11 = vld [vmem:[%s12141_s1 + $0x208] sm:$0xff]  ;;  %v109_v16 = vld [vmem:[%s12141_s1 + $0x200] sm:$0xff]  ;;  %v1645_v18 = vcombine.high %v1643_v10, %v1643_v10  ;;  %v204_v19 = vld [vmem:[%s12141_s1 + $0x4f8] sm:$0xff] }
  0x2c   :  { %5696 = vmatprep.subr.mxu1 %v169_v25  ;;  %5662 = vmatpush3.msra.mxu0 %v121_v26  ;;  %v142_v12 = vld [vmem:[%s12141_s1 + $0x308] sm:$0xff]  ;;  %v141_v17 = vld [vmem:[%s12141_s1 + $0x300] sm:$0xff]  ;;  %v236_v20 = vld [vmem:[%s12141_s1 + $0x5f8] sm:$0xff] }
  0x2d   :  { %5697 = vmatpush3.msra.mxu1 %v153_v27  ;;  %5663 = vmatprep.subr.mxu0 %v136_v28  ;;  %v188_v21 = vld [vmem:[%s12141_s1 + $0x478] sm:$0xff]  ;;  %v203_v23 = vld [vmem:[%s12141_s1 + $0x4f0] sm:$0xff]  ;;  %v202_v27 = vld [vmem:[%s12141_s1 + $0x4e8] sm:$0xff] }
  0x2e   :  { %5698 = vmatprep.subr.mxu1 %v168_v29  ;;  %5664 = vmatpush3.msra.mxu0 %v120_v30  ;;  %v220_v22 = vld [vmem:[%s12141_s1 + $0x578] sm:$0xff]  ;;  %v235_v24 = vld [vmem:[%s12141_s1 + $0x5f0] sm:$0xff]  ;;  %v234_v28 = vld [vmem:[%s12141_s1 + $0x5e8] sm:$0xff] }
  0x2f   :  { %5699 = vmatpush3.msra.mxu1 %v152_v31  ;;  %5665 = vmatprep.subr.mxu0 %v135_v32  ;;  %v187_v25 = vld [vmem:[%s12141_s1 + $0x470] sm:$0xff]  ;;  %v186_v29 = vld [vmem:[%s12141_s1 + $0x468] sm:$0xff]  ;;  %v201_v31 = vld [vmem:[%s12141_s1 + $0x4e0] sm:$0xff] }
  0x30   :  { %5700 = vmatprep.subr.mxu1 %v167_v33  ;;  %5666 = vmatpush3.msra.mxu0 %v119_v34  ;;  %v219_v26 = vld [vmem:[%s12141_s1 + $0x570] sm:$0xff]  ;;  %v218_v30 = vld [vmem:[%s12141_s1 + $0x568] sm:$0xff]  ;;  %v233_v32 = vld [vmem:[%s12141_s1 + $0x5e0] sm:$0xff] }
  0x31   :  { %5701 = vmatpush3.msra.mxu1 %v151_v35  ;;  %5667 = vmatprep.subr.mxu0 %v134_v36  ;;  %v185_v33 = vld [vmem:[%s12141_s1 + $0x460] sm:$0xff]  ;;  %v200_v35 = vld [vmem:[%s12141_s1 + $0x4d8] sm:$0xff]  ;;  %v227_v57 = vld [vmem:[%s12141_s1 + $0x5b0] sm:$0xff] }
  0x32   :  { %5702 = vmatprep.subr.mxu1 %v166_v37  ;;  %5668 = vmatpush3.msra.mxu0 %v118_v38  ;;  %v217_v34 = vld [vmem:[%s12141_s1 + $0x560] sm:$0xff]  ;;  %v232_v36 = vld [vmem:[%s12141_s1 + $0x5d8] sm:$0xff]  ;;  %v23_v0 = vld [vmem:[%s12140_s0 + $0x10] sm:$0xff] }
  0x33   :  { %5703 = vmatpush3.msra.mxu1 %v150_v39  ;;  %5669 = vmatprep.subr.mxu0 %v133_v40  ;;  %v184_v37 = vld [vmem:[%s12141_s1 + $0x458] sm:$0xff]  ;;  %v199_v39 = vld [vmem:[%s12141_s1 + $0x4d0] sm:$0xff] }
  0x34   :  { %5704 = vmatprep.subr.mxu1 %v165_v41  ;;  %5670 = vmatpush3.msra.mxu0 %v117_v42  ;;  %v216_v38 = vld [vmem:[%s12141_s1 + $0x558] sm:$0xff]  ;;  %v231_v40 = vld [vmem:[%s12141_s1 + $0x5d0] sm:$0xff] }
  0x35   :  { %5705 = vmatpush3.msra.mxu1 %v149_v43  ;;  %5671 = vmatprep.subr.mxu0 %v132_v44  ;;  %v183_v41 = vld [vmem:[%s12141_s1 + $0x450] sm:$0xff]  ;;  %v198_v43 = vld [vmem:[%s12141_s1 + $0x4c8] sm:$0xff] }
  0x36   :  { %5706 = vmatprep.subr.mxu1 %v164_v45  ;;  %5672 = vmatpush3.msra.mxu0 %v116_v46  ;;  %v215_v42 = vld [vmem:[%s12141_s1 + $0x550] sm:$0xff]  ;;  %v230_v44 = vld [vmem:[%s12141_s1 + $0x5c8] sm:$0xff] }
  0x37   :  { %5707 = vmatpush3.msra.mxu1 %v148_v47  ;;  %5673 = vmatprep.subr.mxu0 %v131_v48  ;;  %v182_v45 = vld [vmem:[%s12141_s1 + $0x448] sm:$0xff]  ;;  %v197_v47 = vld [vmem:[%s12141_s1 + $0x4c0] sm:$0xff] }
  0x38   :  { %5708 = vmatprep.subr.mxu1 %v163_v49  ;;  %5674 = vmatpush3.msra.mxu0 %v115_v50  ;;  %v214_v46 = vld [vmem:[%s12141_s1 + $0x548] sm:$0xff]  ;;  %v229_v48 = vld [vmem:[%s12141_s1 + $0x5c0] sm:$0xff] }
  0x39   :  { %5709 = vmatpush3.msra.mxu1 %v147_v52  ;;  %5675 = vmatprep.subr.mxu0 %v130_v53  ;;  %v181_v49 = vld [vmem:[%s12141_s1 + $0x440] sm:$0xff]  ;;  %v196_v52 = vld [vmem:[%s12141_s1 + $0x4b8] sm:$0xff] }
  0x3a   :  { %5710 = vmatprep.subr.mxu1 %v162_v54  ;;  %5676 = vmatpush3.msra.mxu0 %v114_v55  ;;  %v213_v50 = vld [vmem:[%s12141_s1 + $0x540] sm:$0xff]  ;;  %v228_v53 = vld [vmem:[%s12141_s1 + $0x5b8] sm:$0xff] }
  0x3b   :  { %5711 = vmatpush3.msra.mxu1 %v146_v56  ;;  %5677 = vmatprep.subr.mxu0 %v129_v58  ;;  %v180_v54 = vld [vmem:[%s12141_s1 + $0x438] sm:$0xff]  ;;  %v195_v56 = vld [vmem:[%s12141_s1 + $0x4b0] sm:$0xff] }
  0x3c   :  { %5712 = vmatprep.subr.mxu1 %v161_v59  ;;  %5678 = vmatpush3.msra.mxu0 %v113_v60  ;;  %v212_v55 = vld [vmem:[%s12141_s1 + $0x538] sm:$0xff]  ;;  %v179_v58 = vld [vmem:[%s12141_s1 + $0x430] sm:$0xff]  ;;  %v194_v60 = vld [vmem:[%s12141_s1 + $0x4a8] sm:$0xff] }
  0x3d   :  { %5713 = vmatpush3.msra.mxu1 %v145_v61  ;;  %5679 = vmatprep.subr.mxu0 %v128_v62  ;;  %v211_v59 = vld [vmem:[%s12141_s1 + $0x530] sm:$0xff]  ;;  %v226_v61 = vld [vmem:[%s12141_s1 + $0x5a8] sm:$0xff] }
  0x3e   :  { %5714 = vmatprep.subr.mxu1 %v160_v63  ;;  %5680 = vmatpush3.msra.mxu0 %v112_v1  ;;  %v178_v62 = vld [vmem:[%s12141_s1 + $0x428] sm:$0xff]  ;;  %v193_v1 = vld [vmem:[%s12141_s1 + $0x4a0] sm:$0xff] }
  0x3f   :  { %5715 = vmatpush3.msra.mxu1 %v144_v2  ;;  %5681 = vmatprep.subr.mxu0 %v127_v3  ;;  %v210_v63 = vld [vmem:[%s12141_s1 + $0x528] sm:$0xff]  ;;  %v225_v2 = vld [vmem:[%s12141_s1 + $0x5a0] sm:$0xff] }
  0x40   :  { %5716 = vmatprep.subr.mxu1 %v159_v4  ;;  %5682 = vmatpush3.msra.mxu0 %v111_v6  ;;  %v177_v3 = vld [vmem:[%s12141_s1 + $0x420] sm:$0xff]  ;;  %v224_v6 = vld [vmem:[%s12141_s1 + $0x598] sm:$0xff] }
  0x41   :  { %5717 = vmatpush3.msra.mxu1 %v143_v7  ;;  %5683 = vmatprep.subr.mxu0 %v126_v8  ;;  %v209_v4 = vld [vmem:[%s12141_s1 + $0x520] sm:$0xff]  ;;  %v1646_v7 = vcombine.high %v23_v0, %v23_v0  ;;  %v176_v8 = vld [vmem:[%s12141_s1 + $0x418] sm:$0xff] }
  0x42   :  { %5718 = vmatprep.subr.mxu1 %v158_v9  ;;  %5684 = vmatpush3.msra.mxu0 %v110_v11  ;;  %v208_v9 = vld [vmem:[%s12141_s1 + $0x518] sm:$0xff]  ;;  %v223_v11 = vld [vmem:[%s12141_s1 + $0x590] sm:$0xff] }
  0x43   :  { %5719 = vmatpush3.msra.mxu1 %v142_v12  ;;  %5685 = vmatprep.subr.mxu0 %v125_v13  ;;  %v1653_v12 = vrot.slane %v23_v0, %v7515_v51  ;;  %v175_v13 = vld [vmem:[%s12141_s1 + $0x410] sm:$0xff] }
  0x44   :  { %5720 = vmatprep.subr.mxu1 %v157_v14  ;;  %5686 = vmatpush3.msra.mxu0 %v109_v16  ;;  %v207_v14 = vld [vmem:[%s12141_s1 + $0x510] sm:$0xff]  ;;  %v222_v16 = vld [vmem:[%s12141_s1 + $0x588] sm:$0xff] }
  0x45   :  { %2320 = vmatprep.mubr.f32.mxu0 %v1644_v15  ;;  %5721 = vmatpush3.msra.mxu1 %v141_v17  ;;  %v190_v15 = vld [vmem:[%s12141_s1 + $0x488] sm:$0xff]  ;;  %v1660_v17 = vrot.slane %v1646_v7, %v7515_v51  ;;  %v291_v0 = vld [vmem:[%s12141_s1 + $0x7b0] sm:$0xff]  ;;  %v24_v7 = vld [vmem:[%s12140_s0 + $0x18] sm:$0xff] }
  0x46   :  { %2321 = vmatmul.mubr.f32.vlgmr.msra.gmra.mxu0 %v1636_v5  ;;  %2390 = vmatprep.mubr.f32.mxu1 %v1645_v18  ;;  %v192_v5 = vld [vmem:[%s12141_s1 + $0x498] sm:$0xff]  ;;  %v174_v18 = vld [vmem:[%s12141_s1 + $0x408] sm:$0xff] }
  0x47   :  { %5725 = vmatprep.subr.mxu0 %v204_v19  ;;  %5760 = vmatprep.subr.mxu1 %v236_v20  ;;  %v206_v19 = vld [vmem:[%s12141_s1 + $0x508] sm:$0xff]  ;;  %v189_v20 = vld [vmem:[%s12141_s1 + $0x480] sm:$0xff] }
  0x48   :  { %2391 = vmatmul.mubr.f32.vlgmr.msra.gmra.mxu1 %v1643_v10  ;;  %5726 = vmatpush3.msra.mxu0 %v188_v21  ;;  %v191_v10 = vld [vmem:[%s12141_s1 + $0x490] sm:$0xff]  ;;  %v221_v21 = vld [vmem:[%s12141_s1 + $0x580] sm:$0xff] }
  0x49   :  { %5761 = vmatpush3.msra.mxu1 %v220_v22  ;;  %5727 = vmatprep.subr.mxu0 %v203_v23  ;;  %v1661_v22 = vcombine.high %v1653_v12, %v1653_v12  ;;  %v173_v23 = vld [vmem:[%s12141_s1 + $0x400] sm:$0xff] }
  0x4a   :  { %5762 = vmatprep.subr.mxu1 %v235_v24  ;;  %5728 = vmatpush3.msra.mxu0 %v187_v25  ;;  %v205_v24 = vld [vmem:[%s12141_s1 + $0x500] sm:$0xff]  ;;  %v1662_v25 = vcombine.high %v1660_v17, %v1660_v17 }
  0x4b   :  { %5763 = vmatpush3.msra.mxu1 %v219_v26  ;;  %5729 = vmatprep.subr.mxu0 %v202_v27  ;;  %v268_v26 = vld [vmem:[%s12141_s1 + $0x6f8] sm:$0xff] }
  0x4c   :  { %5764 = vmatprep.subr.mxu1 %v234_v28  ;;  %5730 = vmatpush3.msra.mxu0 %v186_v29  ;;  %v300_v27 = vld [vmem:[%s12141_s1 + $0x7f8] sm:$0xff] }
  0x4d   :  { %5765 = vmatpush3.msra.mxu1 %v218_v30  ;;  %5731 = vmatprep.subr.mxu0 %v201_v31  ;;  %v252_v28 = vld [vmem:[%s12141_s1 + $0x678] sm:$0xff]  ;;  %v267_v30 = vld [vmem:[%s12141_s1 + $0x6f0] sm:$0xff] }
  0x4e   :  { %5766 = vmatprep.subr.mxu1 %v233_v32  ;;  %5732 = vmatpush3.msra.mxu0 %v185_v33  ;;  %v284_v29 = vld [vmem:[%s12141_s1 + $0x778] sm:$0xff]  ;;  %v299_v31 = vld [vmem:[%s12141_s1 + $0x7f0] sm:$0xff] }
  0x4f   :  { %5767 = vmatpush3.msra.mxu1 %v217_v34  ;;  %5733 = vmatprep.subr.mxu0 %v200_v35  ;;  %v251_v32 = vld [vmem:[%s12141_s1 + $0x670] sm:$0xff]  ;;  %v266_v34 = vld [vmem:[%s12141_s1 + $0x6e8] sm:$0xff] }
  0x50   :  { %5768 = vmatprep.subr.mxu1 %v232_v36  ;;  %5734 = vmatpush3.msra.mxu0 %v184_v37  ;;  %v283_v33 = vld [vmem:[%s12141_s1 + $0x770] sm:$0xff]  ;;  %v298_v35 = vld [vmem:[%s12141_s1 + $0x7e8] sm:$0xff] }
  0x51   :  { %5769 = vmatpush3.msra.mxu1 %v216_v38  ;;  %5735 = vmatprep.subr.mxu0 %v199_v39  ;;  %v250_v36 = vld [vmem:[%s12141_s1 + $0x668] sm:$0xff]  ;;  %v265_v38 = vld [vmem:[%s12141_s1 + $0x6e0] sm:$0xff] }
  0x52   :  { %5770 = vmatprep.subr.mxu1 %v231_v40  ;;  %5736 = vmatpush3.msra.mxu0 %v183_v41  ;;  %v282_v37 = vld [vmem:[%s12141_s1 + $0x768] sm:$0xff]  ;;  %v297_v39 = vld [vmem:[%s12141_s1 + $0x7e0] sm:$0xff] }
  0x53   :  { %5771 = vmatpush3.msra.mxu1 %v215_v42  ;;  %5737 = vmatprep.subr.mxu0 %v198_v43  ;;  %v249_v40 = vld [vmem:[%s12141_s1 + $0x660] sm:$0xff]  ;;  %v264_v42 = vld [vmem:[%s12141_s1 + $0x6d8] sm:$0xff] }
  0x54   :  { %5772 = vmatprep.subr.mxu1 %v230_v44  ;;  %5738 = vmatpush3.msra.mxu0 %v182_v45  ;;  %v281_v41 = vld [vmem:[%s12141_s1 + $0x760] sm:$0xff]  ;;  %v296_v43 = vld [vmem:[%s12141_s1 + $0x7d8] sm:$0xff] }
  0x55   :  { %5773 = vmatpush3.msra.mxu1 %v214_v46  ;;  %5739 = vmatprep.subr.mxu0 %v197_v47  ;;  %v248_v44 = vld [vmem:[%s12141_s1 + $0x658] sm:$0xff]  ;;  %v263_v46 = vld [vmem:[%s12141_s1 + $0x6d0] sm:$0xff] }
  0x56   :  { %5774 = vmatprep.subr.mxu1 %v229_v48  ;;  %5740 = vmatpush3.msra.mxu0 %v181_v49  ;;  %v280_v45 = vld [vmem:[%s12141_s1 + $0x758] sm:$0xff]  ;;  %v295_v47 = vld [vmem:[%s12141_s1 + $0x7d0] sm:$0xff] }
  0x57   :  { %5775 = vmatpush3.msra.mxu1 %v213_v50  ;;  %5741 = vmatprep.subr.mxu0 %v196_v52  ;;  %v247_v48 = vld [vmem:[%s12141_s1 + $0x650] sm:$0xff]  ;;  %v262_v50 = vld [vmem:[%s12141_s1 + $0x6c8] sm:$0xff] }
  0x58   :  { %5776 = vmatprep.subr.mxu1 %v228_v53  ;;  %5742 = vmatpush3.msra.mxu0 %v180_v54  ;;  %v279_v49 = vld [vmem:[%s12141_s1 + $0x750] sm:$0xff]  ;;  %v294_v52 = vld [vmem:[%s12141_s1 + $0x7c8] sm:$0xff] }
  0x59   :  { %5777 = vmatpush3.msra.mxu1 %v212_v55  ;;  %5743 = vmatprep.subr.mxu0 %v195_v56  ;;  %v246_v53 = vld [vmem:[%s12141_s1 + $0x648] sm:$0xff]  ;;  %v261_v55 = vld [vmem:[%s12141_s1 + $0x6c0] sm:$0xff] }
  0x5a   :  { %5778 = vmatprep.subr.mxu1 %v227_v57  ;;  %5744 = vmatpush3.msra.mxu0 %v179_v58  ;;  %v278_v54 = vld [vmem:[%s12141_s1 + $0x748] sm:$0xff]  ;;  %v293_v56 = vld [vmem:[%s12141_s1 + $0x7c0] sm:$0xff] }
  0x5b   :  { %5779 = vmatpush3.msra.mxu1 %v211_v59  ;;  %5745 = vmatprep.subr.mxu0 %v194_v60  ;;  %v245_v57 = vld [vmem:[%s12141_s1 + $0x640] sm:$0xff]  ;;  %v260_v59 = vld [vmem:[%s12141_s1 + $0x6b8] sm:$0xff] }
  0x5c   :  { %5780 = vmatprep.subr.mxu1 %v226_v61  ;;  %5746 = vmatpush3.msra.mxu0 %v178_v62  ;;  %v277_v58 = vld [vmem:[%s12141_s1 + $0x740] sm:$0xff]  ;;  %v292_v60 = vld [vmem:[%s12141_s1 + $0x7b8] sm:$0xff] }
  0x5d   :  { %5781 = vmatpush3.msra.mxu1 %v210_v63  ;;  %5747 = vmatprep.subr.mxu0 %v193_v1  ;;  %v244_v61 = vld [vmem:[%s12141_s1 + $0x638] sm:$0xff]  ;;  %v259_v63 = vld [vmem:[%s12141_s1 + $0x6b0] sm:$0xff] }
  0x5e   :  { %5782 = vmatprep.subr.mxu1 %v225_v2  ;;  %5748 = vmatpush3.msra.mxu0 %v177_v3  ;;  %v276_v62 = vld [vmem:[%s12141_s1 + $0x738] sm:$0xff]  ;;  %v243_v1 = vld [vmem:[%s12141_s1 + $0x630] sm:$0xff]  ;;  %v258_v3 = vld [vmem:[%s12141_s1 + $0x6a8] sm:$0xff] }
  0x5f   :  { %5783 = vmatpush3.msra.mxu1 %v209_v4  ;;  %5749 = vmatprep.subr.mxu0 %v192_v5  ;;  %v275_v2 = vld [vmem:[%s12141_s1 + $0x730] sm:$0xff]  ;;  %v290_v4 = vld [vmem:[%s12141_s1 + $0x7a8] sm:$0xff] }
  0x60   :  { %5784 = vmatprep.subr.mxu1 %v224_v6  ;;  %5750 = vmatpush3.msra.mxu0 %v176_v8  ;;  %v242_v5 = vld [vmem:[%s12141_s1 + $0x628] sm:$0xff]  ;;  %v257_v8 = vld [vmem:[%s12141_s1 + $0x6a0] sm:$0xff] }
  0x61   :  { %5785 = vmatpush3.msra.mxu1 %v208_v9  ;;  %5751 = vmatprep.subr.mxu0 %v191_v10  ;;  %v274_v6 = vld [vmem:[%s12141_s1 + $0x728] sm:$0xff]  ;;  %v289_v9 = vld [vmem:[%s12141_s1 + $0x7a0] sm:$0xff] }
  0x62   :  { %5786 = vmatprep.subr.mxu1 %v223_v11  ;;  %5752 = vmatpush3.msra.mxu0 %v175_v13  ;;  %v241_v10 = vld [vmem:[%s12141_s1 + $0x620] sm:$0xff]  ;;  %v288_v13 = vld [vmem:[%s12141_s1 + $0x798] sm:$0xff] }
  0x63   :  { %5787 = vmatpush3.msra.mxu1 %v207_v14  ;;  %5753 = vmatprep.subr.mxu0 %v190_v15  ;;  %v273_v11 = vld [vmem:[%s12141_s1 + $0x720] sm:$0xff]  ;;  %v1663_v14 = vcombine.high %v24_v7, %v24_v7  ;;  %v240_v15 = vld [vmem:[%s12141_s1 + $0x618] sm:$0xff] }
  0x64   :  { %5788 = vmatprep.subr.mxu1 %v222_v16  ;;  %5754 = vmatpush3.msra.mxu0 %v174_v18  ;;  %v272_v16 = vld [vmem:[%s12141_s1 + $0x718] sm:$0xff]  ;;  %v287_v18 = vld [vmem:[%s12141_s1 + $0x790] sm:$0xff] }
  0x65   :  { %5789 = vmatpush3.msra.mxu1 %v206_v19  ;;  %5755 = vmatprep.subr.mxu0 %v189_v20  ;;  %v1670_v19 = vrot.slane %v24_v7, %v7515_v51  ;;  %v239_v20 = vld [vmem:[%s12141_s1 + $0x610] sm:$0xff] }
  0x66   :  { %5790 = vmatprep.subr.mxu1 %v221_v21  ;;  %5756 = vmatpush3.msra.mxu0 %v173_v23  ;;  %v271_v21 = vld [vmem:[%s12141_s1 + $0x710] sm:$0xff]  ;;  %v286_v23 = vld [vmem:[%s12141_s1 + $0x788] sm:$0xff] }
  0x67   :  { %2460 = vmatprep.mubr.f32.mxu0 %v1661_v22  ;;  %5791 = vmatpush3.msra.mxu1 %v205_v24  ;;  %v254_v22 = vld [vmem:[%s12141_s1 + $0x688] sm:$0xff]  ;;  %v1677_v24 = vrot.slane %v1663_v14, %v7515_v51  ;;  %v355_v7 = vld [vmem:[%s12141_s1 + $0x9b0] sm:$0xff]  ;;  %v25_v14 = vld [vmem:[%s12140_s0 + $0x20] sm:$0xff] }
  0x68   :  { %2461 = vmatmul.mubr.f32.vlgmr.msra.gmra.mxu0 %v1653_v12  ;;  %2530 = vmatprep.mubr.f32.mxu1 %v1662_v25  ;;  %v256_v12 = vld [vmem:[%s12141_s1 + $0x698] sm:$0xff]  ;;  %v238_v25 = vld [vmem:[%s12141_s1 + $0x608] sm:$0xff] }
  0x69   :  { %5795 = vmatprep.subr.mxu0 %v268_v26  ;;  %5830 = vmatprep.subr.mxu1 %v300_v27  ;;  %v270_v26 = vld [vmem:[%s12141_s1 + $0x708] sm:$0xff]  ;;  %v253_v27 = vld [vmem:[%s12141_s1 + $0x680] sm:$0xff] }
  0x6a   :  { %2531 = vmatmul.mubr.f32.vlgmr.msra.gmra.mxu1 %v1660_v17  ;;  %5796 = vmatpush3.msra.mxu0 %v252_v28  ;;  %v255_v17 = vld [vmem:[%s12141_s1 + $0x690] sm:$0xff]  ;;  %v285_v28 = vld [vmem:[%s12141_s1 + $0x780] sm:$0xff] }
  0x6b   :  { %5831 = vmatpush3.msra.mxu1 %v284_v29  ;;  %5797 = vmatprep.subr.mxu0 %v267_v30  ;;  %v1678_v29 = vcombine.high %v1670_v19, %v1670_v19  ;;  %v237_v30 = vld [vmem:[%s12141_s1 + $0x600] sm:$0xff] }
  0x6c   :  { %5832 = vmatprep.subr.mxu1 %v299_v31  ;;  %5798 = vmatpush3.msra.mxu0 %v251_v32  ;;  %v269_v31 = vld [vmem:[%s12141_s1 + $0x700] sm:$0xff]  ;;  %v1679_v32 = vcombine.high %v1677_v24, %v1677_v24 }
  0x6d   :  { %5833 = vmatpush3.msra.mxu1 %v283_v33  ;;  %5799 = vmatprep.subr.mxu0 %v266_v34  ;;  %v332_v33 = vld [vmem:[%s12141_s1 + $0x8f8] sm:$0xff] }
  0x6e   :  { %5834 = vmatprep.subr.mxu1 %v298_v35  ;;  %5800 = vmatpush3.msra.mxu0 %v250_v36  ;;  %v364_v34 = vld [vmem:[%s12141_s1 + $0x9f8] sm:$0xff] }
  0x6f   :  { %5835 = vmatpush3.msra.mxu1 %v282_v37  ;;  %5801 = vmatprep.subr.mxu0 %v265_v38  ;;  %v316_v35 = vld [vmem:[%s12141_s1 + $0x878] sm:$0xff]  ;;  %v331_v37 = vld [vmem:[%s12141_s1 + $0x8f0] sm:$0xff] }
  0x70   :  { %5836 = vmatprep.subr.mxu1 %v297_v39  ;;  %5802 = vmatpush3.msra.mxu0 %v249_v40  ;;  %v348_v36 = vld [vmem:[%s12141_s1 + $0x978] sm:$0xff]  ;;  %v363_v38 = vld [vmem:[%s12141_s1 + $0x9f0] sm:$0xff] }
  0x71   :  { %5837 = vmatpush3.msra.mxu1 %v281_v41  ;;  %5803 = vmatprep.subr.mxu0 %v264_v42  ;;  %v315_v39 = vld [vmem:[%s12141_s1 + $0x870] sm:$0xff]  ;;  %v330_v41 = vld [vmem:[%s12141_s1 + $0x8e8] sm:$0xff] }
  0x72   :  { %5838 = vmatprep.subr.mxu1 %v296_v43  ;;  %5804 = vmatpush3.msra.mxu0 %v248_v44  ;;  %v347_v40 = vld [vmem:[%s12141_s1 + $0x970] sm:$0xff]  ;;  %v362_v42 = vld [vmem:[%s12141_s1 + $0x9e8] sm:$0xff] }
  0x73   :  { %5839 = vmatpush3.msra.mxu1 %v280_v45  ;;  %5805 = vmatprep.subr.mxu0 %v263_v46  ;;  %v314_v43 = vld [vmem:[%s12141_s1 + $0x868] sm:$0xff]  ;;  %v329_v45 = vld [vmem:[%s12141_s1 + $0x8e0] sm:$0xff] }
  0x74   :  { %5840 = vmatprep.subr.mxu1 %v295_v47  ;;  %5806 = vmatpush3.msra.mxu0 %v247_v48  ;;  %v346_v44 = vld [vmem:[%s12141_s1 + $0x968] sm:$0xff]  ;;  %v361_v46 = vld [vmem:[%s12141_s1 + $0x9e0] sm:$0xff] }
  0x75   :  { %5841 = vmatpush3.msra.mxu1 %v279_v49  ;;  %5807 = vmatprep.subr.mxu0 %v262_v50  ;;  %v313_v47 = vld [vmem:[%s12141_s1 + $0x860] sm:$0xff]  ;;  %v328_v49 = vld [vmem:[%s12141_s1 + $0x8d8] sm:$0xff] }
  0x76   :  { %5842 = vmatprep.subr.mxu1 %v294_v52  ;;  %5808 = vmatpush3.msra.mxu0 %v246_v53  ;;  %v345_v48 = vld [vmem:[%s12141_s1 + $0x960] sm:$0xff]  ;;  %v360_v50 = vld [vmem:[%s12141_s1 + $0x9d8] sm:$0xff] }
  0x77   :  { %5843 = vmatpush3.msra.mxu1 %v278_v54  ;;  %5809 = vmatprep.subr.mxu0 %v261_v55  ;;  %v312_v52 = vld [vmem:[%s12141_s1 + $0x858] sm:$0xff]  ;;  %v327_v54 = vld [vmem:[%s12141_s1 + $0x8d0] sm:$0xff] }
  0x78   :  { %5844 = vmatprep.subr.mxu1 %v293_v56  ;;  %5810 = vmatpush3.msra.mxu0 %v245_v57  ;;  %v344_v53 = vld [vmem:[%s12141_s1 + $0x958] sm:$0xff]  ;;  %v359_v55 = vld [vmem:[%s12141_s1 + $0x9d0] sm:$0xff] }
  0x79   :  { %5845 = vmatpush3.msra.mxu1 %v277_v58  ;;  %5811 = vmatprep.subr.mxu0 %v260_v59  ;;  %v311_v56 = vld [vmem:[%s12141_s1 + $0x850] sm:$0xff]  ;;  %v326_v58 = vld [vmem:[%s12141_s1 + $0x8c8] sm:$0xff] }
  0x7a   :  { %5846 = vmatprep.subr.mxu1 %v292_v60  ;;  %5812 = vmatpush3.msra.mxu0 %v244_v61  ;;  %v343_v57 = vld [vmem:[%s12141_s1 + $0x950] sm:$0xff]  ;;  %v358_v59 = vld [vmem:[%s12141_s1 + $0x9c8] sm:$0xff] }
  0x7b   :  { %5847 = vmatpush3.msra.mxu1 %v276_v62  ;;  %5813 = vmatprep.subr.mxu0 %v259_v63  ;;  %v310_v60 = vld [vmem:[%s12141_s1 + $0x848] sm:$0xff]  ;;  %v325_v62 = vld [vmem:[%s12141_s1 + $0x8c0] sm:$0xff] }
  0x7c   :  { %5848 = vmatprep.subr.mxu1 %v291_v0  ;;  %5814 = vmatpush3.msra.mxu0 %v243_v1  ;;  %v342_v61 = vld [vmem:[%s12141_s1 + $0x948] sm:$0xff]  ;;  %v357_v63 = vld [vmem:[%s12141_s1 + $0x9c0] sm:$0xff] }
  0x7d   :  { %5849 = vmatpush3.msra.mxu1 %v275_v2  ;;  %5815 = vmatprep.subr.mxu0 %v258_v3  ;;  %v309_v0 = vld [vmem:[%s12141_s1 + $0x840] sm:$0xff]  ;;  %v324_v2 = vld [vmem:[%s12141_s1 + $0x8b8] sm:$0xff] }
  0x7e   :  { %5850 = vmatprep.subr.mxu1 %v290_v4  ;;  %5816 = vmatpush3.msra.mxu0 %v242_v5  ;;  %v341_v1 = vld [vmem:[%s12141_s1 + $0x940] sm:$0xff]  ;;  %v356_v3 = vld [vmem:[%s12141_s1 + $0x9b8] sm:$0xff] }
  0x7f   :  { %5851 = vmatpush3.msra.mxu1 %v274_v6  ;;  %5817 = vmatprep.subr.mxu0 %v257_v8  ;;  %v308_v4 = vld [vmem:[%s12141_s1 + $0x838] sm:$0xff]  ;;  %v323_v6 = vld [vmem:[%s12141_s1 + $0x8b0] sm:$0xff] }
  0x80   :  { %5852 = vmatprep.subr.mxu1 %v289_v9  ;;  %5818 = vmatpush3.msra.mxu0 %v241_v10  ;;  %v340_v5 = vld [vmem:[%s12141_s1 + $0x938] sm:$0xff]  ;;  %v307_v8 = vld [vmem:[%s12141_s1 + $0x830] sm:$0xff]  ;;  %v322_v10 = vld [vmem:[%s12141_s1 + $0x8a8] sm:$0xff] }
  0x81   :  { %5853 = vmatpush3.msra.mxu1 %v273_v11  ;;  %5819 = vmatprep.subr.mxu0 %v256_v12  ;;  %v339_v9 = vld [vmem:[%s12141_s1 + $0x930] sm:$0xff]  ;;  %v354_v11 = vld [vmem:[%s12141_s1 + $0x9a8] sm:$0xff] }
  0x82   :  { %5854 = vmatprep.subr.mxu1 %v288_v13  ;;  %5820 = vmatpush3.msra.mxu0 %v240_v15  ;;  %v306_v12 = vld [vmem:[%s12141_s1 + $0x828] sm:$0xff]  ;;  %v321_v15 = vld [vmem:[%s12141_s1 + $0x8a0] sm:$0xff] }
  0x83   :  { %5855 = vmatpush3.msra.mxu1 %v272_v16  ;;  %5821 = vmatprep.subr.mxu0 %v255_v17  ;;  %v338_v13 = vld [vmem:[%s12141_s1 + $0x928] sm:$0xff]  ;;  %v353_v16 = vld [vmem:[%s12141_s1 + $0x9a0] sm:$0xff] }
  0x84   :  { %5856 = vmatprep.subr.mxu1 %v287_v18  ;;  %5822 = vmatpush3.msra.mxu0 %v239_v20  ;;  %v305_v17 = vld [vmem:[%s12141_s1 + $0x820] sm:$0xff]  ;;  %v352_v20 = vld [vmem:[%s12141_s1 + $0x998] sm:$0xff] }
  0x85   :  { %5857 = vmatpush3.msra.mxu1 %v271_v21  ;;  %5823 = vmatprep.subr.mxu0 %v254_v22  ;;  %v337_v18 = vld [vmem:[%s12141_s1 + $0x920] sm:$0xff]  ;;  %v1680_v21 = vcombine.high %v25_v14, %v25_v14  ;;  %v304_v22 = vld [vmem:[%s12141_s1 + $0x818] sm:$0xff] }
  0x86   :  { %5858 = vmatprep.subr.mxu1 %v286_v23  ;;  %5824 = vmatpush3.msra.mxu0 %v238_v25  ;;  %v336_v23 = vld [vmem:[%s12141_s1 + $0x918] sm:$0xff]  ;;  %v351_v25 = vld [vmem:[%s12141_s1 + $0x990] sm:$0xff] }
  0x87   :  { %5859 = vmatpush3.msra.mxu1 %v270_v26  ;;  %5825 = vmatprep.subr.mxu0 %v253_v27  ;;  %v1687_v26 = vrot.slane %v25_v14, %v7515_v51  ;;  %v303_v27 = vld [vmem:[%s12141_s1 + $0x810] sm:$0xff] }
  0x88   :  { %5860 = vmatprep.subr.mxu1 %v285_v28  ;;  %5826 = vmatpush3.msra.mxu0 %v237_v30  ;;  %v335_v28 = vld [vmem:[%s12141_s1 + $0x910] sm:$0xff]  ;;  %v350_v30 = vld [vmem:[%s12141_s1 + $0x988] sm:$0xff] }
  0x89   :  { %2600 = vmatprep.mubr.f32.mxu0 %v1678_v29  ;;  %5861 = vmatpush3.msra.mxu1 %v269_v31  ;;  %v318_v29 = vld [vmem:[%s12141_s1 + $0x888] sm:$0xff]  ;;  %v1694_v31 = vrot.slane %v1680_v21, %v7515_v51  ;;  %v419_v14 = vld [vmem:[%s12141_s1 + $0xbb0] sm:$0xff] }
  0x8a   :  { %2601 = vmatmul.mubr.f32.vlgmr.msra.gmra.mxu0 %v1670_v19  ;;  %2670 = vmatprep.mubr.f32.mxu1 %v1679_v32  ;;  %v320_v19 = vld [vmem:[%s12141_s1 + $0x898] sm:$0xff]  ;;  %v302_v32 = vld [vmem:[%s12141_s1 + $0x808] sm:$0xff] }
  0x8b   :  { %5865 = vmatprep.subr.mxu0 %v332_v33  ;;  %5900 = vmatprep.subr.mxu1 %v364_v34  ;;  %v334_v33 = vld [vmem:[%s12141_s1 + $0x908] sm:$0xff]  ;;  %v317_v34 = vld [vmem:[%s12141_s1 + $0x880] sm:$0xff] }
  0x8c   :  { %2671 = vmatmul.mubr.f32.vlgmr.msra.gmra.mxu1 %v1677_v24  ;;  %5866 = vmatpush3.msra.mxu0 %v316_v35  ;;  %v319_v24 = vld [vmem:[%s12141_s1 + $0x890] sm:$0xff]  ;;  %v349_v35 = vld [vmem:[%s12141_s1 + $0x980] sm:$0xff]  ;;  %v26_v21 = vld [vmem:[%s12140_s0 + $0x28] sm:$0xff] }
  0x8d   :  { %5901 = vmatpush3.msra.mxu1 %v348_v36  ;;  %5867 = vmatprep.subr.mxu0 %v331_v37  ;;  %v1695_v36 = vcombine.high %v1687_v26, %v1687_v26  ;;  %v301_v37 = vld [vmem:[%s12141_s1 + $0x800] sm:$0xff] }
  0x8e   :  { %5902 = vmatprep.subr.mxu1 %v363_v38  ;;  %5868 = vmatpush3.msra.mxu0 %v315_v39  ;;  %v333_v38 = vld [vmem:[%s12141_s1 + $0x900] sm:$0xff]  ;;  %v1696_v39 = vcombine.high %v1694_v31, %v1694_v31 }
  0x8f   :  { %5903 = vmatpush3.msra.mxu1 %v347_v40  ;;  %5869 = vmatprep.subr.mxu0 %v330_v41  ;;  %v396_v40 = vld [vmem:[%s12141_s1 + $0xaf8] sm:$0xff] }
  0x90   :  { %5904 = vmatprep.subr.mxu1 %v362_v42  ;;  %5870 = vmatpush3.msra.mxu0 %v314_v43  ;;  %v428_v41 = vld [vmem:[%s12141_s1 + $0xbf8] sm:$0xff] }
  0x91   :  { %5905 = vmatpush3.msra.mxu1 %v346_v44  ;;  %5871 = vmatprep.subr.mxu0 %v329_v45  ;;  %v380_v42 = vld [vmem:[%s12141_s1 + $0xa78] sm:$0xff]  ;;  %v395_v44 = vld [vmem:[%s12141_s1 + $0xaf0] sm:$0xff] }
  0x92   :  { %5906 = vmatprep.subr.mxu1 %v361_v46  ;;  %5872 = vmatpush3.msra.mxu0 %v313_v47  ;;  %v412_v43 = vld [vmem:[%s12141_s1 + $0xb78] sm:$0xff]  ;;  %v427_v45 = vld [vmem:[%s12141_s1 + $0xbf0] sm:$0xff] }
  0x93   :  { %5907 = vmatpush3.msra.mxu1 %v345_v48  ;;  %5873 = vmatprep.subr.mxu0 %v328_v49  ;;  %v379_v46 = vld [vmem:[%s12141_s1 + $0xa70] sm:$0xff]  ;;  %v394_v48 = vld [vmem:[%s12141_s1 + $0xae8] sm:$0xff] }
  0x94   :  { %5908 = vmatprep.subr.mxu1 %v360_v50  ;;  %5874 = vmatpush3.msra.mxu0 %v312_v52  ;;  %v411_v47 = vld [vmem:[%s12141_s1 + $0xb70] sm:$0xff]  ;;  %v426_v49 = vld [vmem:[%s12141_s1 + $0xbe8] sm:$0xff] }
  0x95   :  { %5909 = vmatpush3.msra.mxu1 %v344_v53  ;;  %5875 = vmatprep.subr.mxu0 %v327_v54  ;;  %v378_v50 = vld [vmem:[%s12141_s1 + $0xa68] sm:$0xff]  ;;  %v393_v53 = vld [vmem:[%s12141_s1 + $0xae0] sm:$0xff] }
  0x96   :  { %5910 = vmatprep.subr.mxu1 %v359_v55  ;;  %5876 = vmatpush3.msra.mxu0 %v311_v56  ;;  %v410_v52 = vld [vmem:[%s12141_s1 + $0xb68] sm:$0xff]  ;;  %v425_v54 = vld [vmem:[%s12141_s1 + $0xbe0] sm:$0xff] }
  0x97   :  { %5911 = vmatpush3.msra.mxu1 %v343_v57  ;;  %5877 = vmatprep.subr.mxu0 %v326_v58  ;;  %v377_v55 = vld [vmem:[%s12141_s1 + $0xa60] sm:$0xff]  ;;  %v392_v57 = vld [vmem:[%s12141_s1 + $0xad8] sm:$0xff] }
  0x98   :  { %5912 = vmatprep.subr.mxu1 %v358_v59  ;;  %5878 = vmatpush3.msra.mxu0 %v310_v60  ;;  %v409_v56 = vld [vmem:[%s12141_s1 + $0xb60] sm:$0xff]  ;;  %v424_v58 = vld [vmem:[%s12141_s1 + $0xbd8] sm:$0xff] }
  0x99   :  { %5913 = vmatpush3.msra.mxu1 %v342_v61  ;;  %5879 = vmatprep.subr.mxu0 %v325_v62  ;;  %v376_v59 = vld [vmem:[%s12141_s1 + $0xa58] sm:$0xff]  ;;  %v391_v61 = vld [vmem:[%s12141_s1 + $0xad0] sm:$0xff] }
  0x9a   :  { %5914 = vmatprep.subr.mxu1 %v357_v63  ;;  %5880 = vmatpush3.msra.mxu0 %v309_v0  ;;  %v408_v60 = vld [vmem:[%s12141_s1 + $0xb58] sm:$0xff]  ;;  %v423_v62 = vld [vmem:[%s12141_s1 + $0xbd0] sm:$0xff] }
  0x9b   :  { %5915 = vmatpush3.msra.mxu1 %v341_v1  ;;  %5881 = vmatprep.subr.mxu0 %v324_v2  ;;  %v375_v63 = vld [vmem:[%s12141_s1 + $0xa50] sm:$0xff]  ;;  %v390_v1 = vld [vmem:[%s12141_s1 + $0xac8] sm:$0xff] }
  0x9c   :  { %5916 = vmatprep.subr.mxu1 %v356_v3  ;;  %5882 = vmatpush3.msra.mxu0 %v308_v4  ;;  %v407_v0 = vld [vmem:[%s12141_s1 + $0xb50] sm:$0xff]  ;;  %v422_v2 = vld [vmem:[%s12141_s1 + $0xbc8] sm:$0xff] }
  0x9d   :  { %5917 = vmatpush3.msra.mxu1 %v340_v5  ;;  %5883 = vmatprep.subr.mxu0 %v323_v6  ;;  %v374_v3 = vld [vmem:[%s12141_s1 + $0xa48] sm:$0xff]  ;;  %v389_v5 = vld [vmem:[%s12141_s1 + $0xac0] sm:$0xff] }
  0x9e   :  { %5918 = vmatprep.subr.mxu1 %v355_v7  ;;  %5884 = vmatpush3.msra.mxu0 %v307_v8  ;;  %v406_v4 = vld [vmem:[%s12141_s1 + $0xb48] sm:$0xff]  ;;  %v421_v6 = vld [vmem:[%s12141_s1 + $0xbc0] sm:$0xff] }
  0x9f   :  { %5919 = vmatpush3.msra.mxu1 %v339_v9  ;;  %5885 = vmatprep.subr.mxu0 %v322_v10  ;;  %v373_v7 = vld [vmem:[%s12141_s1 + $0xa40] sm:$0xff]  ;;  %v388_v9 = vld [vmem:[%s12141_s1 + $0xab8] sm:$0xff] }
  0xa0   :  { %5920 = vmatprep.subr.mxu1 %v354_v11  ;;  %5886 = vmatpush3.msra.mxu0 %v306_v12  ;;  %v405_v8 = vld [vmem:[%s12141_s1 + $0xb40] sm:$0xff]  ;;  %v420_v10 = vld [vmem:[%s12141_s1 + $0xbb8] sm:$0xff] }
  0xa1   :  { %5921 = vmatpush3.msra.mxu1 %v338_v13  ;;  %5887 = vmatprep.subr.mxu0 %v321_v15  ;;  %v372_v11 = vld [vmem:[%s12141_s1 + $0xa38] sm:$0xff]  ;;  %v387_v13 = vld [vmem:[%s12141_s1 + $0xab0] sm:$0xff] }
  0xa2   :  { %5922 = vmatprep.subr.mxu1 %v353_v16  ;;  %5888 = vmatpush3.msra.mxu0 %v305_v17  ;;  %v404_v12 = vld [vmem:[%s12141_s1 + $0xb38] sm:$0xff]  ;;  %v371_v15 = vld [vmem:[%s12141_s1 + $0xa30] sm:$0xff]  ;;  %v386_v17 = vld [vmem:[%s12141_s1 + $0xaa8] sm:$0xff] }
  0xa3   :  { %5923 = vmatpush3.msra.mxu1 %v337_v18  ;;  %5889 = vmatprep.subr.mxu0 %v320_v19  ;;  %v403_v16 = vld [vmem:[%s12141_s1 + $0xb30] sm:$0xff]  ;;  %v418_v18 = vld [vmem:[%s12141_s1 + $0xba8] sm:$0xff] }
  0xa4   :  { %5924 = vmatprep.subr.mxu1 %v352_v20  ;;  %5890 = vmatpush3.msra.mxu0 %v304_v22  ;;  %v370_v19 = vld [vmem:[%s12141_s1 + $0xa28] sm:$0xff]  ;;  %v385_v22 = vld [vmem:[%s12141_s1 + $0xaa0] sm:$0xff] }
  0xa5   :  { %5925 = vmatpush3.msra.mxu1 %v336_v23  ;;  %5891 = vmatprep.subr.mxu0 %v319_v24  ;;  %v402_v20 = vld [vmem:[%s12141_s1 + $0xb28] sm:$0xff]  ;;  %v417_v23 = vld [vmem:[%s12141_s1 + $0xba0] sm:$0xff] }
  0xa6   :  { %5926 = vmatprep.subr.mxu1 %v351_v25  ;;  %5892 = vmatpush3.msra.mxu0 %v303_v27  ;;  %v369_v24 = vld [vmem:[%s12141_s1 + $0xa20] sm:$0xff]  ;;  %v416_v27 = vld [vmem:[%s12141_s1 + $0xb98] sm:$0xff] }
  0xa7   :  { %5927 = vmatpush3.msra.mxu1 %v335_v28  ;;  %5893 = vmatprep.subr.mxu0 %v318_v29  ;;  %v401_v25 = vld [vmem:[%s12141_s1 + $0xb20] sm:$0xff]  ;;  %v1697_v28 = vcombine.high %v26_v21, %v26_v21  ;;  %v368_v29 = vld [vmem:[%s12141_s1 + $0xa18] sm:$0xff] }
  0xa8   :  { %5928 = vmatprep.subr.mxu1 %v350_v30  ;;  %5894 = vmatpush3.msra.mxu0 %v302_v32  ;;  %v400_v30 = vld [vmem:[%s12141_s1 + $0xb18] sm:$0xff]  ;;  %v415_v32 = vld [vmem:[%s12141_s1 + $0xb90] sm:$0xff] }
  0xa9   :  { %5929 = vmatpush3.msra.mxu1 %v334_v33  ;;  %5895 = vmatprep.subr.mxu0 %v317_v34  ;;  %v1704_v33 = vrot.slane %v26_v21, %v7515_v51  ;;  %v367_v34 = vld [vmem:[%s12141_s1 + $0xa10] sm:$0xff] }
  0xaa   :  { %5930 = vmatprep.subr.mxu1 %v349_v35  ;;  %5896 = vmatpush3.msra.mxu0 %v301_v37  ;;  %v399_v35 = vld [vmem:[%s12141_s1 + $0xb10] sm:$0xff]  ;;  %v414_v37 = vld [vmem:[%s12141_s1 + $0xb88] sm:$0xff] }
  0xab   :  { %2740 = vmatprep.mubr.f32.mxu0 %v1695_v36  ;;  %5931 = vmatpush3.msra.mxu1 %v333_v38  ;;  %v382_v36 = vld [vmem:[%s12141_s1 + $0xa88] sm:$0xff]  ;;  %v1711_v38 = vrot.slane %v1697_v28, %v7515_v51  ;;  %v483_v21 = vld [vmem:[%s12141_s1 + $0xdb0] sm:$0xff] }
  0xac   :  { %2741 = vmatmul.mubr.f32.vlgmr.msra.gmra.mxu0 %v1687_v26  ;;  %2810 = vmatprep.mubr.f32.mxu1 %v1696_v39  ;;  %v384_v26 = vld [vmem:[%s12141_s1 + $0xa98] sm:$0xff]  ;;  %v366_v39 = vld [vmem:[%s12141_s1 + $0xa08] sm:$0xff]  ;;  %v27_v28 = vld [vmem:[%s12140_s0 + $0x30] sm:$0xff] }
  0xad   :  { %5935 = vmatprep.subr.mxu0 %v396_v40  ;;  %5970 = vmatprep.subr.mxu1 %v428_v41  ;;  %v398_v40 = vld [vmem:[%s12141_s1 + $0xb08] sm:$0xff]  ;;  %v381_v41 = vld [vmem:[%s12141_s1 + $0xa80] sm:$0xff] }
  0xae   :  { %2811 = vmatmul.mubr.f32.vlgmr.msra.gmra.mxu1 %v1694_v31  ;;  %5936 = vmatpush3.msra.mxu0 %v380_v42  ;;  %v383_v31 = vld [vmem:[%s12141_s1 + $0xa90] sm:$0xff]  ;;  %v413_v42 = vld [vmem:[%s12141_s1 + $0xb80] sm:$0xff] }
  0xaf   :  { %5971 = vmatpush3.msra.mxu1 %v412_v43  ;;  %5937 = vmatprep.subr.mxu0 %v395_v44  ;;  %v1712_v43 = vcombine.high %v1704_v33, %v1704_v33  ;;  %v365_v44 = vld [vmem:[%s12141_s1 + $0xa00] sm:$0xff] }
  0xb0   :  { %5972 = vmatprep.subr.mxu1 %v427_v45  ;;  %5938 = vmatpush3.msra.mxu0 %v379_v46  ;;  %v397_v45 = vld [vmem:[%s12141_s1 + $0xb00] sm:$0xff]  ;;  %v1713_v46 = vcombine.high %v1711_v38, %v1711_v38 }
  0xb1   :  { %5973 = vmatpush3.msra.mxu1 %v411_v47  ;;  %5939 = vmatprep.subr.mxu0 %v394_v48  ;;  %v460_v47 = vld [vmem:[%s12141_s1 + $0xcf8] sm:$0xff] }
  0xb2   :  { %5974 = vmatprep.subr.mxu1 %v426_v49  ;;  %5940 = vmatpush3.msra.mxu0 %v378_v50  ;;  %v492_v48 = vld [vmem:[%s12141_s1 + $0xdf8] sm:$0xff] }
  0xb3   :  { %5975 = vmatpush3.msra.mxu1 %v410_v52  ;;  %5941 = vmatprep.subr.mxu0 %v393_v53  ;;  %v444_v49 = vld [vmem:[%s12141_s1 + $0xc78] sm:$0xff]  ;;  %v459_v52 = vld [vmem:[%s12141_s1 + $0xcf0] sm:$0xff] }
  0xb4   :  { %5976 = vmatprep.subr.mxu1 %v425_v54  ;;  %5942 = vmatpush3.msra.mxu0 %v377_v55  ;;  %v476_v50 = vld [vmem:[%s12141_s1 + $0xd78] sm:$0xff]  ;;  %v491_v53 = vld [vmem:[%s12141_s1 + $0xdf0] sm:$0xff] }
  0xb5   :  { %5977 = vmatpush3.msra.mxu1 %v409_v56  ;;  %5943 = vmatprep.subr.mxu0 %v392_v57  ;;  %v443_v54 = vld [vmem:[%s12141_s1 + $0xc70] sm:$0xff]  ;;  %v458_v56 = vld [vmem:[%s12141_s1 + $0xce8] sm:$0xff] }
  0xb6   :  { %5978 = vmatprep.subr.mxu1 %v424_v58  ;;  %5944 = vmatpush3.msra.mxu0 %v376_v59  ;;  %v475_v55 = vld [vmem:[%s12141_s1 + $0xd70] sm:$0xff]  ;;  %v490_v57 = vld [vmem:[%s12141_s1 + $0xde8] sm:$0xff] }
  0xb7   :  { %5979 = vmatpush3.msra.mxu1 %v408_v60  ;;  %5945 = vmatprep.subr.mxu0 %v391_v61  ;;  %v442_v58 = vld [vmem:[%s12141_s1 + $0xc68] sm:$0xff]  ;;  %v457_v60 = vld [vmem:[%s12141_s1 + $0xce0] sm:$0xff] }
  0xb8   :  { %5980 = vmatprep.subr.mxu1 %v423_v62  ;;  %5946 = vmatpush3.msra.mxu0 %v375_v63  ;;  %v474_v59 = vld [vmem:[%s12141_s1 + $0xd68] sm:$0xff]  ;;  %v489_v61 = vld [vmem:[%s12141_s1 + $0xde0] sm:$0xff] }
  0xb9   :  { %5981 = vmatpush3.msra.mxu1 %v407_v0  ;;  %5947 = vmatprep.subr.mxu0 %v390_v1  ;;  %v441_v62 = vld [vmem:[%s12141_s1 + $0xc60] sm:$0xff]  ;;  %v456_v0 = vld [vmem:[%s12141_s1 + $0xcd8] sm:$0xff] }
  0xba   :  { %5982 = vmatprep.subr.mxu1 %v422_v2  ;;  %5948 = vmatpush3.msra.mxu0 %v374_v3  ;;  %v473_v63 = vld [vmem:[%s12141_s1 + $0xd60] sm:$0xff]  ;;  %v488_v1 = vld [vmem:[%s12141_s1 + $0xdd8] sm:$0xff] }
  0xbb   :  { %5983 = vmatpush3.msra.mxu1 %v406_v4  ;;  %5949 = vmatprep.subr.mxu0 %v389_v5  ;;  %v440_v2 = vld [vmem:[%s12141_s1 + $0xc58] sm:$0xff]  ;;  %v455_v4 = vld [vmem:[%s12141_s1 + $0xcd0] sm:$0xff] }
  0xbc   :  { %5984 = vmatprep.subr.mxu1 %v421_v6  ;;  %5950 = vmatpush3.msra.mxu0 %v373_v7  ;;  %v472_v3 = vld [vmem:[%s12141_s1 + $0xd58] sm:$0xff]  ;;  %v487_v5 = vld [vmem:[%s12141_s1 + $0xdd0] sm:$0xff] }
  0xbd   :  { %5985 = vmatpush3.msra.mxu1 %v405_v8  ;;  %5951 = vmatprep.subr.mxu0 %v388_v9  ;;  %v439_v6 = vld [vmem:[%s12141_s1 + $0xc50] sm:$0xff]  ;;  %v454_v8 = vld [vmem:[%s12141_s1 + $0xcc8] sm:$0xff] }
  0xbe   :  { %5986 = vmatprep.subr.mxu1 %v420_v10  ;;  %5952 = vmatpush3.msra.mxu0 %v372_v11  ;;  %v471_v7 = vld [vmem:[%s12141_s1 + $0xd50] sm:$0xff]  ;;  %v486_v9 = vld [vmem:[%s12141_s1 + $0xdc8] sm:$0xff] }
  0xbf   :  { %5987 = vmatpush3.msra.mxu1 %v404_v12  ;;  %5953 = vmatprep.subr.mxu0 %v387_v13  ;;  %v438_v10 = vld [vmem:[%s12141_s1 + $0xc48] sm:$0xff]  ;;  %v453_v12 = vld [vmem:[%s12141_s1 + $0xcc0] sm:$0xff] }
  0xc0   :  { %5988 = vmatprep.subr.mxu1 %v419_v14  ;;  %5954 = vmatpush3.msra.mxu0 %v371_v15  ;;  %v470_v11 = vld [vmem:[%s12141_s1 + $0xd48] sm:$0xff]  ;;  %v485_v13 = vld [vmem:[%s12141_s1 + $0xdc0] sm:$0xff] }
  0xc1   :  { %5989 = vmatpush3.msra.mxu1 %v403_v16  ;;  %5955 = vmatprep.subr.mxu0 %v386_v17  ;;  %v437_v14 = vld [vmem:[%s12141_s1 + $0xc40] sm:$0xff]  ;;  %v452_v16 = vld [vmem:[%s12141_s1 + $0xcb8] sm:$0xff] }
  0xc2   :  { %5990 = vmatprep.subr.mxu1 %v418_v18  ;;  %5956 = vmatpush3.msra.mxu0 %v370_v19  ;;  %v469_v15 = vld [vmem:[%s12141_s1 + $0xd40] sm:$0xff]  ;;  %v484_v17 = vld [vmem:[%s12141_s1 + $0xdb8] sm:$0xff] }
  0xc3   :  { %5991 = vmatpush3.msra.mxu1 %v402_v20  ;;  %5957 = vmatprep.subr.mxu0 %v385_v22  ;;  %v436_v18 = vld [vmem:[%s12141_s1 + $0xc38] sm:$0xff]  ;;  %v451_v20 = vld [vmem:[%s12141_s1 + $0xcb0] sm:$0xff] }
  0xc4   :  { %5992 = vmatprep.subr.mxu1 %v417_v23  ;;  %5958 = vmatpush3.msra.mxu0 %v369_v24  ;;  %v468_v19 = vld [vmem:[%s12141_s1 + $0xd38] sm:$0xff]  ;;  %v435_v22 = vld [vmem:[%s12141_s1 + $0xc30] sm:$0xff]  ;;  %v450_v24 = vld [vmem:[%s12141_s1 + $0xca8] sm:$0xff] }
  0xc5   :  { %5993 = vmatpush3.msra.mxu1 %v401_v25  ;;  %5959 = vmatprep.subr.mxu0 %v384_v26  ;;  %v467_v23 = vld [vmem:[%s12141_s1 + $0xd30] sm:$0xff]  ;;  %v482_v25 = vld [vmem:[%s12141_s1 + $0xda8] sm:$0xff] }
  0xc6   :  { %5994 = vmatprep.subr.mxu1 %v416_v27  ;;  %5960 = vmatpush3.msra.mxu0 %v368_v29  ;;  %v434_v26 = vld [vmem:[%s12141_s1 + $0xc28] sm:$0xff]  ;;  %v449_v29 = vld [vmem:[%s12141_s1 + $0xca0] sm:$0xff] }
  0xc7   :  { %5995 = vmatpush3.msra.mxu1 %v400_v30  ;;  %5961 = vmatprep.subr.mxu0 %v383_v31  ;;  %v466_v27 = vld [vmem:[%s12141_s1 + $0xd28] sm:$0xff]  ;;  %v481_v30 = vld [vmem:[%s12141_s1 + $0xda0] sm:$0xff] }
  0xc8   :  { %5996 = vmatprep.subr.mxu1 %v415_v32  ;;  %5962 = vmatpush3.msra.mxu0 %v367_v34  ;;  %v433_v31 = vld [vmem:[%s12141_s1 + $0xc20] sm:$0xff]  ;;  %v480_v34 = vld [vmem:[%s12141_s1 + $0xd98] sm:$0xff] }
  0xc9   :  { %5997 = vmatpush3.msra.mxu1 %v399_v35  ;;  %5963 = vmatprep.subr.mxu0 %v382_v36  ;;  %v465_v32 = vld [vmem:[%s12141_s1 + $0xd20] sm:$0xff]  ;;  %v1714_v35 = vcombine.high %v27_v28, %v27_v28  ;;  %v432_v36 = vld [vmem:[%s12141_s1 + $0xc18] sm:$0xff] }
  0xca   :  { %5998 = vmatprep.subr.mxu1 %v414_v37  ;;  %5964 = vmatpush3.msra.mxu0 %v366_v39  ;;  %v464_v37 = vld [vmem:[%s12141_s1 + $0xd18] sm:$0xff] }
  0xcb   :  { %5999 = vmatpush3.msra.mxu1 %v398_v40  ;;  %5965 = vmatprep.subr.mxu0 %v381_v41 }
  0xcc   :  { %6000 = vmatprep.subr.mxu1 %v413_v42  ;;  %5966 = vmatpush3.msra.mxu0 %v365_v44 }
  0xcd   :  { %2880 = vmatprep.mubr.f32.mxu0 %v1712_v43  ;;  %6001 = vmatpush3.msra.mxu1 %v397_v45 }
  0xce   :  { %2881 = vmatmul.mubr.f32.vlgmr.msra.gmra.mxu0 %v1704_v33  ;;  %2950 = vmatprep.mubr.f32.mxu1 %v1713_v46  ;;  %v448_v33 = vld [vmem:[%s12141_s1 + $0xc98] sm:$0xff] }
  0xcf   :  { %6005 = vmatprep.subr.mxu0 %v460_v47  ;;  %6040 = vmatprep.subr.mxu1 %v492_v48 }
  0xd0   :  { %2951 = vmatmul.mubr.f32.vlgmr.msra.gmra.mxu1 %v1711_v38  ;;  %6006 = vmatpush3.msra.mxu0 %v444_v49 }
  0xd1   :  { %6041 = vmatpush3.msra.mxu1 %v476_v50  ;;  %6007 = vmatprep.subr.mxu0 %v459_v52 }
  0xd2   :  { %6042 = vmatprep.subr.mxu1 %v491_v53  ;;  %6008 = vmatpush3.msra.mxu0 %v443_v54 }
  0xd3   :  { %6043 = vmatpush3.msra.mxu1 %v475_v55  ;;  %6009 = vmatprep.subr.mxu0 %v458_v56 }
  0xd4   :  { %6044 = vmatprep.subr.mxu1 %v490_v57  ;;  %6010 = vmatpush3.msra.mxu0 %v442_v58 }
  0xd5   :  { %6045 = vmatpush3.msra.mxu1 %v474_v59  ;;  %6011 = vmatprep.subr.mxu0 %v457_v60 }
  0xd6   :  { %6046 = vmatprep.subr.mxu1 %v489_v61  ;;  %6012 = vmatpush3.msra.mxu0 %v441_v62 }
  0xd7   :  { %6047 = vmatpush3.msra.mxu1 %v473_v63  ;;  %6013 = vmatprep.subr.mxu0 %v456_v0 }
  0xd8   :  { %6048 = vmatprep.subr.mxu1 %v488_v1  ;;  %6014 = vmatpush3.msra.mxu0 %v440_v2 }
  0xd9   :  { %6049 = vmatpush3.msra.mxu1 %v472_v3  ;;  %6015 = vmatprep.subr.mxu0 %v455_v4 }
  0xda   :  { %6050 = vmatprep.subr.mxu1 %v487_v5  ;;  %6016 = vmatpush3.msra.mxu0 %v439_v6 }
  0xdb   :  { %6051 = vmatpush3.msra.mxu1 %v471_v7  ;;  %6017 = vmatprep.subr.mxu0 %v454_v8 }
  0xdc   :  { %6052 = vmatprep.subr.mxu1 %v486_v9  ;;  %6018 = vmatpush3.msra.mxu0 %v438_v10 }
  0xdd   :  { %6053 = vmatpush3.msra.mxu1 %v470_v11  ;;  %6019 = vmatprep.subr.mxu0 %v453_v12 }
  0xde   :  { %6054 = vmatprep.subr.mxu1 %v485_v13  ;;  %6020 = vmatpush3.msra.mxu0 %v437_v14 }
  0xdf   :  { %6055 = vmatpush3.msra.mxu1 %v469_v15  ;;  %6021 = vmatprep.subr.mxu0 %v452_v16 }
  0xe0   :  { %6056 = vmatprep.subr.mxu1 %v484_v17  ;;  %6022 = vmatpush3.msra.mxu0 %v436_v18 }
  0xe1   :  { %6057 = vmatpush3.msra.mxu1 %v468_v19  ;;  %6023 = vmatprep.subr.mxu0 %v451_v20 }
  0xe2   :  { %6058 = vmatprep.subr.mxu1 %v483_v21  ;;  %6024 = vmatpush3.msra.mxu0 %v435_v22 }
  0xe3   :  { %6059 = vmatpush3.msra.mxu1 %v467_v23  ;;  %6025 = vmatprep.subr.mxu0 %v450_v24 }
  0xe4   :  { %6060 = vmatprep.subr.mxu1 %v482_v25  ;;  %6026 = vmatpush3.msra.mxu0 %v434_v26 }
  0xe5   :  { %6061 = vmatpush3.msra.mxu1 %v466_v27  ;;  %6027 = vmatprep.subr.mxu0 %v449_v29 }
  0xe6   :  { %6062 = vmatprep.subr.mxu1 %v481_v30 }
  0xe7   :  { %10 = vsyncpa [#allocation3], 0  ;;  %6028 = vmatpush3.msra.mxu0 %v433_v31  ;;  %6063 = vmatpush3.msra.mxu1 %v465_v32  ;;  %v447_v38 = vld [vmem:[%s12141_s1 + $0xc90] sm:$0xff]  ;;  %v1721_v40 = vrot.slane %v27_v28, %v7515_v51  ;;  %v446_v43 = vld [vmem:[%s12141_s1 + $0xc88] sm:$0xff]  ;;  %v1728_v45 = vrot.slane %v1714_v35, %v7515_v51  ;;  %vm7345_vm0 = vmmov 0   ;;  %vm5492_vm1 = vcmask 523264  }
  0xe8   :  { %v479_v39 = vld [vmem:[%s12141_s1 + $0xd90] sm:$0xff]  ;;  %6029 = vmatprep.subr.mxu0 %v448_v33  ;;  %6064 = vmatprep.subr.mxu1 %v480_v34  ;;  %v478_v44 = vld [vmem:[%s12141_s1 + $0xd88] sm:$0xff]  ;;  %v445_v48 = vld [vmem:[%s12141_s1 + $0xc80] sm:$0xff]  ;;  %s7346_s27 = smov [#allocation2]   ;;  %vm5566_vm2 = vcmask 41984  }
  0xe9   :  { %v431_v41 = vld [vmem:[%s12141_s1 + $0xc10] sm:$0xff]  ;;  %6030 = vmatpush3.msra.mxu0 %v432_v36  ;;  %6065 = vmatpush3.msra.mxu1 %v464_v37  ;;  %v430_v46 = vld [vmem:[%s12141_s1 + $0xc08] sm:$0xff]  ;;  %v477_v49 = vld [vmem:[%s12141_s1 + $0xd80] sm:$0xff]  ;;  %v1729_v50 = vcombine.high %v1721_v40, %v1721_v40  ;;  %v1730_v54 = vcombine.high %v1728_v45, %v1728_v45  ;;  %s5574_s28 = sshll.u32 %s7346_s27, 4  ;;  %s5575_s28 = int_to_ptr.vmem [resolvable:$true] %s5574_s28 }
  0xea   :  { %v463_v42 = vld [vmem:[%s12141_s1 + $0xd10] sm:$0xff]  ;;  %6031 = vmatprep.subr.mxu0 %v447_v38  ;;  %6066 = vmatprep.subr.mxu1 %v479_v39  ;;  %v462_v47 = vld [vmem:[%s12141_s1 + $0xd08] sm:$0xff]  ;;  %v429_v52 = vld [vmem:[%s12141_s1 + $0xc00] sm:$0xff]  ;;  %s7321_s29 = scalar_lea.vmem %s5575_s28, 32  ;;  %p7326_p1 = scmp.lt.s32.totalorder %s5575_s28, %s5575_s28 }
  0xeb   :  { %6032 = vmatpush3.msra.mxu0 %v431_v41  ;;  %6067 = vmatpush3.msra.mxu1 %v463_v42  ;;  %v461_v53 = vld [vmem:[%s12141_s1 + $0xd00] sm:$0xff]  ;;  %v524_v55 = vld [vmem:[%s12141_s1 + $0xef8] sm:$0xff]  ;;  %v523_v59 = vld [vmem:[%s12141_s1 + $0xef0] sm:$0xff]  ;;  %p7322_p0 = scmp.ne.s32.totalorder %s5575_s28, %s7321_s29  ;;  %p7327_p2 = scmp.lt.s32.totalorder %s7321_s29, %s7321_s29 }
  0xec   :  { %6033 = vmatprep.subr.mxu0 %v446_v43  ;;  %6068 = vmatprep.subr.mxu1 %v478_v44  ;;  %v556_v56 = vld [vmem:[%s12141_s1 + $0xff8] sm:$0xff]  ;;  %v555_v60 = vld [vmem:[%s12141_s1 + $0xff0] sm:$0xff]  ;;  %v522_v63 = vld [vmem:[%s12141_s1 + $0xee8] sm:$0xff] }
  0xed   :  { %6034 = vmatpush3.msra.mxu0 %v430_v46  ;;  %6069 = vmatpush3.msra.mxu1 %v462_v47  ;;  %v508_v57 = vld [vmem:[%s12141_s1 + $0xe78] sm:$0xff]  ;;  %v507_v61 = vld [vmem:[%s12141_s1 + $0xe70] sm:$0xff]  ;;  %v554_v0 = vld [vmem:[%s12141_s1 + $0xfe8] sm:$0xff]  ;;  %p7328_p3 = por %p7327_p2, %p7326_p1 }
  0xee   :  { %6035 = vmatprep.subr.mxu0 %v445_v48  ;;  %6070 = vmatprep.subr.mxu1 %v477_v49  ;;  %v540_v58 = vld [vmem:[%s12141_s1 + $0xf78] sm:$0xff]  ;;  %v539_v62 = vld [vmem:[%s12141_s1 + $0xf70] sm:$0xff]  ;;  %v506_v1 = vld [vmem:[%s12141_s1 + $0xe68] sm:$0xff] }
  0xef   :  { %6036 = vmatpush3.msra.mxu0 %v429_v52  ;;  %3020 = vmatprep.mubr.f32.mxu0 %v1729_v50  ;;  %v538_v2 = vld [vmem:[%s12141_s1 + $0xf68] sm:$0xff]  ;;  %v521_v3 = vld [vmem:[%s12141_s1 + $0xee0] sm:$0xff]  ;;  %v520_v7 = vld [vmem:[%s12141_s1 + $0xed8] sm:$0xff]  ;;  %p7329_p4 = pnand %p7328_p3, %p7322_p0 }
  0xf0   :  { %6071 = vmatpush3.msra.mxu1 %v461_v53  ;;  %3021 = vmatmul.mubr.f32.vlgmr.msra.gmra.mxu0 %v1721_v40  ;;  %v553_v4 = vld [vmem:[%s12141_s1 + $0xfe0] sm:$0xff]  ;;  %v552_v8 = vld [vmem:[%s12141_s1 + $0xfd8] sm:$0xff]  ;;  %v519_v11 = vld [vmem:[%s12141_s1 + $0xed0] sm:$0xff] }
  0xf1   :  { %3090 = vmatprep.mubr.f32.mxu1 %v1730_v54  ;;  %6075 = vmatprep.subr.mxu0 %v524_v55  ;;  %v505_v5 = vld [vmem:[%s12141_s1 + $0xe60] sm:$0xff]  ;;  %v504_v9 = vld [vmem:[%s12141_s1 + $0xe58] sm:$0xff]  ;;  %v551_v12 = vld [vmem:[%s12141_s1 + $0xfd0] sm:$0xff] }
  0xf2   :  { %6110 = vmatprep.subr.mxu1 %v556_v56  ;;  %3091 = vmatmul.mubr.f32.vlgmr.msra.gmra.mxu1 %v1728_v45  ;;  %v537_v6 = vld [vmem:[%s12141_s1 + $0xf60] sm:$0xff]  ;;  %v536_v10 = vld [vmem:[%s12141_s1 + $0xf58] sm:$0xff]  ;;  %v503_v13 = vld [vmem:[%s12141_s1 + $0xe50] sm:$0xff] }
  0xf3   :  { %6076 = vmatpush3.msra.mxu0 %v508_v57  ;;  %6111 = vmatpush3.msra.mxu1 %v540_v58  ;;  %v535_v14 = vld [vmem:[%s12141_s1 + $0xf50] sm:$0xff]  ;;  %v518_v15 = vld [vmem:[%s12141_s1 + $0xec8] sm:$0xff]  ;;  %v517_v19 = vld [vmem:[%s12141_s1 + $0xec0] sm:$0xff] }
  0xf4   :  { %6077 = vmatprep.subr.mxu0 %v523_v59  ;;  %6112 = vmatprep.subr.mxu1 %v555_v60  ;;  %v550_v16 = vld [vmem:[%s12141_s1 + $0xfc8] sm:$0xff]  ;;  %v549_v20 = vld [vmem:[%s12141_s1 + $0xfc0] sm:$0xff]  ;;  %v516_v23 = vld [vmem:[%s12141_s1 + $0xeb8] sm:$0xff] }
  0xf5   :  { %6078 = vmatpush3.msra.mxu0 %v507_v61  ;;  %6113 = vmatpush3.msra.mxu1 %v539_v62  ;;  %v502_v17 = vld [vmem:[%s12141_s1 + $0xe48] sm:$0xff]  ;;  %v501_v21 = vld [vmem:[%s12141_s1 + $0xe40] sm:$0xff]  ;;  %v548_v24 = vld [vmem:[%s12141_s1 + $0xfb8] sm:$0xff] }
  0xf6   :  { %6079 = vmatprep.subr.mxu0 %v522_v63  ;;  %6114 = vmatprep.subr.mxu1 %v554_v0  ;;  %v534_v18 = vld [vmem:[%s12141_s1 + $0xf48] sm:$0xff]  ;;  %v533_v22 = vld [vmem:[%s12141_s1 + $0xf40] sm:$0xff]  ;;  %v500_v25 = vld [vmem:[%s12141_s1 + $0xe38] sm:$0xff] }
  0xf7   :  { %6080 = vmatpush3.msra.mxu0 %v506_v1  ;;  %6115 = vmatpush3.msra.mxu1 %v538_v2  ;;  %v532_v26 = vld [vmem:[%s12141_s1 + $0xf38] sm:$0xff]  ;;  %v515_v27 = vld [vmem:[%s12141_s1 + $0xeb0] sm:$0xff]  ;;  %v514_v31 = vld [vmem:[%s12141_s1 + $0xea8] sm:$0xff] }
  0xf8   :  { %6081 = vmatprep.subr.mxu0 %v521_v3  ;;  %6116 = vmatprep.subr.mxu1 %v553_v4  ;;  %v547_v28 = vld [vmem:[%s12141_s1 + $0xfb0] sm:$0xff]  ;;  %v546_v32 = vld [vmem:[%s12141_s1 + $0xfa8] sm:$0xff]  ;;  %v28_v35 = vld [vmem:[%s12140_s0 + $0x38] sm:$0xff] }
  0xf9   :  { %6082 = vmatpush3.msra.mxu0 %v505_v5  ;;  %6117 = vmatpush3.msra.mxu1 %v537_v6  ;;  %v499_v29 = vld [vmem:[%s12141_s1 + $0xe30] sm:$0xff]  ;;  %v498_v33 = vld [vmem:[%s12141_s1 + $0xe28] sm:$0xff]  ;;  %v513_v36 = vld [vmem:[%s12141_s1 + $0xea0] sm:$0xff]  ;;  %v1731_v42 = vcombine.high %v28_v35, %v28_v35  ;;  %v1738_v47 = vrot.slane %v28_v35, %v7515_v51 }
  0xfa   :  { %6083 = vmatprep.subr.mxu0 %v520_v7  ;;  %6118 = vmatprep.subr.mxu1 %v552_v8  ;;  %v531_v30 = vld [vmem:[%s12141_s1 + $0xf30] sm:$0xff]  ;;  %v530_v34 = vld [vmem:[%s12141_s1 + $0xf28] sm:$0xff]  ;;  %v545_v37 = vld [vmem:[%s12141_s1 + $0xfa0] sm:$0xff] }
  0xfb   :  { %6084 = vmatpush3.msra.mxu0 %v504_v9  ;;  %6119 = vmatpush3.msra.mxu1 %v536_v10  ;;  %v497_v38 = vld [vmem:[%s12141_s1 + $0xe20] sm:$0xff]  ;;  %v512_v40 = vld [vmem:[%s12141_s1 + $0xe98] sm:$0xff]  ;;  %v511_v45 = vld [vmem:[%s12141_s1 + $0xe90] sm:$0xff]  ;;  %v1745_v53 = vrot.slane %v1731_v42, %v7515_v51  ;;  %v1746_v58 = vcombine.high %v1738_v47, %v1738_v47 }
  0xfc   :  { %6085 = vmatprep.subr.mxu0 %v519_v11  ;;  %6120 = vmatprep.subr.mxu1 %v551_v12  ;;  %v529_v39 = vld [vmem:[%s12141_s1 + $0xf20] sm:$0xff]  ;;  %v544_v41 = vld [vmem:[%s12141_s1 + $0xf98] sm:$0xff]  ;;  %v543_v46 = vld [vmem:[%s12141_s1 + $0xf90] sm:$0xff] }
  0xfd   :  { %6086 = vmatpush3.msra.mxu0 %v503_v13  ;;  %6121 = vmatpush3.msra.mxu1 %v535_v14  ;;  %v496_v43 = vld [vmem:[%s12141_s1 + $0xe18] sm:$0xff]  ;;  %v495_v48 = vld [vmem:[%s12141_s1 + $0xe10] sm:$0xff]  ;;  %v510_v50 = vld [vmem:[%s12141_s1 + $0xe88] sm:$0xff]  ;;  %v1747_v61 = vcombine.high %v1745_v53, %v1745_v53 }
  0xfe   :  { %6087 = vmatprep.subr.mxu0 %v518_v15  ;;  %6122 = vmatprep.subr.mxu1 %v550_v16  ;;  %v528_v44 = vld [vmem:[%s12141_s1 + $0xf18] sm:$0xff]  ;;  %v527_v49 = vld [vmem:[%s12141_s1 + $0xf10] sm:$0xff]  ;;  %v542_v52 = vld [vmem:[%s12141_s1 + $0xf88] sm:$0xff] }
  0xff   :  { %6088 = vmatpush3.msra.mxu0 %v502_v17  ;;  %6123 = vmatpush3.msra.mxu1 %v534_v18  ;;  %v494_v54 = vld [vmem:[%s12141_s1 + $0xe08] sm:$0xff]  ;;  %v509_v56 = vld [vmem:[%s12141_s1 + $0xe80] sm:$0xff]  ;;  %v588_v62 = vld [vmem:[%s12141_s1 + $0x10f8] sm:$0xff] }
 0x100   :  { %6089 = vmatprep.subr.mxu0 %v517_v19  ;;  %6124 = vmatprep.subr.mxu1 %v549_v20  ;;  %v526_v55 = vld [vmem:[%s12141_s1 + $0xf08] sm:$0xff]  ;;  %v541_v57 = vld [vmem:[%s12141_s1 + $0xf80] sm:$0xff]  ;;  %v620_v63 = vld [vmem:[%s12141_s1 + $0x11f8] sm:$0xff] }
 0x101   :  { %6090 = vmatpush3.msra.mxu0 %v501_v21  ;;  %6125 = vmatpush3.msra.mxu1 %v533_v22  ;;  %v493_v59 = vld [vmem:[%s12141_s1 + $0xe00] sm:$0xff]  ;;  %v572_v0 = vld [vmem:[%s12141_s1 + $0x1078] sm:$0xff]  ;;  %v587_v2 = vld [vmem:[%s12141_s1 + $0x10f0] sm:$0xff] }
 0x102   :  { %6091 = vmatprep.subr.mxu0 %v516_v23  ;;  %6126 = vmatprep.subr.mxu1 %v548_v24  ;;  %v525_v60 = vld [vmem:[%s12141_s1 + $0xf00] sm:$0xff]  ;;  %v604_v1 = vld [vmem:[%s12141_s1 + $0x1178] sm:$0xff]  ;;  %v619_v3 = vld [vmem:[%s12141_s1 + $0x11f0] sm:$0xff] }
 0x103   :  { %6092 = vmatpush3.msra.mxu0 %v500_v25  ;;  %6127 = vmatpush3.msra.mxu1 %v532_v26  ;;  %v571_v4 = vld [vmem:[%s12141_s1 + $0x1070] sm:$0xff]  ;;  %v586_v6 = vld [vmem:[%s12141_s1 + $0x10e8] sm:$0xff]  ;;  %v585_v10 = vld [vmem:[%s12141_s1 + $0x10e0] sm:$0xff] }
 0x104   :  { %6093 = vmatprep.subr.mxu0 %v515_v27  ;;  %6128 = vmatprep.subr.mxu1 %v547_v28  ;;  %v603_v5 = vld [vmem:[%s12141_s1 + $0x1170] sm:$0xff]  ;;  %v618_v7 = vld [vmem:[%s12141_s1 + $0x11e8] sm:$0xff]  ;;  %v617_v11 = vld [vmem:[%s12141_s1 + $0x11e0] sm:$0xff] }
 0x105   :  { %6094 = vmatpush3.msra.mxu0 %v499_v29  ;;  %6129 = vmatpush3.msra.mxu1 %v531_v30  ;;  %v570_v8 = vld [vmem:[%s12141_s1 + $0x1068] sm:$0xff]  ;;  %v569_v12 = vld [vmem:[%s12141_s1 + $0x1060] sm:$0xff]  ;;  %v584_v14 = vld [vmem:[%s12141_s1 + $0x10d8] sm:$0xff] }
 0x106   :  { %6095 = vmatprep.subr.mxu0 %v514_v31  ;;  %6130 = vmatprep.subr.mxu1 %v546_v32  ;;  %v602_v9 = vld [vmem:[%s12141_s1 + $0x1168] sm:$0xff]  ;;  %v601_v13 = vld [vmem:[%s12141_s1 + $0x1160] sm:$0xff]  ;;  %v616_v15 = vld [vmem:[%s12141_s1 + $0x11d8] sm:$0xff] }
 0x107   :  { %6096 = vmatpush3.msra.mxu0 %v498_v33  ;;  %6131 = vmatpush3.msra.mxu1 %v530_v34  ;;  %v568_v16 = vld [vmem:[%s12141_s1 + $0x1058] sm:$0xff]  ;;  %v583_v18 = vld [vmem:[%s12141_s1 + $0x10d0] sm:$0xff]  ;;  %v582_v22 = vld [vmem:[%s12141_s1 + $0x10c8] sm:$0xff] }
 0x108   :  { %6097 = vmatprep.subr.mxu0 %v513_v36  ;;  %6132 = vmatprep.subr.mxu1 %v545_v37  ;;  %v600_v17 = vld [vmem:[%s12141_s1 + $0x1158] sm:$0xff]  ;;  %v615_v19 = vld [vmem:[%s12141_s1 + $0x11d0] sm:$0xff]  ;;  %v614_v23 = vld [vmem:[%s12141_s1 + $0x11c8] sm:$0xff] }
 0x109   :  { %6098 = vmatpush3.msra.mxu0 %v497_v38  ;;  %6133 = vmatpush3.msra.mxu1 %v529_v39  ;;  %v567_v20 = vld [vmem:[%s12141_s1 + $0x1050] sm:$0xff]  ;;  %v566_v24 = vld [vmem:[%s12141_s1 + $0x1048] sm:$0xff]  ;;  %v581_v26 = vld [vmem:[%s12141_s1 + $0x10c0] sm:$0xff] }
 0x10a   :  { %6099 = vmatprep.subr.mxu0 %v512_v40  ;;  %6134 = vmatprep.subr.mxu1 %v544_v41  ;;  %v599_v21 = vld [vmem:[%s12141_s1 + $0x1150] sm:$0xff]  ;;  %v598_v25 = vld [vmem:[%s12141_s1 + $0x1148] sm:$0xff]  ;;  %v613_v27 = vld [vmem:[%s12141_s1 + $0x11c0] sm:$0xff] }
 0x10b   :  { %6100 = vmatpush3.msra.mxu0 %v496_v43  ;;  %6135 = vmatpush3.msra.mxu1 %v528_v44  ;;  %v565_v28 = vld [vmem:[%s12141_s1 + $0x1040] sm:$0xff]  ;;  %v580_v30 = vld [vmem:[%s12141_s1 + $0x10b8] sm:$0xff]  ;;  %v579_v34 = vld [vmem:[%s12141_s1 + $0x10b0] sm:$0xff] }
 0x10c   :  { %6101 = vmatprep.subr.mxu0 %v511_v45  ;;  %6136 = vmatprep.subr.mxu1 %v543_v46  ;;  %v597_v29 = vld [vmem:[%s12141_s1 + $0x1140] sm:$0xff]  ;;  %v612_v31 = vld [vmem:[%s12141_s1 + $0x11b8] sm:$0xff]  ;;  %v611_v35 = vld [vmem:[%s12141_s1 + $0x11b0] sm:$0xff] }
 0x10d   :  { %6102 = vmatpush3.msra.mxu0 %v495_v48  ;;  %6137 = vmatpush3.msra.mxu1 %v527_v49  ;;  %v564_v32 = vld [vmem:[%s12141_s1 + $0x1038] sm:$0xff]  ;;  %v563_v36 = vld [vmem:[%s12141_s1 + $0x1030] sm:$0xff]  ;;  %v578_v38 = vld [vmem:[%s12141_s1 + $0x10a8] sm:$0xff] }
 0x10e   :  { %6103 = vmatprep.subr.mxu0 %v510_v50  ;;  %6138 = vmatprep.subr.mxu1 %v542_v52  ;;  %v596_v33 = vld [vmem:[%s12141_s1 + $0x1138] sm:$0xff]  ;;  %v595_v37 = vld [vmem:[%s12141_s1 + $0x1130] sm:$0xff]  ;;  %v610_v39 = vld [vmem:[%s12141_s1 + $0x11a8] sm:$0xff] }
 0x10f   :  { %6104 = vmatpush3.msra.mxu0 %v494_v54  ;;  %6139 = vmatpush3.msra.mxu1 %v526_v55  ;;  %v562_v40 = vld [vmem:[%s12141_s1 + $0x1028] sm:$0xff]  ;;  %v29_v42 = vld [vmem:[%s12140_s0 + $0x40] sm:$0xff]  ;;  %v608_v48 = vld [vmem:[%s12141_s1 + $0x1198] sm:$0xff] }
 0x110   :  { %6105 = vmatprep.subr.mxu0 %v509_v56  ;;  %6140 = vmatprep.subr.mxu1 %v541_v57  ;;  %v594_v41 = vld [vmem:[%s12141_s1 + $0x1128] sm:$0xff]  ;;  %v577_v43 = vld [vmem:[%s12141_s1 + $0x10a0] sm:$0xff]  ;;  %v1748_v49 = vcombine.high %v29_v42, %v29_v42  ;;  %v560_v50 = vld [vmem:[%s12141_s1 + $0x1018] sm:$0xff]  ;;  %v1755_v55 = vrot.slane %v29_v42, %v7515_v51 }
 0x111   :  { %6106 = vmatpush3.msra.mxu0 %v493_v59  ;;  %3160 = vmatprep.mubr.f32.mxu0 %v1746_v58  ;;  %v609_v44 = vld [vmem:[%s12141_s1 + $0x11a0] sm:$0xff]  ;;  %v592_v52 = vld [vmem:[%s12141_s1 + $0x1118] sm:$0xff]  ;;  %v607_v54 = vld [vmem:[%s12141_s1 + $0x1190] sm:$0xff] }
 0x112   :  { %6141 = vmatpush3.msra.mxu1 %v525_v60  ;;  %3161 = vmatmul.mubr.f32.vlgmr.msra.gmra.mxu0 %v1738_v47  ;;  %v561_v45 = vld [vmem:[%s12141_s1 + $0x1020] sm:$0xff]  ;;  %v576_v47 = vld [vmem:[%s12141_s1 + $0x1098] sm:$0xff]  ;;  %v559_v56 = vld [vmem:[%s12141_s1 + $0x1010] sm:$0xff]  ;;  %v1762_v60 = vrot.slane %v1748_v49, %v7515_v51 }
 0x113   :  { %3230 = vmatprep.mubr.f32.mxu1 %v1747_v61  ;;  %6145 = vmatprep.subr.mxu0 %v588_v62  ;;  %v593_v46 = vld [vmem:[%s12141_s1 + $0x1120] sm:$0xff]  ;;  %v591_v57 = vld [vmem:[%s12141_s1 + $0x1110] sm:$0xff]  ;;  %v574_v58 = vld [vmem:[%s12141_s1 + $0x1088] sm:$0xff] }
 0x114   :  { %6180 = vmatprep.subr.mxu1 %v620_v63  ;;  %3231 = vmatmul.mubr.f32.vlgmr.msra.gmra.mxu1 %v1745_v53  ;;  %v575_v53 = vld [vmem:[%s12141_s1 + $0x1090] sm:$0xff]  ;;  %v606_v59 = vld [vmem:[%s12141_s1 + $0x1188] sm:$0xff]  ;;  %v573_v63 = vld [vmem:[%s12141_s1 + $0x1080] sm:$0xff] }
 0x115   :  { %6146 = vmatpush3.msra.mxu0 %v572_v0  ;;  %6181 = vmatpush3.msra.mxu1 %v604_v1  ;;  %v558_v61 = vld [vmem:[%s12141_s1 + $0x1008] sm:$0xff]  ;;  %v605_v0 = vld [vmem:[%s12141_s1 + $0x1180] sm:$0xff]  ;;  %v1763_v1 = vcombine.high %v1755_v55, %v1755_v55  ;;  %v675_v42 = vld [vmem:[%s12141_s1 + $0x13b0] sm:$0xff] }
 0x116   :  { %6147 = vmatprep.subr.mxu0 %v587_v2  ;;  %6182 = vmatprep.subr.mxu1 %v619_v3  ;;  %v590_v62 = vld [vmem:[%s12141_s1 + $0x1108] sm:$0xff]  ;;  %v557_v2 = vld [vmem:[%s12141_s1 + $0x1000] sm:$0xff] }
 0x117   :  { %6148 = vmatpush3.msra.mxu0 %v571_v4  ;;  %6183 = vmatpush3.msra.mxu1 %v603_v5  ;;  %v589_v3 = vld [vmem:[%s12141_s1 + $0x1100] sm:$0xff]  ;;  %v1764_v4 = vcombine.high %v1762_v60, %v1762_v60  ;;  %v652_v5 = vld [vmem:[%s12141_s1 + $0x12f8] sm:$0xff]  ;;  %v30_v49 = vld [vmem:[%s12140_s0 + $0x48] sm:$0xff] }
 0x118   :  { %6149 = vmatprep.subr.mxu0 %v586_v6  ;;  %6184 = vmatprep.subr.mxu1 %v618_v7  ;;  %v684_v6 = vld [vmem:[%s12141_s1 + $0x13f8] sm:$0xff] }
 0x119   :  { %6150 = vmatpush3.msra.mxu0 %v570_v8  ;;  %6185 = vmatpush3.msra.mxu1 %v602_v9  ;;  %v636_v7 = vld [vmem:[%s12141_s1 + $0x1278] sm:$0xff]  ;;  %v651_v9 = vld [vmem:[%s12141_s1 + $0x12f0] sm:$0xff] }
 0x11a   :  { %6151 = vmatprep.subr.mxu0 %v585_v10  ;;  %6186 = vmatprep.subr.mxu1 %v617_v11  ;;  %v668_v8 = vld [vmem:[%s12141_s1 + $0x1378] sm:$0xff]  ;;  %v683_v10 = vld [vmem:[%s12141_s1 + $0x13f0] sm:$0xff] }
 0x11b   :  { %6152 = vmatpush3.msra.mxu0 %v569_v12  ;;  %6187 = vmatpush3.msra.mxu1 %v601_v13  ;;  %v635_v11 = vld [vmem:[%s12141_s1 + $0x1270] sm:$0xff]  ;;  %v650_v13 = vld [vmem:[%s12141_s1 + $0x12e8] sm:$0xff] }
 0x11c   :  { %6153 = vmatprep.subr.mxu0 %v584_v14  ;;  %6188 = vmatprep.subr.mxu1 %v616_v15  ;;  %v667_v12 = vld [vmem:[%s12141_s1 + $0x1370] sm:$0xff]  ;;  %v682_v14 = vld [vmem:[%s12141_s1 + $0x13e8] sm:$0xff] }
 0x11d   :  { %6154 = vmatpush3.msra.mxu0 %v568_v16  ;;  %6189 = vmatpush3.msra.mxu1 %v600_v17  ;;  %v634_v15 = vld [vmem:[%s12141_s1 + $0x1268] sm:$0xff]  ;;  %v649_v17 = vld [vmem:[%s12141_s1 + $0x12e0] sm:$0xff] }
 0x11e   :  { %6155 = vmatprep.subr.mxu0 %v583_v18  ;;  %6190 = vmatprep.subr.mxu1 %v615_v19  ;;  %v666_v16 = vld [vmem:[%s12141_s1 + $0x1368] sm:$0xff]  ;;  %v681_v18 = vld [vmem:[%s12141_s1 + $0x13e0] sm:$0xff] }
 0x11f   :  { %6156 = vmatpush3.msra.mxu0 %v567_v20  ;;  %6191 = vmatpush3.msra.mxu1 %v599_v21  ;;  %v633_v19 = vld [vmem:[%s12141_s1 + $0x1260] sm:$0xff]  ;;  %v648_v21 = vld [vmem:[%s12141_s1 + $0x12d8] sm:$0xff] }
 0x120   :  { %6157 = vmatprep.subr.mxu0 %v582_v22  ;;  %6192 = vmatprep.subr.mxu1 %v614_v23  ;;  %v665_v20 = vld [vmem:[%s12141_s1 + $0x1360] sm:$0xff]  ;;  %v680_v22 = vld [vmem:[%s12141_s1 + $0x13d8] sm:$0xff] }
 0x121   :  { %6158 = vmatpush3.msra.mxu0 %v566_v24  ;;  %6193 = vmatpush3.msra.mxu1 %v598_v25  ;;  %v632_v23 = vld [vmem:[%s12141_s1 + $0x1258] sm:$0xff]  ;;  %v647_v25 = vld [vmem:[%s12141_s1 + $0x12d0] sm:$0xff] }
 0x122   :  { %6159 = vmatprep.subr.mxu0 %v581_v26  ;;  %6194 = vmatprep.subr.mxu1 %v613_v27  ;;  %v664_v24 = vld [vmem:[%s12141_s1 + $0x1358] sm:$0xff]  ;;  %v679_v26 = vld [vmem:[%s12141_s1 + $0x13d0] sm:$0xff] }
 0x123   :  { %6160 = vmatpush3.msra.mxu0 %v565_v28  ;;  %6195 = vmatpush3.msra.mxu1 %v597_v29  ;;  %v631_v27 = vld [vmem:[%s12141_s1 + $0x1250] sm:$0xff]  ;;  %v646_v29 = vld [vmem:[%s12141_s1 + $0x12c8] sm:$0xff] }
 0x124   :  { %6161 = vmatprep.subr.mxu0 %v580_v30  ;;  %6196 = vmatprep.subr.mxu1 %v612_v31  ;;  %v663_v28 = vld [vmem:[%s12141_s1 + $0x1350] sm:$0xff]  ;;  %v678_v30 = vld [vmem:[%s12141_s1 + $0x13c8] sm:$0xff] }
 0x125   :  { %6162 = vmatpush3.msra.mxu0 %v564_v32  ;;  %6197 = vmatpush3.msra.mxu1 %v596_v33  ;;  %v630_v31 = vld [vmem:[%s12141_s1 + $0x1248] sm:$0xff]  ;;  %v645_v33 = vld [vmem:[%s12141_s1 + $0x12c0] sm:$0xff] }
 0x126   :  { %6163 = vmatprep.subr.mxu0 %v579_v34  ;;  %6198 = vmatprep.subr.mxu1 %v611_v35  ;;  %v662_v32 = vld [vmem:[%s12141_s1 + $0x1348] sm:$0xff]  ;;  %v677_v34 = vld [vmem:[%s12141_s1 + $0x13c0] sm:$0xff] }
 0x127   :  { %6164 = vmatpush3.msra.mxu0 %v563_v36  ;;  %6199 = vmatpush3.msra.mxu1 %v595_v37  ;;  %v629_v35 = vld [vmem:[%s12141_s1 + $0x1240] sm:$0xff]  ;;  %v644_v37 = vld [vmem:[%s12141_s1 + $0x12b8] sm:$0xff] }
 0x128   :  { %6165 = vmatprep.subr.mxu0 %v578_v38  ;;  %6200 = vmatprep.subr.mxu1 %v610_v39  ;;  %v661_v36 = vld [vmem:[%s12141_s1 + $0x1340] sm:$0xff]  ;;  %v676_v38 = vld [vmem:[%s12141_s1 + $0x13b8] sm:$0xff] }
 0x129   :  { %6166 = vmatpush3.msra.mxu0 %v562_v40  ;;  %6201 = vmatpush3.msra.mxu1 %v594_v41  ;;  %v628_v39 = vld [vmem:[%s12141_s1 + $0x1238] sm:$0xff]  ;;  %v643_v41 = vld [vmem:[%s12141_s1 + $0x12b0] sm:$0xff] }
 0x12a   :  { %6167 = vmatprep.subr.mxu0 %v577_v43  ;;  %6202 = vmatprep.subr.mxu1 %v609_v44  ;;  %v660_v40 = vld [vmem:[%s12141_s1 + $0x1338] sm:$0xff]  ;;  %v627_v43 = vld [vmem:[%s12141_s1 + $0x1230] sm:$0xff] }
 0x12b   :  { %6168 = vmatpush3.msra.mxu0 %v561_v45  ;;  %6203 = vmatpush3.msra.mxu1 %v593_v46  ;;  %v659_v44 = vld [vmem:[%s12141_s1 + $0x1330] sm:$0xff]  ;;  %v642_v45 = vld [vmem:[%s12141_s1 + $0x12a8] sm:$0xff] }
 0x12c   :  { %6169 = vmatprep.subr.mxu0 %v576_v47  ;;  %6204 = vmatprep.subr.mxu1 %v608_v48  ;;  %v674_v46 = vld [vmem:[%s12141_s1 + $0x13a8] sm:$0xff] }
 0x12d   :  { %6170 = vmatpush3.msra.mxu0 %v560_v50  ;;  %6205 = vmatpush3.msra.mxu1 %v592_v52  ;;  %v626_v47 = vld [vmem:[%s12141_s1 + $0x1228] sm:$0xff]  ;;  %v641_v50 = vld [vmem:[%s12141_s1 + $0x12a0] sm:$0xff] }
 0x12e   :  { %6171 = vmatprep.subr.mxu0 %v575_v53  ;;  %6206 = vmatprep.subr.mxu1 %v607_v54  ;;  %v658_v48 = vld [vmem:[%s12141_s1 + $0x1328] sm:$0xff]  ;;  %v673_v52 = vld [vmem:[%s12141_s1 + $0x13a0] sm:$0xff] }
 0x12f   :  { %6172 = vmatpush3.msra.mxu0 %v559_v56  ;;  %6207 = vmatpush3.msra.mxu1 %v591_v57  ;;  %v625_v53 = vld [vmem:[%s12141_s1 + $0x1220] sm:$0xff]  ;;  %v672_v56 = vld [vmem:[%s12141_s1 + $0x1398] sm:$0xff]  ;;  %v1765_v57 = vcombine.high %v30_v49, %v30_v49 }
 0x130   :  { %6173 = vmatprep.subr.mxu0 %v574_v58  ;;  %6208 = vmatprep.subr.mxu1 %v606_v59  ;;  %v657_v54 = vld [vmem:[%s12141_s1 + $0x1320] sm:$0xff]  ;;  %v624_v58 = vld [vmem:[%s12141_s1 + $0x1218] sm:$0xff] }
 0x131   :  { %6174 = vmatpush3.msra.mxu0 %v558_v61  ;;  %6209 = vmatpush3.msra.mxu1 %v590_v62  ;;  %v656_v59 = vld [vmem:[%s12141_s1 + $0x1318] sm:$0xff]  ;;  %v671_v61 = vld [vmem:[%s12141_s1 + $0x1390] sm:$0xff]  ;;  %v1772_v62 = vrot.slane %v30_v49, %v7515_v51 }
 0x132   :  { %6175 = vmatprep.subr.mxu0 %v573_v63  ;;  %6210 = vmatprep.subr.mxu1 %v605_v0  ;;  %v623_v63 = vld [vmem:[%s12141_s1 + $0x1210] sm:$0xff] }
 0x133   :  { %6176 = vmatpush3.msra.mxu0 %v557_v2  ;;  %3300 = vmatprep.mubr.f32.mxu0 %v1763_v1  ;;  %v655_v0 = vld [vmem:[%s12141_s1 + $0x1310] sm:$0xff]  ;;  %v638_v1 = vld [vmem:[%s12141_s1 + $0x1288] sm:$0xff] }
 0x134   :  { %6211 = vmatpush3.msra.mxu1 %v589_v3  ;;  %3301 = vmatmul.mubr.f32.vlgmr.msra.gmra.mxu0 %v1755_v55  ;;  %v640_v55 = vld [vmem:[%s12141_s1 + $0x1298] sm:$0xff]  ;;  %v670_v2 = vld [vmem:[%s12141_s1 + $0x1388] sm:$0xff]  ;;  %v1779_v3 = vrot.slane %v1765_v57, %v7515_v51  ;;  %v739_v49 = vld [vmem:[%s12141_s1 + $0x15b0] sm:$0xff] }
 0x135   :  { %3370 = vmatprep.mubr.f32.mxu1 %v1764_v4  ;;  %6215 = vmatprep.subr.mxu0 %v652_v5  ;;  %v622_v4 = vld [vmem:[%s12141_s1 + $0x1208] sm:$0xff]  ;;  %v31_v57 = vld [vmem:[%s12140_s0 + $0x50] sm:$0xff] }
 0x136   :  { %6250 = vmatprep.subr.mxu1 %v684_v6  ;;  %3371 = vmatmul.mubr.f32.vlgmr.msra.gmra.mxu1 %v1762_v60  ;;  %v639_v60 = vld [vmem:[%s12141_s1 + $0x1290] sm:$0xff]  ;;  %v654_v5 = vld [vmem:[%s12141_s1 + $0x1308] sm:$0xff]  ;;  %v637_v6 = vld [vmem:[%s12141_s1 + $0x1280] sm:$0xff] }
 0x137   :  { %6216 = vmatpush3.msra.mxu0 %v636_v7  ;;  %6251 = vmatpush3.msra.mxu1 %v668_v8  ;;  %v669_v7 = vld [vmem:[%s12141_s1 + $0x1380] sm:$0xff]  ;;  %v1780_v8 = vcombine.high %v1772_v62, %v1772_v62 }
 0x138   :  { %6217 = vmatprep.subr.mxu0 %v651_v9  ;;  %6252 = vmatprep.subr.mxu1 %v683_v10  ;;  %v621_v9 = vld [vmem:[%s12141_s1 + $0x1200] sm:$0xff] }
 0x139   :  { %6218 = vmatpush3.msra.mxu0 %v635_v11  ;;  %6253 = vmatpush3.msra.mxu1 %v667_v12  ;;  %v653_v10 = vld [vmem:[%s12141_s1 + $0x1300] sm:$0xff]  ;;  %v1781_v11 = vcombine.high %v1779_v3, %v1779_v3  ;;  %v716_v12 = vld [vmem:[%s12141_s1 + $0x14f8] sm:$0xff] }
 0x13a   :  { %6219 = vmatprep.subr.mxu0 %v650_v13  ;;  %6254 = vmatprep.subr.mxu1 %v682_v14  ;;  %v748_v13 = vld [vmem:[%s12141_s1 + $0x15f8] sm:$0xff] }
 0x13b   :  { %6220 = vmatpush3.msra.mxu0 %v634_v15  ;;  %6255 = vmatpush3.msra.mxu1 %v666_v16  ;;  %v700_v14 = vld [vmem:[%s12141_s1 + $0x1478] sm:$0xff]  ;;  %v715_v16 = vld [vmem:[%s12141_s1 + $0x14f0] sm:$0xff] }
 0x13c   :  { %6221 = vmatprep.subr.mxu0 %v649_v17  ;;  %6256 = vmatprep.subr.mxu1 %v681_v18  ;;  %v732_v15 = vld [vmem:[%s12141_s1 + $0x1578] sm:$0xff]  ;;  %v747_v17 = vld [vmem:[%s12141_s1 + $0x15f0] sm:$0xff] }
 0x13d   :  { %6222 = vmatpush3.msra.mxu0 %v633_v19  ;;  %6257 = vmatpush3.msra.mxu1 %v665_v20  ;;  %v699_v18 = vld [vmem:[%s12141_s1 + $0x1470] sm:$0xff]  ;;  %v714_v20 = vld [vmem:[%s12141_s1 + $0x14e8] sm:$0xff] }
 0x13e   :  { %6223 = vmatprep.subr.mxu0 %v648_v21  ;;  %6258 = vmatprep.subr.mxu1 %v680_v22  ;;  %v731_v19 = vld [vmem:[%s12141_s1 + $0x1570] sm:$0xff]  ;;  %v746_v21 = vld [vmem:[%s12141_s1 + $0x15e8] sm:$0xff] }
 0x13f   :  { %6224 = vmatpush3.msra.mxu0 %v632_v23  ;;  %6259 = vmatpush3.msra.mxu1 %v664_v24  ;;  %v698_v22 = vld [vmem:[%s12141_s1 + $0x1468] sm:$0xff]  ;;  %v713_v24 = vld [vmem:[%s12141_s1 + $0x14e0] sm:$0xff] }
 0x140   :  { %6225 = vmatprep.subr.mxu0 %v647_v25  ;;  %6260 = vmatprep.subr.mxu1 %v679_v26  ;;  %v730_v23 = vld [vmem:[%s12141_s1 + $0x1568] sm:$0xff]  ;;  %v745_v25 = vld [vmem:[%s12141_s1 + $0x15e0] sm:$0xff] }
 0x141   :  { %6226 = vmatpush3.msra.mxu0 %v631_v27  ;;  %6261 = vmatpush3.msra.mxu1 %v663_v28  ;;  %v697_v26 = vld [vmem:[%s12141_s1 + $0x1460] sm:$0xff]  ;;  %v712_v28 = vld [vmem:[%s12141_s1 + $0x14d8] sm:$0xff] }
 0x142   :  { %6227 = vmatprep.subr.mxu0 %v646_v29  ;;  %6262 = vmatprep.subr.mxu1 %v678_v30  ;;  %v729_v27 = vld [vmem:[%s12141_s1 + $0x1560] sm:$0xff]  ;;  %v744_v29 = vld [vmem:[%s12141_s1 + $0x15d8] sm:$0xff] }
 0x143   :  { %6228 = vmatpush3.msra.mxu0 %v630_v31  ;;  %6263 = vmatpush3.msra.mxu1 %v662_v32  ;;  %v696_v30 = vld [vmem:[%s12141_s1 + $0x1458] sm:$0xff]  ;;  %v711_v32 = vld [vmem:[%s12141_s1 + $0x14d0] sm:$0xff] }
 0x144   :  { %6229 = vmatprep.subr.mxu0 %v645_v33  ;;  %6264 = vmatprep.subr.mxu1 %v677_v34  ;;  %v728_v31 = vld [vmem:[%s12141_s1 + $0x1558] sm:$0xff]  ;;  %v743_v33 = vld [vmem:[%s12141_s1 + $0x15d0] sm:$0xff] }
 0x145   :  { %6230 = vmatpush3.msra.mxu0 %v629_v35  ;;  %6265 = vmatpush3.msra.mxu1 %v661_v36  ;;  %v695_v34 = vld [vmem:[%s12141_s1 + $0x1450] sm:$0xff]  ;;  %v710_v36 = vld [vmem:[%s12141_s1 + $0x14c8] sm:$0xff] }
 0x146   :  { %6231 = vmatprep.subr.mxu0 %v644_v37  ;;  %6266 = vmatprep.subr.mxu1 %v676_v38  ;;  %v727_v35 = vld [vmem:[%s12141_s1 + $0x1550] sm:$0xff]  ;;  %v742_v37 = vld [vmem:[%s12141_s1 + $0x15c8] sm:$0xff] }
 0x147   :  { %6232 = vmatpush3.msra.mxu0 %v628_v39  ;;  %6267 = vmatpush3.msra.mxu1 %v660_v40  ;;  %v694_v38 = vld [vmem:[%s12141_s1 + $0x1448] sm:$0xff]  ;;  %v709_v40 = vld [vmem:[%s12141_s1 + $0x14c0] sm:$0xff] }
 0x148   :  { %6233 = vmatprep.subr.mxu0 %v643_v41  ;;  %6268 = vmatprep.subr.mxu1 %v675_v42  ;;  %v726_v39 = vld [vmem:[%s12141_s1 + $0x1548] sm:$0xff]  ;;  %v741_v41 = vld [vmem:[%s12141_s1 + $0x15c0] sm:$0xff] }
 0x149   :  { %6234 = vmatpush3.msra.mxu0 %v627_v43  ;;  %6269 = vmatpush3.msra.mxu1 %v659_v44  ;;  %v693_v42 = vld [vmem:[%s12141_s1 + $0x1440] sm:$0xff]  ;;  %v708_v44 = vld [vmem:[%s12141_s1 + $0x14b8] sm:$0xff] }
 0x14a   :  { %6235 = vmatprep.subr.mxu0 %v642_v45  ;;  %6270 = vmatprep.subr.mxu1 %v674_v46  ;;  %v725_v43 = vld [vmem:[%s12141_s1 + $0x1540] sm:$0xff]  ;;  %v740_v45 = vld [vmem:[%s12141_s1 + $0x15b8] sm:$0xff] }
 0x14b   :  { %6236 = vmatpush3.msra.mxu0 %v626_v47  ;;  %6271 = vmatpush3.msra.mxu1 %v658_v48  ;;  %v692_v46 = vld [vmem:[%s12141_s1 + $0x1438] sm:$0xff]  ;;  %v707_v48 = vld [vmem:[%s12141_s1 + $0x14b0] sm:$0xff] }
 0x14c   :  { %6237 = vmatprep.subr.mxu0 %v641_v50  ;;  %6272 = vmatprep.subr.mxu1 %v673_v52  ;;  %v724_v47 = vld [vmem:[%s12141_s1 + $0x1538] sm:$0xff]  ;;  %v691_v50 = vld [vmem:[%s12141_s1 + $0x1430] sm:$0xff] }
 0x14d   :  { %6238 = vmatpush3.msra.mxu0 %v625_v53  ;;  %6273 = vmatpush3.msra.mxu1 %v657_v54  ;;  %v723_v52 = vld [vmem:[%s12141_s1 + $0x1530] sm:$0xff]  ;;  %v706_v53 = vld [vmem:[%s12141_s1 + $0x14a8] sm:$0xff] }
 0x14e   :  { %6239 = vmatprep.subr.mxu0 %v640_v55  ;;  %6274 = vmatprep.subr.mxu1 %v672_v56  ;;  %v738_v54 = vld [vmem:[%s12141_s1 + $0x15a8] sm:$0xff] }
 0x14f   :  { %6240 = vmatpush3.msra.mxu0 %v624_v58  ;;  %6275 = vmatpush3.msra.mxu1 %v656_v59  ;;  %v690_v55 = vld [vmem:[%s12141_s1 + $0x1428] sm:$0xff]  ;;  %v705_v58 = vld [vmem:[%s12141_s1 + $0x14a0] sm:$0xff] }
 0x150   :  { %6241 = vmatprep.subr.mxu0 %v639_v60  ;;  %6276 = vmatprep.subr.mxu1 %v671_v61  ;;  %v722_v56 = vld [vmem:[%s12141_s1 + $0x1528] sm:$0xff]  ;;  %v737_v59 = vld [vmem:[%s12141_s1 + $0x15a0] sm:$0xff] }
 0x151   :  { %6242 = vmatpush3.msra.mxu0 %v623_v63  ;;  %6277 = vmatpush3.msra.mxu1 %v655_v0  ;;  %v689_v60 = vld [vmem:[%s12141_s1 + $0x1420] sm:$0xff]  ;;  %v736_v63 = vld [vmem:[%s12141_s1 + $0x1598] sm:$0xff]  ;;  %v1782_v0 = vcombine.high %v31_v57, %v31_v57 }
 0x152   :  { %6243 = vmatprep.subr.mxu0 %v638_v1  ;;  %6278 = vmatprep.subr.mxu1 %v670_v2  ;;  %v721_v61 = vld [vmem:[%s12141_s1 + $0x1520] sm:$0xff]  ;;  %v688_v1 = vld [vmem:[%s12141_s1 + $0x1418] sm:$0xff] }
 0x153   :  { %6244 = vmatpush3.msra.mxu0 %v622_v4  ;;  %6279 = vmatpush3.msra.mxu1 %v654_v5  ;;  %v720_v2 = vld [vmem:[%s12141_s1 + $0x1518] sm:$0xff]  ;;  %v735_v4 = vld [vmem:[%s12141_s1 + $0x1590] sm:$0xff]  ;;  %v1789_v5 = vrot.slane %v31_v57, %v7515_v51 }
 0x154   :  { %6245 = vmatprep.subr.mxu0 %v637_v6  ;;  %6280 = vmatprep.subr.mxu1 %v669_v7  ;;  %v687_v6 = vld [vmem:[%s12141_s1 + $0x1410] sm:$0xff] }
 0x155   :  { %6246 = vmatpush3.msra.mxu0 %v621_v9  ;;  %3440 = vmatprep.mubr.f32.mxu0 %v1780_v8  ;;  %v719_v7 = vld [vmem:[%s12141_s1 + $0x1510] sm:$0xff]  ;;  %v702_v8 = vld [vmem:[%s12141_s1 + $0x1488] sm:$0xff] }
 0x156   :  { %6281 = vmatpush3.msra.mxu1 %v653_v10  ;;  %3441 = vmatmul.mubr.f32.vlgmr.msra.gmra.mxu0 %v1772_v62  ;;  %v704_v62 = vld [vmem:[%s12141_s1 + $0x1498] sm:$0xff]  ;;  %v734_v9 = vld [vmem:[%s12141_s1 + $0x1588] sm:$0xff]  ;;  %v1796_v10 = vrot.slane %v1782_v0, %v7515_v51  ;;  %v803_v57 = vld [vmem:[%s12141_s1 + $0x17b0] sm:$0xff] }
 0x157   :  { %3510 = vmatprep.mubr.f32.mxu1 %v1781_v11  ;;  %6285 = vmatprep.subr.mxu0 %v716_v12  ;;  %v686_v11 = vld [vmem:[%s12141_s1 + $0x1408] sm:$0xff]  ;;  %v32_v0 = vld [vmem:[%s12140_s0 + $0x58] sm:$0xff] }
 0x158   :  { %6320 = vmatprep.subr.mxu1 %v748_v13  ;;  %3511 = vmatmul.mubr.f32.vlgmr.msra.gmra.mxu1 %v1779_v3  ;;  %v703_v3 = vld [vmem:[%s12141_s1 + $0x1490] sm:$0xff]  ;;  %v718_v12 = vld [vmem:[%s12141_s1 + $0x1508] sm:$0xff]  ;;  %v701_v13 = vld [vmem:[%s12141_s1 + $0x1480] sm:$0xff] }
 0x159   :  { %6286 = vmatpush3.msra.mxu0 %v700_v14  ;;  %6321 = vmatpush3.msra.mxu1 %v732_v15  ;;  %v733_v14 = vld [vmem:[%s12141_s1 + $0x1580] sm:$0xff]  ;;  %v1797_v15 = vcombine.high %v1789_v5, %v1789_v5 }
 0x15a   :  { %6287 = vmatprep.subr.mxu0 %v715_v16  ;;  %6322 = vmatprep.subr.mxu1 %v747_v17  ;;  %v685_v16 = vld [vmem:[%s12141_s1 + $0x1400] sm:$0xff] }
 0x15b   :  { %6288 = vmatpush3.msra.mxu0 %v699_v18  ;;  %6323 = vmatpush3.msra.mxu1 %v731_v19  ;;  %v717_v17 = vld [vmem:[%s12141_s1 + $0x1500] sm:$0xff]  ;;  %v1798_v18 = vcombine.high %v1796_v10, %v1796_v10  ;;  %v780_v19 = vld [vmem:[%s12141_s1 + $0x16f8] sm:$0xff] }
 0x15c   :  { %6289 = vmatprep.subr.mxu0 %v714_v20  ;;  %6324 = vmatprep.subr.mxu1 %v746_v21  ;;  %v812_v20 = vld [vmem:[%s12141_s1 + $0x17f8] sm:$0xff] }
 0x15d   :  { %6290 = vmatpush3.msra.mxu0 %v698_v22  ;;  %6325 = vmatpush3.msra.mxu1 %v730_v23  ;;  %v764_v21 = vld [vmem:[%s12141_s1 + $0x1678] sm:$0xff]  ;;  %v779_v23 = vld [vmem:[%s12141_s1 + $0x16f0] sm:$0xff] }
 0x15e   :  { %6291 = vmatprep.subr.mxu0 %v713_v24  ;;  %6326 = vmatprep.subr.mxu1 %v745_v25  ;;  %v796_v22 = vld [vmem:[%s12141_s1 + $0x1778] sm:$0xff]  ;;  %v811_v24 = vld [vmem:[%s12141_s1 + $0x17f0] sm:$0xff] }
 0x15f   :  { %6292 = vmatpush3.msra.mxu0 %v697_v26  ;;  %6327 = vmatpush3.msra.mxu1 %v729_v27  ;;  %v763_v25 = vld [vmem:[%s12141_s1 + $0x1670] sm:$0xff]  ;;  %v778_v27 = vld [vmem:[%s12141_s1 + $0x16e8] sm:$0xff] }
 0x160   :  { %6293 = vmatprep.subr.mxu0 %v712_v28  ;;  %6328 = vmatprep.subr.mxu1 %v744_v29  ;;  %v795_v26 = vld [vmem:[%s12141_s1 + $0x1770] sm:$0xff]  ;;  %v810_v28 = vld [vmem:[%s12141_s1 + $0x17e8] sm:$0xff] }
 0x161   :  { %6294 = vmatpush3.msra.mxu0 %v696_v30  ;;  %6329 = vmatpush3.msra.mxu1 %v728_v31  ;;  %v762_v29 = vld [vmem:[%s12141_s1 + $0x1668] sm:$0xff]  ;;  %v777_v31 = vld [vmem:[%s12141_s1 + $0x16e0] sm:$0xff] }
 0x162   :  { %6295 = vmatprep.subr.mxu0 %v711_v32  ;;  %6330 = vmatprep.subr.mxu1 %v743_v33  ;;  %v794_v30 = vld [vmem:[%s12141_s1 + $0x1768] sm:$0xff]  ;;  %v809_v32 = vld [vmem:[%s12141_s1 + $0x17e0] sm:$0xff] }
 0x163   :  { %6296 = vmatpush3.msra.mxu0 %v695_v34  ;;  %6331 = vmatpush3.msra.mxu1 %v727_v35  ;;  %v761_v33 = vld [vmem:[%s12141_s1 + $0x1660] sm:$0xff]  ;;  %v776_v35 = vld [vmem:[%s12141_s1 + $0x16d8] sm:$0xff] }
 0x164   :  { %6297 = vmatprep.subr.mxu0 %v710_v36  ;;  %6332 = vmatprep.subr.mxu1 %v742_v37  ;;  %v793_v34 = vld [vmem:[%s12141_s1 + $0x1760] sm:$0xff]  ;;  %v808_v36 = vld [vmem:[%s12141_s1 + $0x17d8] sm:$0xff] }
 0x165   :  { %6298 = vmatpush3.msra.mxu0 %v694_v38  ;;  %6333 = vmatpush3.msra.mxu1 %v726_v39  ;;  %v760_v37 = vld [vmem:[%s12141_s1 + $0x1658] sm:$0xff]  ;;  %v775_v39 = vld [vmem:[%s12141_s1 + $0x16d0] sm:$0xff] }
 0x166   :  { %6299 = vmatprep.subr.mxu0 %v709_v40  ;;  %6334 = vmatprep.subr.mxu1 %v741_v41  ;;  %v792_v38 = vld [vmem:[%s12141_s1 + $0x1758] sm:$0xff]  ;;  %v807_v40 = vld [vmem:[%s12141_s1 + $0x17d0] sm:$0xff] }
 0x167   :  { %6300 = vmatpush3.msra.mxu0 %v693_v42  ;;  %6335 = vmatpush3.msra.mxu1 %v725_v43  ;;  %v759_v41 = vld [vmem:[%s12141_s1 + $0x1650] sm:$0xff]  ;;  %v774_v43 = vld [vmem:[%s12141_s1 + $0x16c8] sm:$0xff] }
 0x168   :  { %6301 = vmatprep.subr.mxu0 %v708_v44  ;;  %6336 = vmatprep.subr.mxu1 %v740_v45  ;;  %v791_v42 = vld [vmem:[%s12141_s1 + $0x1750] sm:$0xff]  ;;  %v806_v44 = vld [vmem:[%s12141_s1 + $0x17c8] sm:$0xff] }
 0x169   :  { %6302 = vmatpush3.msra.mxu0 %v692_v46  ;;  %6337 = vmatpush3.msra.mxu1 %v724_v47  ;;  %v758_v45 = vld [vmem:[%s12141_s1 + $0x1648] sm:$0xff]  ;;  %v773_v47 = vld [vmem:[%s12141_s1 + $0x16c0] sm:$0xff] }
 0x16a   :  { %6303 = vmatprep.subr.mxu0 %v707_v48  ;;  %6338 = vmatprep.subr.mxu1 %v739_v49  ;;  %v790_v46 = vld [vmem:[%s12141_s1 + $0x1748] sm:$0xff]  ;;  %v805_v48 = vld [vmem:[%s12141_s1 + $0x17c0] sm:$0xff] }
 0x16b   :  { %6304 = vmatpush3.msra.mxu0 %v691_v50  ;;  %6339 = vmatpush3.msra.mxu1 %v723_v52  ;;  %v757_v49 = vld [vmem:[%s12141_s1 + $0x1640] sm:$0xff]  ;;  %v772_v52 = vld [vmem:[%s12141_s1 + $0x16b8] sm:$0xff] }
 0x16c   :  { %6305 = vmatprep.subr.mxu0 %v706_v53  ;;  %6340 = vmatprep.subr.mxu1 %v738_v54  ;;  %v789_v50 = vld [vmem:[%s12141_s1 + $0x1740] sm:$0xff]  ;;  %v804_v53 = vld [vmem:[%s12141_s1 + $0x17b8] sm:$0xff] }
 0x16d   :  { %6306 = vmatpush3.msra.mxu0 %v690_v55  ;;  %6341 = vmatpush3.msra.mxu1 %v722_v56  ;;  %v756_v54 = vld [vmem:[%s12141_s1 + $0x1638] sm:$0xff]  ;;  %v771_v56 = vld [vmem:[%s12141_s1 + $0x16b0] sm:$0xff] }
 0x16e   :  { %6307 = vmatprep.subr.mxu0 %v705_v58  ;;  %6342 = vmatprep.subr.mxu1 %v737_v59  ;;  %v788_v55 = vld [vmem:[%s12141_s1 + $0x1738] sm:$0xff]  ;;  %v755_v58 = vld [vmem:[%s12141_s1 + $0x1630] sm:$0xff] }
 0x16f   :  { %6308 = vmatpush3.msra.mxu0 %v689_v60  ;;  %6343 = vmatpush3.msra.mxu1 %v721_v61  ;;  %v787_v59 = vld [vmem:[%s12141_s1 + $0x1730] sm:$0xff]  ;;  %v770_v60 = vld [vmem:[%s12141_s1 + $0x16a8] sm:$0xff] }
 0x170   :  { %6309 = vmatprep.subr.mxu0 %v704_v62  ;;  %6344 = vmatprep.subr.mxu1 %v736_v63  ;;  %v802_v61 = vld [vmem:[%s12141_s1 + $0x17a8] sm:$0xff] }
 0x171   :  { %6310 = vmatpush3.msra.mxu0 %v688_v1  ;;  %6345 = vmatpush3.msra.mxu1 %v720_v2  ;;  %v754_v62 = vld [vmem:[%s12141_s1 + $0x1628] sm:$0xff]  ;;  %v769_v1 = vld [vmem:[%s12141_s1 + $0x16a0] sm:$0xff] }
 0x172   :  { %6311 = vmatprep.subr.mxu0 %v703_v3  ;;  %6346 = vmatprep.subr.mxu1 %v735_v4  ;;  %v786_v63 = vld [vmem:[%s12141_s1 + $0x1728] sm:$0xff]  ;;  %v801_v2 = vld [vmem:[%s12141_s1 + $0x17a0] sm:$0xff] }
 0x173   :  { %6312 = vmatpush3.msra.mxu0 %v687_v6  ;;  %6347 = vmatpush3.msra.mxu1 %v719_v7  ;;  %v753_v3 = vld [vmem:[%s12141_s1 + $0x1620] sm:$0xff]  ;;  %v800_v6 = vld [vmem:[%s12141_s1 + $0x1798] sm:$0xff]  ;;  %v1799_v7 = vcombine.high %v32_v0, %v32_v0 }
 0x174   :  { %6313 = vmatprep.subr.mxu0 %v702_v8  ;;  %6348 = vmatprep.subr.mxu1 %v734_v9  ;;  %v785_v4 = vld [vmem:[%s12141_s1 + $0x1720] sm:$0xff]  ;;  %v752_v8 = vld [vmem:[%s12141_s1 + $0x1618] sm:$0xff] }
 0x175   :  { %6314 = vmatpush3.msra.mxu0 %v686_v11  ;;  %6349 = vmatpush3.msra.mxu1 %v718_v12  ;;  %v784_v9 = vld [vmem:[%s12141_s1 + $0x1718] sm:$0xff]  ;;  %v799_v11 = vld [vmem:[%s12141_s1 + $0x1790] sm:$0xff]  ;;  %v1806_v12 = vrot.slane %v32_v0, %v7515_v51 }
 0x176   :  { %6315 = vmatprep.subr.mxu0 %v701_v13  ;;  %6350 = vmatprep.subr.mxu1 %v733_v14  ;;  %v751_v13 = vld [vmem:[%s12141_s1 + $0x1610] sm:$0xff] }
 0x177   :  { %6316 = vmatpush3.msra.mxu0 %v685_v16  ;;  %3580 = vmatprep.mubr.f32.mxu0 %v1797_v15  ;;  %v783_v14 = vld [vmem:[%s12141_s1 + $0x1710] sm:$0xff]  ;;  %v766_v15 = vld [vmem:[%s12141_s1 + $0x1688] sm:$0xff] }
 0x178   :  { %6351 = vmatpush3.msra.mxu1 %v717_v17  ;;  %3581 = vmatmul.mubr.f32.vlgmr.msra.gmra.mxu0 %v1789_v5  ;;  %v768_v5 = vld [vmem:[%s12141_s1 + $0x1698] sm:$0xff]  ;;  %v798_v16 = vld [vmem:[%s12141_s1 + $0x1788] sm:$0xff]  ;;  %v1813_v17 = vrot.slane %v1799_v7, %v7515_v51  ;;  %v867_v0 = vld [vmem:[%s12141_s1 + $0x19b0] sm:$0xff] }
 0x179   :  { %3650 = vmatprep.mubr.f32.mxu1 %v1798_v18  ;;  %6355 = vmatprep.subr.mxu0 %v780_v19  ;;  %v750_v18 = vld [vmem:[%s12141_s1 + $0x1608] sm:$0xff]  ;;  %v33_v7 = vld [vmem:[%s12140_s0 + $0x60] sm:$0xff] }
 0x17a   :  { %6390 = vmatprep.subr.mxu1 %v812_v20  ;;  %3651 = vmatmul.mubr.f32.vlgmr.msra.gmra.mxu1 %v1796_v10  ;;  %v767_v10 = vld [vmem:[%s12141_s1 + $0x1690] sm:$0xff]  ;;  %v782_v19 = vld [vmem:[%s12141_s1 + $0x1708] sm:$0xff]  ;;  %v765_v20 = vld [vmem:[%s12141_s1 + $0x1680] sm:$0xff] }
 0x17b   :  { %6356 = vmatpush3.msra.mxu0 %v764_v21  ;;  %6391 = vmatpush3.msra.mxu1 %v796_v22  ;;  %v797_v21 = vld [vmem:[%s12141_s1 + $0x1780] sm:$0xff]  ;;  %v1814_v22 = vcombine.high %v1806_v12, %v1806_v12 }
 0x17c   :  { %6357 = vmatprep.subr.mxu0 %v779_v23  ;;  %6392 = vmatprep.subr.mxu1 %v811_v24  ;;  %v749_v23 = vld [vmem:[%s12141_s1 + $0x1600] sm:$0xff] }
 0x17d   :  { %6358 = vmatpush3.msra.mxu0 %v763_v25  ;;  %6393 = vmatpush3.msra.mxu1 %v795_v26  ;;  %v781_v24 = vld [vmem:[%s12141_s1 + $0x1700] sm:$0xff]  ;;  %v1815_v25 = vcombine.high %v1813_v17, %v1813_v17  ;;  %v844_v26 = vld [vmem:[%s12141_s1 + $0x18f8] sm:$0xff] }
 0x17e   :  { %6359 = vmatprep.subr.mxu0 %v778_v27  ;;  %6394 = vmatprep.subr.mxu1 %v810_v28  ;;  %v876_v27 = vld [vmem:[%s12141_s1 + $0x19f8] sm:$0xff] }
 0x17f   :  { %6360 = vmatpush3.msra.mxu0 %v762_v29  ;;  %6395 = vmatpush3.msra.mxu1 %v794_v30  ;;  %v828_v28 = vld [vmem:[%s12141_s1 + $0x1878] sm:$0xff]  ;;  %v843_v30 = vld [vmem:[%s12141_s1 + $0x18f0] sm:$0xff] }
 0x180   :  { %6361 = vmatprep.subr.mxu0 %v777_v31  ;;  %6396 = vmatprep.subr.mxu1 %v809_v32  ;;  %v860_v29 = vld [vmem:[%s12141_s1 + $0x1978] sm:$0xff]  ;;  %v875_v31 = vld [vmem:[%s12141_s1 + $0x19f0] sm:$0xff] }
 0x181   :  { %6362 = vmatpush3.msra.mxu0 %v761_v33  ;;  %6397 = vmatpush3.msra.mxu1 %v793_v34  ;;  %v827_v32 = vld [vmem:[%s12141_s1 + $0x1870] sm:$0xff]  ;;  %v842_v34 = vld [vmem:[%s12141_s1 + $0x18e8] sm:$0xff] }
 0x182   :  { %6363 = vmatprep.subr.mxu0 %v776_v35  ;;  %6398 = vmatprep.subr.mxu1 %v808_v36  ;;  %v859_v33 = vld [vmem:[%s12141_s1 + $0x1970] sm:$0xff]  ;;  %v874_v35 = vld [vmem:[%s12141_s1 + $0x19e8] sm:$0xff] }
 0x183   :  { %6364 = vmatpush3.msra.mxu0 %v760_v37  ;;  %6399 = vmatpush3.msra.mxu1 %v792_v38  ;;  %v826_v36 = vld [vmem:[%s12141_s1 + $0x1868] sm:$0xff]  ;;  %v841_v38 = vld [vmem:[%s12141_s1 + $0x18e0] sm:$0xff] }
 0x184   :  { %6365 = vmatprep.subr.mxu0 %v775_v39  ;;  %6400 = vmatprep.subr.mxu1 %v807_v40  ;;  %v858_v37 = vld [vmem:[%s12141_s1 + $0x1968] sm:$0xff]  ;;  %v873_v39 = vld [vmem:[%s12141_s1 + $0x19e0] sm:$0xff] }
 0x185   :  { %6366 = vmatpush3.msra.mxu0 %v759_v41  ;;  %6401 = vmatpush3.msra.mxu1 %v791_v42  ;;  %v825_v40 = vld [vmem:[%s12141_s1 + $0x1860] sm:$0xff]  ;;  %v840_v42 = vld [vmem:[%s12141_s1 + $0x18d8] sm:$0xff] }
 0x186   :  { %6367 = vmatprep.subr.mxu0 %v774_v43  ;;  %6402 = vmatprep.subr.mxu1 %v806_v44  ;;  %v857_v41 = vld [vmem:[%s12141_s1 + $0x1960] sm:$0xff]  ;;  %v872_v43 = vld [vmem:[%s12141_s1 + $0x19d8] sm:$0xff] }
 0x187   :  { %6368 = vmatpush3.msra.mxu0 %v758_v45  ;;  %6403 = vmatpush3.msra.mxu1 %v790_v46  ;;  %v824_v44 = vld [vmem:[%s12141_s1 + $0x1858] sm:$0xff]  ;;  %v839_v46 = vld [vmem:[%s12141_s1 + $0x18d0] sm:$0xff] }
 0x188   :  { %6369 = vmatprep.subr.mxu0 %v773_v47  ;;  %6404 = vmatprep.subr.mxu1 %v805_v48  ;;  %v856_v45 = vld [vmem:[%s12141_s1 + $0x1958] sm:$0xff]  ;;  %v871_v47 = vld [vmem:[%s12141_s1 + $0x19d0] sm:$0xff] }
 0x189   :  { %6370 = vmatpush3.msra.mxu0 %v757_v49  ;;  %6405 = vmatpush3.msra.mxu1 %v789_v50  ;;  %v823_v48 = vld [vmem:[%s12141_s1 + $0x1850] sm:$0xff]  ;;  %v838_v50 = vld [vmem:[%s12141_s1 + $0x18c8] sm:$0xff] }
 0x18a   :  { %6371 = vmatprep.subr.mxu0 %v772_v52  ;;  %6406 = vmatprep.subr.mxu1 %v804_v53  ;;  %v855_v49 = vld [vmem:[%s12141_s1 + $0x1950] sm:$0xff]  ;;  %v870_v52 = vld [vmem:[%s12141_s1 + $0x19c8] sm:$0xff] }
 0x18b   :  { %6372 = vmatpush3.msra.mxu0 %v756_v54  ;;  %6407 = vmatpush3.msra.mxu1 %v788_v55  ;;  %v822_v53 = vld [vmem:[%s12141_s1 + $0x1848] sm:$0xff]  ;;  %v837_v55 = vld [vmem:[%s12141_s1 + $0x18c0] sm:$0xff] }
 0x18c   :  { %6373 = vmatprep.subr.mxu0 %v771_v56  ;;  %6408 = vmatprep.subr.mxu1 %v803_v57  ;;  %v854_v54 = vld [vmem:[%s12141_s1 + $0x1948] sm:$0xff]  ;;  %v869_v56 = vld [vmem:[%s12141_s1 + $0x19c0] sm:$0xff] }
 0x18d   :  { %6374 = vmatpush3.msra.mxu0 %v755_v58  ;;  %6409 = vmatpush3.msra.mxu1 %v787_v59  ;;  %v821_v57 = vld [vmem:[%s12141_s1 + $0x1840] sm:$0xff]  ;;  %v836_v59 = vld [vmem:[%s12141_s1 + $0x18b8] sm:$0xff] }
 0x18e   :  { %6375 = vmatprep.subr.mxu0 %v770_v60  ;;  %6410 = vmatprep.subr.mxu1 %v802_v61  ;;  %v853_v58 = vld [vmem:[%s12141_s1 + $0x1940] sm:$0xff]  ;;  %v868_v60 = vld [vmem:[%s12141_s1 + $0x19b8] sm:$0xff] }
 0x18f   :  { %6376 = vmatpush3.msra.mxu0 %v754_v62  ;;  %6411 = vmatpush3.msra.mxu1 %v786_v63  ;;  %v820_v61 = vld [vmem:[%s12141_s1 + $0x1838] sm:$0xff]  ;;  %v835_v63 = vld [vmem:[%s12141_s1 + $0x18b0] sm:$0xff] }
 0x190   :  { %6377 = vmatprep.subr.mxu0 %v769_v1  ;;  %6412 = vmatprep.subr.mxu1 %v801_v2  ;;  %v852_v62 = vld [vmem:[%s12141_s1 + $0x1938] sm:$0xff]  ;;  %v819_v1 = vld [vmem:[%s12141_s1 + $0x1830] sm:$0xff] }
 0x191   :  { %6378 = vmatpush3.msra.mxu0 %v753_v3  ;;  %6413 = vmatpush3.msra.mxu1 %v785_v4  ;;  %v851_v2 = vld [vmem:[%s12141_s1 + $0x1930] sm:$0xff]  ;;  %v834_v3 = vld [vmem:[%s12141_s1 + $0x18a8] sm:$0xff] }
 0x192   :  { %6379 = vmatprep.subr.mxu0 %v768_v5  ;;  %6414 = vmatprep.subr.mxu1 %v800_v6  ;;  %v866_v4 = vld [vmem:[%s12141_s1 + $0x19a8] sm:$0xff] }
 0x193   :  { %6380 = vmatpush3.msra.mxu0 %v752_v8  ;;  %6415 = vmatpush3.msra.mxu1 %v784_v9  ;;  %v818_v5 = vld [vmem:[%s12141_s1 + $0x1828] sm:$0xff]  ;;  %v833_v8 = vld [vmem:[%s12141_s1 + $0x18a0] sm:$0xff] }
 0x194   :  { %6381 = vmatprep.subr.mxu0 %v767_v10  ;;  %6416 = vmatprep.subr.mxu1 %v799_v11  ;;  %v850_v6 = vld [vmem:[%s12141_s1 + $0x1928] sm:$0xff]  ;;  %v865_v9 = vld [vmem:[%s12141_s1 + $0x19a0] sm:$0xff] }
 0x195   :  { %6382 = vmatpush3.msra.mxu0 %v751_v13  ;;  %6417 = vmatpush3.msra.mxu1 %v783_v14  ;;  %v817_v10 = vld [vmem:[%s12141_s1 + $0x1820] sm:$0xff]  ;;  %v864_v13 = vld [vmem:[%s12141_s1 + $0x1998] sm:$0xff]  ;;  %v1816_v14 = vcombine.high %v33_v7, %v33_v7 }
 0x196   :  { %6383 = vmatprep.subr.mxu0 %v766_v15  ;;  %6418 = vmatprep.subr.mxu1 %v798_v16  ;;  %v849_v11 = vld [vmem:[%s12141_s1 + $0x1920] sm:$0xff]  ;;  %v816_v15 = vld [vmem:[%s12141_s1 + $0x1818] sm:$0xff] }
 0x197   :  { %6384 = vmatpush3.msra.mxu0 %v750_v18  ;;  %6419 = vmatpush3.msra.mxu1 %v782_v19  ;;  %v848_v16 = vld [vmem:[%s12141_s1 + $0x1918] sm:$0xff]  ;;  %v863_v18 = vld [vmem:[%s12141_s1 + $0x1990] sm:$0xff]  ;;  %v1823_v19 = vrot.slane %v33_v7, %v7515_v51 }
 0x198   :  { %6385 = vmatprep.subr.mxu0 %v765_v20  ;;  %6420 = vmatprep.subr.mxu1 %v797_v21  ;;  %v815_v20 = vld [vmem:[%s12141_s1 + $0x1810] sm:$0xff] }
 0x199   :  { %6386 = vmatpush3.msra.mxu0 %v749_v23  ;;  %3720 = vmatprep.mubr.f32.mxu0 %v1814_v22  ;;  %v847_v21 = vld [vmem:[%s12141_s1 + $0x1910] sm:$0xff]  ;;  %v830_v22 = vld [vmem:[%s12141_s1 + $0x1888] sm:$0xff] }
 0x19a   :  { %6421 = vmatpush3.msra.mxu1 %v781_v24  ;;  %3721 = vmatmul.mubr.f32.vlgmr.msra.gmra.mxu0 %v1806_v12  ;;  %v832_v12 = vld [vmem:[%s12141_s1 + $0x1898] sm:$0xff]  ;;  %v862_v23 = vld [vmem:[%s12141_s1 + $0x1988] sm:$0xff]  ;;  %v1830_v24 = vrot.slane %v1816_v14, %v7515_v51  ;;  %v931_v7 = vld [vmem:[%s12141_s1 + $0x1bb0] sm:$0xff] }
 0x19b   :  { %3790 = vmatprep.mubr.f32.mxu1 %v1815_v25  ;;  %6425 = vmatprep.subr.mxu0 %v844_v26  ;;  %v814_v25 = vld [vmem:[%s12141_s1 + $0x1808] sm:$0xff] }
 0x19c   :  { %6460 = vmatprep.subr.mxu1 %v876_v27  ;;  %3791 = vmatmul.mubr.f32.vlgmr.msra.gmra.mxu1 %v1813_v17  ;;  %v831_v17 = vld [vmem:[%s12141_s1 + $0x1890] sm:$0xff]  ;;  %v846_v26 = vld [vmem:[%s12141_s1 + $0x1908] sm:$0xff]  ;;  %v829_v27 = vld [vmem:[%s12141_s1 + $0x1880] sm:$0xff] }
 0x19d   :  { %6426 = vmatpush3.msra.mxu0 %v828_v28  ;;  %6461 = vmatpush3.msra.mxu1 %v860_v29  ;;  %v861_v28 = vld [vmem:[%s12141_s1 + $0x1980] sm:$0xff]  ;;  %v1831_v29 = vcombine.high %v1823_v19, %v1823_v19  ;;  %v34_v14 = vld [vmem:[%s12140_s0 + $0x68] sm:$0xff] }
 0x19e   :  { %6427 = vmatprep.subr.mxu0 %v843_v30  ;;  %6462 = vmatprep.subr.mxu1 %v875_v31  ;;  %v813_v30 = vld [vmem:[%s12141_s1 + $0x1800] sm:$0xff] }
 0x19f   :  { %6428 = vmatpush3.msra.mxu0 %v827_v32  ;;  %6463 = vmatpush3.msra.mxu1 %v859_v33  ;;  %v845_v31 = vld [vmem:[%s12141_s1 + $0x1900] sm:$0xff]  ;;  %v1832_v32 = vcombine.high %v1830_v24, %v1830_v24  ;;  %v908_v33 = vld [vmem:[%s12141_s1 + $0x1af8] sm:$0xff] }
 0x1a0   :  { %6429 = vmatprep.subr.mxu0 %v842_v34  ;;  %6464 = vmatprep.subr.mxu1 %v874_v35  ;;  %v940_v34 = vld [vmem:[%s12141_s1 + $0x1bf8] sm:$0xff] }
 0x1a1   :  { %6430 = vmatpush3.msra.mxu0 %v826_v36  ;;  %6465 = vmatpush3.msra.mxu1 %v858_v37  ;;  %v892_v35 = vld [vmem:[%s12141_s1 + $0x1a78] sm:$0xff]  ;;  %v907_v37 = vld [vmem:[%s12141_s1 + $0x1af0] sm:$0xff] }
 0x1a2   :  { %6431 = vmatprep.subr.mxu0 %v841_v38  ;;  %6466 = vmatprep.subr.mxu1 %v873_v39  ;;  %v924_v36 = vld [vmem:[%s12141_s1 + $0x1b78] sm:$0xff]  ;;  %v939_v38 = vld [vmem:[%s12141_s1 + $0x1bf0] sm:$0xff] }
 0x1a3   :  { %6432 = vmatpush3.msra.mxu0 %v825_v40  ;;  %6467 = vmatpush3.msra.mxu1 %v857_v41  ;;  %v891_v39 = vld [vmem:[%s12141_s1 + $0x1a70] sm:$0xff]  ;;  %v906_v41 = vld [vmem:[%s12141_s1 + $0x1ae8] sm:$0xff] }
 0x1a4   :  { %6433 = vmatprep.subr.mxu0 %v840_v42  ;;  %6468 = vmatprep.subr.mxu1 %v872_v43  ;;  %v923_v40 = vld [vmem:[%s12141_s1 + $0x1b70] sm:$0xff]  ;;  %v938_v42 = vld [vmem:[%s12141_s1 + $0x1be8] sm:$0xff] }
 0x1a5   :  { %6434 = vmatpush3.msra.mxu0 %v824_v44  ;;  %6469 = vmatpush3.msra.mxu1 %v856_v45  ;;  %v890_v43 = vld [vmem:[%s12141_s1 + $0x1a68] sm:$0xff]  ;;  %v905_v45 = vld [vmem:[%s12141_s1 + $0x1ae0] sm:$0xff] }
 0x1a6   :  { %6435 = vmatprep.subr.mxu0 %v839_v46  ;;  %6470 = vmatprep.subr.mxu1 %v871_v47  ;;  %v922_v44 = vld [vmem:[%s12141_s1 + $0x1b68] sm:$0xff]  ;;  %v937_v46 = vld [vmem:[%s12141_s1 + $0x1be0] sm:$0xff] }
 0x1a7   :  { %6436 = vmatpush3.msra.mxu0 %v823_v48  ;;  %6471 = vmatpush3.msra.mxu1 %v855_v49  ;;  %v889_v47 = vld [vmem:[%s12141_s1 + $0x1a60] sm:$0xff]  ;;  %v904_v49 = vld [vmem:[%s12141_s1 + $0x1ad8] sm:$0xff] }
 0x1a8   :  { %6437 = vmatprep.subr.mxu0 %v838_v50  ;;  %6472 = vmatprep.subr.mxu1 %v870_v52  ;;  %v921_v48 = vld [vmem:[%s12141_s1 + $0x1b60] sm:$0xff]  ;;  %v936_v50 = vld [vmem:[%s12141_s1 + $0x1bd8] sm:$0xff] }
 0x1a9   :  { %6438 = vmatpush3.msra.mxu0 %v822_v53  ;;  %6473 = vmatpush3.msra.mxu1 %v854_v54  ;;  %v888_v52 = vld [vmem:[%s12141_s1 + $0x1a58] sm:$0xff]  ;;  %v903_v54 = vld [vmem:[%s12141_s1 + $0x1ad0] sm:$0xff] }
 0x1aa   :  { %6439 = vmatprep.subr.mxu0 %v837_v55  ;;  %6474 = vmatprep.subr.mxu1 %v869_v56  ;;  %v920_v53 = vld [vmem:[%s12141_s1 + $0x1b58] sm:$0xff]  ;;  %v935_v55 = vld [vmem:[%s12141_s1 + $0x1bd0] sm:$0xff] }
 0x1ab   :  { %6440 = vmatpush3.msra.mxu0 %v821_v57  ;;  %6475 = vmatpush3.msra.mxu1 %v853_v58  ;;  %v887_v56 = vld [vmem:[%s12141_s1 + $0x1a50] sm:$0xff]  ;;  %v902_v58 = vld [vmem:[%s12141_s1 + $0x1ac8] sm:$0xff] }
 0x1ac   :  { %6441 = vmatprep.subr.mxu0 %v836_v59  ;;  %6476 = vmatprep.subr.mxu1 %v868_v60  ;;  %v919_v57 = vld [vmem:[%s12141_s1 + $0x1b50] sm:$0xff]  ;;  %v934_v59 = vld [vmem:[%s12141_s1 + $0x1bc8] sm:$0xff] }
 0x1ad   :  { %6442 = vmatpush3.msra.mxu0 %v820_v61  ;;  %6477 = vmatpush3.msra.mxu1 %v852_v62  ;;  %v886_v60 = vld [vmem:[%s12141_s1 + $0x1a48] sm:$0xff]  ;;  %v901_v62 = vld [vmem:[%s12141_s1 + $0x1ac0] sm:$0xff] }
 0x1ae   :  { %6443 = vmatprep.subr.mxu0 %v835_v63  ;;  %6478 = vmatprep.subr.mxu1 %v867_v0  ;;  %v918_v61 = vld [vmem:[%s12141_s1 + $0x1b48] sm:$0xff]  ;;  %v933_v63 = vld [vmem:[%s12141_s1 + $0x1bc0] sm:$0xff] }
 0x1af   :  { %6444 = vmatpush3.msra.mxu0 %v819_v1  ;;  %6479 = vmatpush3.msra.mxu1 %v851_v2  ;;  %v885_v0 = vld [vmem:[%s12141_s1 + $0x1a40] sm:$0xff]  ;;  %v900_v2 = vld [vmem:[%s12141_s1 + $0x1ab8] sm:$0xff] }
 0x1b0   :  { %6445 = vmatprep.subr.mxu0 %v834_v3  ;;  %6480 = vmatprep.subr.mxu1 %v866_v4  ;;  %v917_v1 = vld [vmem:[%s12141_s1 + $0x1b40] sm:$0xff]  ;;  %v932_v3 = vld [vmem:[%s12141_s1 + $0x1bb8] sm:$0xff] }
 0x1b1   :  { %6446 = vmatpush3.msra.mxu0 %v818_v5  ;;  %6481 = vmatpush3.msra.mxu1 %v850_v6  ;;  %v884_v4 = vld [vmem:[%s12141_s1 + $0x1a38] sm:$0xff]  ;;  %v899_v6 = vld [vmem:[%s12141_s1 + $0x1ab0] sm:$0xff] }
 0x1b2   :  { %6447 = vmatprep.subr.mxu0 %v833_v8  ;;  %6482 = vmatprep.subr.mxu1 %v865_v9  ;;  %v916_v5 = vld [vmem:[%s12141_s1 + $0x1b38] sm:$0xff]  ;;  %v883_v8 = vld [vmem:[%s12141_s1 + $0x1a30] sm:$0xff] }
 0x1b3   :  { %6448 = vmatpush3.msra.mxu0 %v817_v10  ;;  %6483 = vmatpush3.msra.mxu1 %v849_v11  ;;  %v915_v9 = vld [vmem:[%s12141_s1 + $0x1b30] sm:$0xff]  ;;  %v898_v10 = vld [vmem:[%s12141_s1 + $0x1aa8] sm:$0xff] }
 0x1b4   :  { %6449 = vmatprep.subr.mxu0 %v832_v12  ;;  %6484 = vmatprep.subr.mxu1 %v864_v13  ;;  %v930_v11 = vld [vmem:[%s12141_s1 + $0x1ba8] sm:$0xff] }
 0x1b5   :  { %6450 = vmatpush3.msra.mxu0 %v816_v15  ;;  %6485 = vmatpush3.msra.mxu1 %v848_v16  ;;  %v882_v12 = vld [vmem:[%s12141_s1 + $0x1a28] sm:$0xff]  ;;  %v897_v15 = vld [vmem:[%s12141_s1 + $0x1aa0] sm:$0xff] }
 0x1b6   :  { %6451 = vmatprep.subr.mxu0 %v831_v17  ;;  %6486 = vmatprep.subr.mxu1 %v863_v18  ;;  %v914_v13 = vld [vmem:[%s12141_s1 + $0x1b28] sm:$0xff]  ;;  %v929_v16 = vld [vmem:[%s12141_s1 + $0x1ba0] sm:$0xff] }
 0x1b7   :  { %6452 = vmatpush3.msra.mxu0 %v815_v20  ;;  %6487 = vmatpush3.msra.mxu1 %v847_v21  ;;  %v881_v17 = vld [vmem:[%s12141_s1 + $0x1a20] sm:$0xff]  ;;  %v928_v20 = vld [vmem:[%s12141_s1 + $0x1b98] sm:$0xff]  ;;  %v1833_v21 = vcombine.high %v34_v14, %v34_v14 }
 0x1b8   :  { %6453 = vmatprep.subr.mxu0 %v830_v22  ;;  %6488 = vmatprep.subr.mxu1 %v862_v23  ;;  %v913_v18 = vld [vmem:[%s12141_s1 + $0x1b20] sm:$0xff]  ;;  %v880_v22 = vld [vmem:[%s12141_s1 + $0x1a18] sm:$0xff] }
 0x1b9   :  { %6454 = vmatpush3.msra.mxu0 %v814_v25  ;;  %6489 = vmatpush3.msra.mxu1 %v846_v26  ;;  %v912_v23 = vld [vmem:[%s12141_s1 + $0x1b18] sm:$0xff]  ;;  %v927_v25 = vld [vmem:[%s12141_s1 + $0x1b90] sm:$0xff]  ;;  %v1840_v26 = vrot.slane %v34_v14, %v7515_v51 }
 0x1ba   :  { %6455 = vmatprep.subr.mxu0 %v829_v27  ;;  %6490 = vmatprep.subr.mxu1 %v861_v28  ;;  %v879_v27 = vld [vmem:[%s12141_s1 + $0x1a10] sm:$0xff] }
 0x1bb   :  { %6456 = vmatpush3.msra.mxu0 %v813_v30  ;;  %3860 = vmatprep.mubr.f32.mxu0 %v1831_v29  ;;  %v911_v28 = vld [vmem:[%s12141_s1 + $0x1b10] sm:$0xff]  ;;  %v894_v29 = vld [vmem:[%s12141_s1 + $0x1a88] sm:$0xff] }
 0x1bc   :  { %6491 = vmatpush3.msra.mxu1 %v845_v31  ;;  %3861 = vmatmul.mubr.f32.vlgmr.msra.gmra.mxu0 %v1823_v19  ;;  %v896_v19 = vld [vmem:[%s12141_s1 + $0x1a98] sm:$0xff]  ;;  %v926_v30 = vld [vmem:[%s12141_s1 + $0x1b88] sm:$0xff]  ;;  %v1847_v31 = vrot.slane %v1833_v21, %v7515_v51  ;;  %v995_v14 = vld [vmem:[%s12141_s1 + $0x1db0] sm:$0xff] }
 0x1bd   :  { %3930 = vmatprep.mubr.f32.mxu1 %v1832_v32  ;;  %6495 = vmatprep.subr.mxu0 %v908_v33  ;;  %v878_v32 = vld [vmem:[%s12141_s1 + $0x1a08] sm:$0xff]  ;;  %v35_v21 = vld [vmem:[%s12140_s0 + $0x70] sm:$0xff] }
 0x1be   :  { %6530 = vmatprep.subr.mxu1 %v940_v34  ;;  %3931 = vmatmul.mubr.f32.vlgmr.msra.gmra.mxu1 %v1830_v24  ;;  %v895_v24 = vld [vmem:[%s12141_s1 + $0x1a90] sm:$0xff]  ;;  %v910_v33 = vld [vmem:[%s12141_s1 + $0x1b08] sm:$0xff]  ;;  %v893_v34 = vld [vmem:[%s12141_s1 + $0x1a80] sm:$0xff] }
 0x1bf   :  { %6496 = vmatpush3.msra.mxu0 %v892_v35  ;;  %6531 = vmatpush3.msra.mxu1 %v924_v36  ;;  %v925_v35 = vld [vmem:[%s12141_s1 + $0x1b80] sm:$0xff]  ;;  %v1848_v36 = vcombine.high %v1840_v26, %v1840_v26 }
 0x1c0   :  { %6497 = vmatprep.subr.mxu0 %v907_v37  ;;  %6532 = vmatprep.subr.mxu1 %v939_v38  ;;  %v877_v37 = vld [vmem:[%s12141_s1 + $0x1a00] sm:$0xff] }
 0x1c1   :  { %6498 = vmatpush3.msra.mxu0 %v891_v39  ;;  %6533 = vmatpush3.msra.mxu1 %v923_v40  ;;  %v909_v38 = vld [vmem:[%s12141_s1 + $0x1b00] sm:$0xff]  ;;  %v1849_v39 = vcombine.high %v1847_v31, %v1847_v31  ;;  %v972_v40 = vld [vmem:[%s12141_s1 + $0x1cf8] sm:$0xff] }
 0x1c2   :  { %6499 = vmatprep.subr.mxu0 %v906_v41  ;;  %6534 = vmatprep.subr.mxu1 %v938_v42  ;;  %v1004_v41 = vld [vmem:[%s12141_s1 + $0x1df8] sm:$0xff] }
 0x1c3   :  { %6500 = vmatpush3.msra.mxu0 %v890_v43  ;;  %6535 = vmatpush3.msra.mxu1 %v922_v44  ;;  %v956_v42 = vld [vmem:[%s12141_s1 + $0x1c78] sm:$0xff]  ;;  %v971_v44 = vld [vmem:[%s12141_s1 + $0x1cf0] sm:$0xff] }
 0x1c4   :  { %6501 = vmatprep.subr.mxu0 %v905_v45  ;;  %6536 = vmatprep.subr.mxu1 %v937_v46  ;;  %v988_v43 = vld [vmem:[%s12141_s1 + $0x1d78] sm:$0xff]  ;;  %v1003_v45 = vld [vmem:[%s12141_s1 + $0x1df0] sm:$0xff] }
 0x1c5   :  { %6502 = vmatpush3.msra.mxu0 %v889_v47  ;;  %6537 = vmatpush3.msra.mxu1 %v921_v48  ;;  %v955_v46 = vld [vmem:[%s12141_s1 + $0x1c70] sm:$0xff]  ;;  %v970_v48 = vld [vmem:[%s12141_s1 + $0x1ce8] sm:$0xff] }
 0x1c6   :  { %6503 = vmatprep.subr.mxu0 %v904_v49  ;;  %6538 = vmatprep.subr.mxu1 %v936_v50  ;;  %v987_v47 = vld [vmem:[%s12141_s1 + $0x1d70] sm:$0xff]  ;;  %v1002_v49 = vld [vmem:[%s12141_s1 + $0x1de8] sm:$0xff] }
 0x1c7   :  { %6504 = vmatpush3.msra.mxu0 %v888_v52  ;;  %6539 = vmatpush3.msra.mxu1 %v920_v53  ;;  %v954_v50 = vld [vmem:[%s12141_s1 + $0x1c68] sm:$0xff]  ;;  %v969_v53 = vld [vmem:[%s12141_s1 + $0x1ce0] sm:$0xff] }
 0x1c8   :  { %6505 = vmatprep.subr.mxu0 %v903_v54  ;;  %6540 = vmatprep.subr.mxu1 %v935_v55  ;;  %v986_v52 = vld [vmem:[%s12141_s1 + $0x1d68] sm:$0xff]  ;;  %v1001_v54 = vld [vmem:[%s12141_s1 + $0x1de0] sm:$0xff] }
 0x1c9   :  { %6506 = vmatpush3.msra.mxu0 %v887_v56  ;;  %6541 = vmatpush3.msra.mxu1 %v919_v57  ;;  %v953_v55 = vld [vmem:[%s12141_s1 + $0x1c60] sm:$0xff]  ;;  %v968_v57 = vld [vmem:[%s12141_s1 + $0x1cd8] sm:$0xff] }
 0x1ca   :  { %6507 = vmatprep.subr.mxu0 %v902_v58  ;;  %6542 = vmatprep.subr.mxu1 %v934_v59  ;;  %v985_v56 = vld [vmem:[%s12141_s1 + $0x1d60] sm:$0xff]  ;;  %v1000_v58 = vld [vmem:[%s12141_s1 + $0x1dd8] sm:$0xff] }
 0x1cb   :  { %6508 = vmatpush3.msra.mxu0 %v886_v60  ;;  %6543 = vmatpush3.msra.mxu1 %v918_v61  ;;  %v952_v59 = vld [vmem:[%s12141_s1 + $0x1c58] sm:$0xff]  ;;  %v967_v61 = vld [vmem:[%s12141_s1 + $0x1cd0] sm:$0xff] }
 0x1cc   :  { %6509 = vmatprep.subr.mxu0 %v901_v62  ;;  %6544 = vmatprep.subr.mxu1 %v933_v63  ;;  %v984_v60 = vld [vmem:[%s12141_s1 + $0x1d58] sm:$0xff]  ;;  %v999_v62 = vld [vmem:[%s12141_s1 + $0x1dd0] sm:$0xff] }
 0x1cd   :  { %6510 = vmatpush3.msra.mxu0 %v885_v0  ;;  %6545 = vmatpush3.msra.mxu1 %v917_v1  ;;  %v951_v63 = vld [vmem:[%s12141_s1 + $0x1c50] sm:$0xff]  ;;  %v966_v1 = vld [vmem:[%s12141_s1 + $0x1cc8] sm:$0xff] }
 0x1ce   :  { %6511 = vmatprep.subr.mxu0 %v900_v2  ;;  %6546 = vmatprep.subr.mxu1 %v932_v3  ;;  %v983_v0 = vld [vmem:[%s12141_s1 + $0x1d50] sm:$0xff]  ;;  %v998_v2 = vld [vmem:[%s12141_s1 + $0x1dc8] sm:$0xff] }
 0x1cf   :  { %6512 = vmatpush3.msra.mxu0 %v884_v4  ;;  %6547 = vmatpush3.msra.mxu1 %v916_v5  ;;  %v950_v3 = vld [vmem:[%s12141_s1 + $0x1c48] sm:$0xff]  ;;  %v965_v5 = vld [vmem:[%s12141_s1 + $0x1cc0] sm:$0xff] }
 0x1d0   :  { %6513 = vmatprep.subr.mxu0 %v899_v6  ;;  %6548 = vmatprep.subr.mxu1 %v931_v7  ;;  %v982_v4 = vld [vmem:[%s12141_s1 + $0x1d48] sm:$0xff]  ;;  %v997_v6 = vld [vmem:[%s12141_s1 + $0x1dc0] sm:$0xff] }
 0x1d1   :  { %6514 = vmatpush3.msra.mxu0 %v883_v8  ;;  %6549 = vmatpush3.msra.mxu1 %v915_v9  ;;  %v949_v7 = vld [vmem:[%s12141_s1 + $0x1c40] sm:$0xff]  ;;  %v964_v9 = vld [vmem:[%s12141_s1 + $0x1cb8] sm:$0xff] }
 0x1d2   :  { %6515 = vmatprep.subr.mxu0 %v898_v10  ;;  %6550 = vmatprep.subr.mxu1 %v930_v11  ;;  %v981_v8 = vld [vmem:[%s12141_s1 + $0x1d40] sm:$0xff]  ;;  %v996_v10 = vld [vmem:[%s12141_s1 + $0x1db8] sm:$0xff] }
 0x1d3   :  { %6516 = vmatpush3.msra.mxu0 %v882_v12  ;;  %6551 = vmatpush3.msra.mxu1 %v914_v13  ;;  %v948_v11 = vld [vmem:[%s12141_s1 + $0x1c38] sm:$0xff]  ;;  %v963_v13 = vld [vmem:[%s12141_s1 + $0x1cb0] sm:$0xff] }
 0x1d4   :  { %6517 = vmatprep.subr.mxu0 %v897_v15  ;;  %6552 = vmatprep.subr.mxu1 %v929_v16  ;;  %v980_v12 = vld [vmem:[%s12141_s1 + $0x1d38] sm:$0xff]  ;;  %v947_v15 = vld [vmem:[%s12141_s1 + $0x1c30] sm:$0xff] }
 0x1d5   :  { %6518 = vmatpush3.msra.mxu0 %v881_v17  ;;  %6553 = vmatpush3.msra.mxu1 %v913_v18  ;;  %v979_v16 = vld [vmem:[%s12141_s1 + $0x1d30] sm:$0xff]  ;;  %v962_v17 = vld [vmem:[%s12141_s1 + $0x1ca8] sm:$0xff] }
 0x1d6   :  { %6519 = vmatprep.subr.mxu0 %v896_v19  ;;  %6554 = vmatprep.subr.mxu1 %v928_v20  ;;  %v994_v18 = vld [vmem:[%s12141_s1 + $0x1da8] sm:$0xff] }
 0x1d7   :  { %6520 = vmatpush3.msra.mxu0 %v880_v22  ;;  %6555 = vmatpush3.msra.mxu1 %v912_v23  ;;  %v946_v19 = vld [vmem:[%s12141_s1 + $0x1c28] sm:$0xff]  ;;  %v961_v22 = vld [vmem:[%s12141_s1 + $0x1ca0] sm:$0xff] }
 0x1d8   :  { %6521 = vmatprep.subr.mxu0 %v895_v24  ;;  %6556 = vmatprep.subr.mxu1 %v927_v25  ;;  %v978_v20 = vld [vmem:[%s12141_s1 + $0x1d28] sm:$0xff]  ;;  %v993_v23 = vld [vmem:[%s12141_s1 + $0x1da0] sm:$0xff] }
 0x1d9   :  { %6522 = vmatpush3.msra.mxu0 %v879_v27  ;;  %6557 = vmatpush3.msra.mxu1 %v911_v28  ;;  %v945_v24 = vld [vmem:[%s12141_s1 + $0x1c20] sm:$0xff]  ;;  %v992_v27 = vld [vmem:[%s12141_s1 + $0x1d98] sm:$0xff]  ;;  %v1850_v28 = vcombine.high %v35_v21, %v35_v21 }
 0x1da   :  { %6523 = vmatprep.subr.mxu0 %v894_v29  ;;  %6558 = vmatprep.subr.mxu1 %v926_v30  ;;  %v977_v25 = vld [vmem:[%s12141_s1 + $0x1d20] sm:$0xff]  ;;  %v944_v29 = vld [vmem:[%s12141_s1 + $0x1c18] sm:$0xff] }
 0x1db   :  { %6524 = vmatpush3.msra.mxu0 %v878_v32  ;;  %6559 = vmatpush3.msra.mxu1 %v910_v33  ;;  %v976_v30 = vld [vmem:[%s12141_s1 + $0x1d18] sm:$0xff]  ;;  %v991_v32 = vld [vmem:[%s12141_s1 + $0x1d90] sm:$0xff]  ;;  %v1857_v33 = vrot.slane %v35_v21, %v7515_v51 }
 0x1dc   :  { %6525 = vmatprep.subr.mxu0 %v893_v34  ;;  %6560 = vmatprep.subr.mxu1 %v925_v35  ;;  %v943_v34 = vld [vmem:[%s12141_s1 + $0x1c10] sm:$0xff] }
 0x1dd   :  { %6526 = vmatpush3.msra.mxu0 %v877_v37  ;;  %4000 = vmatprep.mubr.f32.mxu0 %v1848_v36  ;;  %v975_v35 = vld [vmem:[%s12141_s1 + $0x1d10] sm:$0xff]  ;;  %v958_v36 = vld [vmem:[%s12141_s1 + $0x1c88] sm:$0xff] }
 0x1de   :  { %6561 = vmatpush3.msra.mxu1 %v909_v38  ;;  %4001 = vmatmul.mubr.f32.vlgmr.msra.gmra.mxu0 %v1840_v26  ;;  %v960_v26 = vld [vmem:[%s12141_s1 + $0x1c98] sm:$0xff]  ;;  %v990_v37 = vld [vmem:[%s12141_s1 + $0x1d88] sm:$0xff]  ;;  %v1864_v38 = vrot.slane %v1850_v28, %v7515_v51  ;;  %v1059_v21 = vld [vmem:[%s12141_s1 + $0x1fb0] sm:$0xff] }
 0x1df   :  { %4070 = vmatprep.mubr.f32.mxu1 %v1849_v39  ;;  %6565 = vmatprep.subr.mxu0 %v972_v40  ;;  %v942_v39 = vld [vmem:[%s12141_s1 + $0x1c08] sm:$0xff]  ;;  %v36_v28 = vld [vmem:[%s12140_s0 + $0x78] sm:$0xff] }
 0x1e0   :  { %6600 = vmatprep.subr.mxu1 %v1004_v41  ;;  %4071 = vmatmul.mubr.f32.vlgmr.msra.gmra.mxu1 %v1847_v31  ;;  %v959_v31 = vld [vmem:[%s12141_s1 + $0x1c90] sm:$0xff]  ;;  %v974_v40 = vld [vmem:[%s12141_s1 + $0x1d08] sm:$0xff]  ;;  %v957_v41 = vld [vmem:[%s12141_s1 + $0x1c80] sm:$0xff] }
 0x1e1   :  { %6566 = vmatpush3.msra.mxu0 %v956_v42  ;;  %6601 = vmatpush3.msra.mxu1 %v988_v43  ;;  %v989_v42 = vld [vmem:[%s12141_s1 + $0x1d80] sm:$0xff]  ;;  %v1865_v43 = vcombine.high %v1857_v33, %v1857_v33 }
 0x1e2   :  { %6567 = vmatprep.subr.mxu0 %v971_v44  ;;  %6602 = vmatprep.subr.mxu1 %v1003_v45  ;;  %v941_v44 = vld [vmem:[%s12141_s1 + $0x1c00] sm:$0xff] }
 0x1e3   :  { %6568 = vmatpush3.msra.mxu0 %v955_v46  ;;  %6603 = vmatpush3.msra.mxu1 %v987_v47  ;;  %v973_v45 = vld [vmem:[%s12141_s1 + $0x1d00] sm:$0xff]  ;;  %v1866_v46 = vcombine.high %v1864_v38, %v1864_v38  ;;  %v1036_v47 = vld [vmem:[%s12141_s1 + $0x1ef8] sm:$0xff] }
 0x1e4   :  { %6569 = vmatprep.subr.mxu0 %v970_v48  ;;  %6604 = vmatprep.subr.mxu1 %v1002_v49  ;;  %v1068_v48 = vld [vmem:[%s12141_s1 + $0x1ff8] sm:$0xff] }
 0x1e5   :  { %6570 = vmatpush3.msra.mxu0 %v954_v50  ;;  %6605 = vmatpush3.msra.mxu1 %v986_v52  ;;  %v1020_v49 = vld [vmem:[%s12141_s1 + $0x1e78] sm:$0xff]  ;;  %v1035_v52 = vld [vmem:[%s12141_s1 + $0x1ef0] sm:$0xff] }
 0x1e6   :  { %6571 = vmatprep.subr.mxu0 %v969_v53  ;;  %6606 = vmatprep.subr.mxu1 %v1001_v54  ;;  %v1052_v50 = vld [vmem:[%s12141_s1 + $0x1f78] sm:$0xff]  ;;  %v1067_v53 = vld [vmem:[%s12141_s1 + $0x1ff0] sm:$0xff] }
 0x1e7   :  { %6572 = vmatpush3.msra.mxu0 %v953_v55  ;;  %6607 = vmatpush3.msra.mxu1 %v985_v56  ;;  %v1019_v54 = vld [vmem:[%s12141_s1 + $0x1e70] sm:$0xff]  ;;  %v1034_v56 = vld [vmem:[%s12141_s1 + $0x1ee8] sm:$0xff] }
 0x1e8   :  { %6573 = vmatprep.subr.mxu0 %v968_v57  ;;  %6608 = vmatprep.subr.mxu1 %v1000_v58  ;;  %v1051_v55 = vld [vmem:[%s12141_s1 + $0x1f70] sm:$0xff]  ;;  %v1066_v57 = vld [vmem:[%s12141_s1 + $0x1fe8] sm:$0xff] }
 0x1e9   :  { %6574 = vmatpush3.msra.mxu0 %v952_v59  ;;  %6609 = vmatpush3.msra.mxu1 %v984_v60  ;;  %v1018_v58 = vld [vmem:[%s12141_s1 + $0x1e68] sm:$0xff]  ;;  %v1033_v60 = vld [vmem:[%s12141_s1 + $0x1ee0] sm:$0xff] }
 0x1ea   :  { %6575 = vmatprep.subr.mxu0 %v967_v61  ;;  %6610 = vmatprep.subr.mxu1 %v999_v62  ;;  %v1050_v59 = vld [vmem:[%s12141_s1 + $0x1f68] sm:$0xff]  ;;  %v1065_v61 = vld [vmem:[%s12141_s1 + $0x1fe0] sm:$0xff] }
 0x1eb   :  { %6576 = vmatpush3.msra.mxu0 %v951_v63  ;;  %6611 = vmatpush3.msra.mxu1 %v983_v0  ;;  %v1017_v62 = vld [vmem:[%s12141_s1 + $0x1e60] sm:$0xff]  ;;  %v1032_v0 = vld [vmem:[%s12141_s1 + $0x1ed8] sm:$0xff] }
 0x1ec   :  { %6577 = vmatprep.subr.mxu0 %v966_v1  ;;  %6612 = vmatprep.subr.mxu1 %v998_v2  ;;  %v1049_v63 = vld [vmem:[%s12141_s1 + $0x1f60] sm:$0xff]  ;;  %v1064_v1 = vld [vmem:[%s12141_s1 + $0x1fd8] sm:$0xff] }
 0x1ed   :  { %6578 = vmatpush3.msra.mxu0 %v950_v3  ;;  %6613 = vmatpush3.msra.mxu1 %v982_v4  ;;  %v1016_v2 = vld [vmem:[%s12141_s1 + $0x1e58] sm:$0xff]  ;;  %v1031_v4 = vld [vmem:[%s12141_s1 + $0x1ed0] sm:$0xff] }
 0x1ee   :  { %6579 = vmatprep.subr.mxu0 %v965_v5  ;;  %6614 = vmatprep.subr.mxu1 %v997_v6  ;;  %v1048_v3 = vld [vmem:[%s12141_s1 + $0x1f58] sm:$0xff]  ;;  %v1063_v5 = vld [vmem:[%s12141_s1 + $0x1fd0] sm:$0xff] }
 0x1ef   :  { %6580 = vmatpush3.msra.mxu0 %v949_v7  ;;  %6615 = vmatpush3.msra.mxu1 %v981_v8  ;;  %v1015_v6 = vld [vmem:[%s12141_s1 + $0x1e50] sm:$0xff]  ;;  %v1030_v8 = vld [vmem:[%s12141_s1 + $0x1ec8] sm:$0xff] }
 0x1f0   :  { %6581 = vmatprep.subr.mxu0 %v964_v9  ;;  %6616 = vmatprep.subr.mxu1 %v996_v10  ;;  %v1047_v7 = vld [vmem:[%s12141_s1 + $0x1f50] sm:$0xff]  ;;  %v1062_v9 = vld [vmem:[%s12141_s1 + $0x1fc8] sm:$0xff] }
 0x1f1   :  { %6582 = vmatpush3.msra.mxu0 %v948_v11  ;;  %6617 = vmatpush3.msra.mxu1 %v980_v12  ;;  %v1014_v10 = vld [vmem:[%s12141_s1 + $0x1e48] sm:$0xff]  ;;  %v1029_v12 = vld [vmem:[%s12141_s1 + $0x1ec0] sm:$0xff] }
 0x1f2   :  { %6583 = vmatprep.subr.mxu0 %v963_v13  ;;  %6618 = vmatprep.subr.mxu1 %v995_v14  ;;  %v1046_v11 = vld [vmem:[%s12141_s1 + $0x1f48] sm:$0xff]  ;;  %v1061_v13 = vld [vmem:[%s12141_s1 + $0x1fc0] sm:$0xff] }
 0x1f3   :  { %6584 = vmatpush3.msra.mxu0 %v947_v15  ;;  %6619 = vmatpush3.msra.mxu1 %v979_v16  ;;  %v1013_v14 = vld [vmem:[%s12141_s1 + $0x1e40] sm:$0xff]  ;;  %v1028_v16 = vld [vmem:[%s12141_s1 + $0x1eb8] sm:$0xff] }
 0x1f4   :  { %6585 = vmatprep.subr.mxu0 %v962_v17  ;;  %6620 = vmatprep.subr.mxu1 %v994_v18  ;;  %v1045_v15 = vld [vmem:[%s12141_s1 + $0x1f40] sm:$0xff]  ;;  %v1060_v17 = vld [vmem:[%s12141_s1 + $0x1fb8] sm:$0xff] }
 0x1f5   :  { %6586 = vmatpush3.msra.mxu0 %v946_v19  ;;  %6621 = vmatpush3.msra.mxu1 %v978_v20  ;;  %v1012_v18 = vld [vmem:[%s12141_s1 + $0x1e38] sm:$0xff]  ;;  %v1027_v20 = vld [vmem:[%s12141_s1 + $0x1eb0] sm:$0xff] }
 0x1f6   :  { %6587 = vmatprep.subr.mxu0 %v961_v22  ;;  %6622 = vmatprep.subr.mxu1 %v993_v23  ;;  %v1044_v19 = vld [vmem:[%s12141_s1 + $0x1f38] sm:$0xff]  ;;  %v1011_v22 = vld [vmem:[%s12141_s1 + $0x1e30] sm:$0xff] }
 0x1f7   :  { %6588 = vmatpush3.msra.mxu0 %v945_v24  ;;  %6623 = vmatpush3.msra.mxu1 %v977_v25  ;;  %v1043_v23 = vld [vmem:[%s12141_s1 + $0x1f30] sm:$0xff]  ;;  %v1026_v24 = vld [vmem:[%s12141_s1 + $0x1ea8] sm:$0xff] }
 0x1f8   :  { %6589 = vmatprep.subr.mxu0 %v960_v26  ;;  %6624 = vmatprep.subr.mxu1 %v992_v27  ;;  %v1058_v25 = vld [vmem:[%s12141_s1 + $0x1fa8] sm:$0xff] }
 0x1f9   :  { %6590 = vmatpush3.msra.mxu0 %v944_v29  ;;  %6625 = vmatpush3.msra.mxu1 %v976_v30  ;;  %v1010_v26 = vld [vmem:[%s12141_s1 + $0x1e28] sm:$0xff]  ;;  %v1025_v29 = vld [vmem:[%s12141_s1 + $0x1ea0] sm:$0xff] }
 0x1fa   :  { %6591 = vmatprep.subr.mxu0 %v959_v31  ;;  %6626 = vmatprep.subr.mxu1 %v991_v32  ;;  %v1042_v27 = vld [vmem:[%s12141_s1 + $0x1f28] sm:$0xff]  ;;  %v1057_v30 = vld [vmem:[%s12141_s1 + $0x1fa0] sm:$0xff] }
 0x1fb   :  { %6592 = vmatpush3.msra.mxu0 %v943_v34  ;;  %6627 = vmatpush3.msra.mxu1 %v975_v35  ;;  %v1009_v31 = vld [vmem:[%s12141_s1 + $0x1e20] sm:$0xff]  ;;  %v1056_v34 = vld [vmem:[%s12141_s1 + $0x1f98] sm:$0xff]  ;;  %v1867_v35 = vcombine.high %v36_v28, %v36_v28 }
 0x1fc   :  { %6593 = vmatprep.subr.mxu0 %v958_v36  ;;  %6628 = vmatprep.subr.mxu1 %v990_v37  ;;  %v1041_v32 = vld [vmem:[%s12141_s1 + $0x1f20] sm:$0xff]  ;;  %v1008_v36 = vld [vmem:[%s12141_s1 + $0x1e18] sm:$0xff] }
 0x1fd   :  { %6594 = vmatpush3.msra.mxu0 %v942_v39  ;;  %6629 = vmatpush3.msra.mxu1 %v974_v40  ;;  %v1040_v37 = vld [vmem:[%s12141_s1 + $0x1f18] sm:$0xff]  ;;  %v1055_v39 = vld [vmem:[%s12141_s1 + $0x1f90] sm:$0xff]  ;;  %v1874_v40 = vrot.slane %v36_v28, %v7515_v51 }
 0x1fe   :  { %6595 = vmatprep.subr.mxu0 %v957_v41  ;;  %6630 = vmatprep.subr.mxu1 %v989_v42  ;;  %v1007_v41 = vld [vmem:[%s12141_s1 + $0x1e10] sm:$0xff] }
 0x1ff   :  { %6596 = vmatpush3.msra.mxu0 %v941_v44  ;;  %4140 = vmatprep.mubr.f32.mxu0 %v1865_v43  ;;  %v1039_v42 = vld [vmem:[%s12141_s1 + $0x1f10] sm:$0xff]  ;;  %v1022_v43 = vld [vmem:[%s12141_s1 + $0x1e88] sm:$0xff] }
 0x200   :  { %6631 = vmatpush3.msra.mxu1 %v973_v45  ;;  %4141 = vmatmul.mubr.f32.vlgmr.msra.gmra.mxu0 %v1857_v33  ;;  %v1024_v33 = vld [vmem:[%s12141_s1 + $0x1e98] sm:$0xff]  ;;  %v1054_v44 = vld [vmem:[%s12141_s1 + $0x1f88] sm:$0xff]  ;;  %v1881_v45 = vrot.slane %v1867_v35, %v7515_v51  ;;  %v1123_v28 = vld [vmem:[%s12141_s1 + $0x21b0] sm:$0xff] }
 0x201   :  { %4210 = vmatprep.mubr.f32.mxu1 %v1866_v46  ;;  %6635 = vmatprep.subr.mxu0 %v1036_v47  ;;  %v1006_v46 = vld [vmem:[%s12141_s1 + $0x1e08] sm:$0xff]  ;;  %v37_v35 = vld [vmem:[%s12140_s0 + $0x80] sm:$0xff] }
 0x202   :  { %6670 = vmatprep.subr.mxu1 %v1068_v48  ;;  %4211 = vmatmul.mubr.f32.vlgmr.msra.gmra.mxu1 %v1864_v38  ;;  %v1023_v38 = vld [vmem:[%s12141_s1 + $0x1e90] sm:$0xff]  ;;  %v1038_v47 = vld [vmem:[%s12141_s1 + $0x1f08] sm:$0xff]  ;;  %v1021_v48 = vld [vmem:[%s12141_s1 + $0x1e80] sm:$0xff] }
 0x203   :  { %6636 = vmatpush3.msra.mxu0 %v1020_v49  ;;  %6671 = vmatpush3.msra.mxu1 %v1052_v50  ;;  %v1053_v49 = vld [vmem:[%s12141_s1 + $0x1f80] sm:$0xff]  ;;  %v1882_v50 = vcombine.high %v1874_v40, %v1874_v40 }
 0x204   :  { %6637 = vmatprep.subr.mxu0 %v1035_v52  ;;  %6672 = vmatprep.subr.mxu1 %v1067_v53  ;;  %v1005_v52 = vld [vmem:[%s12141_s1 + $0x1e00] sm:$0xff] }
 0x205   :  { %6638 = vmatpush3.msra.mxu0 %v1019_v54  ;;  %6673 = vmatpush3.msra.mxu1 %v1051_v55  ;;  %v1037_v53 = vld [vmem:[%s12141_s1 + $0x1f00] sm:$0xff]  ;;  %v1883_v54 = vcombine.high %v1881_v45, %v1881_v45  ;;  %v1100_v55 = vld [vmem:[%s12141_s1 + $0x20f8] sm:$0xff] }
 0x206   :  { %6639 = vmatprep.subr.mxu0 %v1034_v56  ;;  %6674 = vmatprep.subr.mxu1 %v1066_v57  ;;  %v1132_v56 = vld [vmem:[%s12141_s1 + $0x21f8] sm:$0xff] }
 0x207   :  { %6640 = vmatpush3.msra.mxu0 %v1018_v58  ;;  %6675 = vmatpush3.msra.mxu1 %v1050_v59  ;;  %v1084_v57 = vld [vmem:[%s12141_s1 + $0x2078] sm:$0xff]  ;;  %v1099_v59 = vld [vmem:[%s12141_s1 + $0x20f0] sm:$0xff] }
 0x208   :  { %6641 = vmatprep.subr.mxu0 %v1033_v60  ;;  %6676 = vmatprep.subr.mxu1 %v1065_v61  ;;  %v1116_v58 = vld [vmem:[%s12141_s1 + $0x2178] sm:$0xff]  ;;  %v1131_v60 = vld [vmem:[%s12141_s1 + $0x21f0] sm:$0xff] }
 0x209   :  { %6642 = vmatpush3.msra.mxu0 %v1017_v62  ;;  %6677 = vmatpush3.msra.mxu1 %v1049_v63  ;;  %v1083_v61 = vld [vmem:[%s12141_s1 + $0x2070] sm:$0xff]  ;;  %v1098_v63 = vld [vmem:[%s12141_s1 + $0x20e8] sm:$0xff] }
 0x20a   :  { %6643 = vmatprep.subr.mxu0 %v1032_v0  ;;  %6678 = vmatprep.subr.mxu1 %v1064_v1  ;;  %v1115_v62 = vld [vmem:[%s12141_s1 + $0x2170] sm:$0xff]  ;;  %v1130_v0 = vld [vmem:[%s12141_s1 + $0x21e8] sm:$0xff] }
 0x20b   :  { %6644 = vmatpush3.msra.mxu0 %v1016_v2  ;;  %6679 = vmatpush3.msra.mxu1 %v1048_v3  ;;  %v1082_v1 = vld [vmem:[%s12141_s1 + $0x2068] sm:$0xff]  ;;  %v1097_v3 = vld [vmem:[%s12141_s1 + $0x20e0] sm:$0xff] }
 0x20c   :  { %6645 = vmatprep.subr.mxu0 %v1031_v4  ;;  %6680 = vmatprep.subr.mxu1 %v1063_v5  ;;  %v1114_v2 = vld [vmem:[%s12141_s1 + $0x2168] sm:$0xff]  ;;  %v1129_v4 = vld [vmem:[%s12141_s1 + $0x21e0] sm:$0xff] }
 0x20d   :  { %6646 = vmatpush3.msra.mxu0 %v1015_v6  ;;  %6681 = vmatpush3.msra.mxu1 %v1047_v7  ;;  %v1081_v5 = vld [vmem:[%s12141_s1 + $0x2060] sm:$0xff]  ;;  %v1096_v7 = vld [vmem:[%s12141_s1 + $0x20d8] sm:$0xff] }
 0x20e   :  { %6647 = vmatprep.subr.mxu0 %v1030_v8  ;;  %6682 = vmatprep.subr.mxu1 %v1062_v9  ;;  %v1113_v6 = vld [vmem:[%s12141_s1 + $0x2160] sm:$0xff]  ;;  %v1128_v8 = vld [vmem:[%s12141_s1 + $0x21d8] sm:$0xff] }
 0x20f   :  { %6648 = vmatpush3.msra.mxu0 %v1014_v10  ;;  %6683 = vmatpush3.msra.mxu1 %v1046_v11  ;;  %v1080_v9 = vld [vmem:[%s12141_s1 + $0x2058] sm:$0xff]  ;;  %v1095_v11 = vld [vmem:[%s12141_s1 + $0x20d0] sm:$0xff] }
 0x210   :  { %6649 = vmatprep.subr.mxu0 %v1029_v12  ;;  %6684 = vmatprep.subr.mxu1 %v1061_v13  ;;  %v1112_v10 = vld [vmem:[%s12141_s1 + $0x2158] sm:$0xff]  ;;  %v1127_v12 = vld [vmem:[%s12141_s1 + $0x21d0] sm:$0xff] }
 0x211   :  { %6650 = vmatpush3.msra.mxu0 %v1013_v14  ;;  %6685 = vmatpush3.msra.mxu1 %v1045_v15  ;;  %v1079_v13 = vld [vmem:[%s12141_s1 + $0x2050] sm:$0xff]  ;;  %v1094_v15 = vld [vmem:[%s12141_s1 + $0x20c8] sm:$0xff] }
 0x212   :  { %6651 = vmatprep.subr.mxu0 %v1028_v16  ;;  %6686 = vmatprep.subr.mxu1 %v1060_v17  ;;  %v1111_v14 = vld [vmem:[%s12141_s1 + $0x2150] sm:$0xff]  ;;  %v1126_v16 = vld [vmem:[%s12141_s1 + $0x21c8] sm:$0xff] }
 0x213   :  { %6652 = vmatpush3.msra.mxu0 %v1012_v18  ;;  %6687 = vmatpush3.msra.mxu1 %v1044_v19  ;;  %v1078_v17 = vld [vmem:[%s12141_s1 + $0x2048] sm:$0xff]  ;;  %v1093_v19 = vld [vmem:[%s12141_s1 + $0x20c0] sm:$0xff] }
 0x214   :  { %6653 = vmatprep.subr.mxu0 %v1027_v20  ;;  %6688 = vmatprep.subr.mxu1 %v1059_v21  ;;  %v1110_v18 = vld [vmem:[%s12141_s1 + $0x2148] sm:$0xff]  ;;  %v1125_v20 = vld [vmem:[%s12141_s1 + $0x21c0] sm:$0xff] }
 0x215   :  { %6654 = vmatpush3.msra.mxu0 %v1011_v22  ;;  %6689 = vmatpush3.msra.mxu1 %v1043_v23  ;;  %v1077_v21 = vld [vmem:[%s12141_s1 + $0x2040] sm:$0xff]  ;;  %v1092_v23 = vld [vmem:[%s12141_s1 + $0x20b8] sm:$0xff] }
 0x216   :  { %6655 = vmatprep.subr.mxu0 %v1026_v24  ;;  %6690 = vmatprep.subr.mxu1 %v1058_v25  ;;  %v1109_v22 = vld [vmem:[%s12141_s1 + $0x2140] sm:$0xff]  ;;  %v1124_v24 = vld [vmem:[%s12141_s1 + $0x21b8] sm:$0xff] }
 0x217   :  { %6656 = vmatpush3.msra.mxu0 %v1010_v26  ;;  %6691 = vmatpush3.msra.mxu1 %v1042_v27  ;;  %v1076_v25 = vld [vmem:[%s12141_s1 + $0x2038] sm:$0xff]  ;;  %v1091_v27 = vld [vmem:[%s12141_s1 + $0x20b0] sm:$0xff] }
 0x218   :  { %6657 = vmatprep.subr.mxu0 %v1025_v29  ;;  %6692 = vmatprep.subr.mxu1 %v1057_v30  ;;  %v1108_v26 = vld [vmem:[%s12141_s1 + $0x2138] sm:$0xff]  ;;  %v1075_v29 = vld [vmem:[%s12141_s1 + $0x2030] sm:$0xff] }
 0x219   :  { %6658 = vmatpush3.msra.mxu0 %v1009_v31  ;;  %6693 = vmatpush3.msra.mxu1 %v1041_v32  ;;  %v1107_v30 = vld [vmem:[%s12141_s1 + $0x2130] sm:$0xff]  ;;  %v1090_v31 = vld [vmem:[%s12141_s1 + $0x20a8] sm:$0xff] }
 0x21a   :  { %6659 = vmatprep.subr.mxu0 %v1024_v33  ;;  %6694 = vmatprep.subr.mxu1 %v1056_v34  ;;  %v1122_v32 = vld [vmem:[%s12141_s1 + $0x21a8] sm:$0xff] }
 0x21b   :  { %6660 = vmatpush3.msra.mxu0 %v1008_v36  ;;  %6695 = vmatpush3.msra.mxu1 %v1040_v37  ;;  %v1074_v33 = vld [vmem:[%s12141_s1 + $0x2028] sm:$0xff]  ;;  %v1089_v36 = vld [vmem:[%s12141_s1 + $0x20a0] sm:$0xff] }
 0x21c   :  { %6661 = vmatprep.subr.mxu0 %v1023_v38  ;;  %6696 = vmatprep.subr.mxu1 %v1055_v39  ;;  %v1106_v34 = vld [vmem:[%s12141_s1 + $0x2128] sm:$0xff]  ;;  %v1121_v37 = vld [vmem:[%s12141_s1 + $0x21a0] sm:$0xff] }
 0x21d   :  { %6662 = vmatpush3.msra.mxu0 %v1007_v41  ;;  %6697 = vmatpush3.msra.mxu1 %v1039_v42  ;;  %v1073_v38 = vld [vmem:[%s12141_s1 + $0x2020] sm:$0xff]  ;;  %v1120_v41 = vld [vmem:[%s12141_s1 + $0x2198] sm:$0xff]  ;;  %v1884_v42 = vcombine.high %v37_v35, %v37_v35 }
 0x21e   :  { %6663 = vmatprep.subr.mxu0 %v1022_v43  ;;  %6698 = vmatprep.subr.mxu1 %v1054_v44  ;;  %v1105_v39 = vld [vmem:[%s12141_s1 + $0x2120] sm:$0xff]  ;;  %v1072_v43 = vld [vmem:[%s12141_s1 + $0x2018] sm:$0xff] }
 0x21f   :  { %6664 = vmatpush3.msra.mxu0 %v1006_v46  ;;  %6699 = vmatpush3.msra.mxu1 %v1038_v47  ;;  %v1104_v44 = vld [vmem:[%s12141_s1 + $0x2118] sm:$0xff]  ;;  %v1119_v46 = vld [vmem:[%s12141_s1 + $0x2190] sm:$0xff]  ;;  %v1891_v47 = vrot.slane %v37_v35, %v7515_v51 }
 0x220   :  { %6665 = vmatprep.subr.mxu0 %v1021_v48  ;;  %6700 = vmatprep.subr.mxu1 %v1053_v49  ;;  %v1071_v48 = vld [vmem:[%s12141_s1 + $0x2010] sm:$0xff] }
 0x221   :  { %6666 = vmatpush3.msra.mxu0 %v1005_v52  ;;  %4280 = vmatprep.mubr.f32.mxu0 %v1882_v50  ;;  %v1103_v49 = vld [vmem:[%s12141_s1 + $0x2110] sm:$0xff]  ;;  %v1086_v50 = vld [vmem:[%s12141_s1 + $0x2088] sm:$0xff] }
 0x222   :  { %6701 = vmatpush3.msra.mxu1 %v1037_v53  ;;  %4281 = vmatmul.mubr.f32.vlgmr.msra.gmra.mxu0 %v1874_v40  ;;  %v1088_v40 = vld [vmem:[%s12141_s1 + $0x2098] sm:$0xff]  ;;  %v1118_v52 = vld [vmem:[%s12141_s1 + $0x2188] sm:$0xff]  ;;  %v1898_v53 = vrot.slane %v1884_v42, %v7515_v51  ;;  %v1187_v35 = vld [vmem:[%s12141_s1 + $0x23b0] sm:$0xff] }
 0x223   :  { %4350 = vmatprep.mubr.f32.mxu1 %v1883_v54  ;;  %6705 = vmatprep.subr.mxu0 %v1100_v55  ;;  %v1070_v54 = vld [vmem:[%s12141_s1 + $0x2008] sm:$0xff] }
 0x224   :  { %6740 = vmatprep.subr.mxu1 %v1132_v56  ;;  %4351 = vmatmul.mubr.f32.vlgmr.msra.gmra.mxu1 %v1881_v45  ;;  %v1087_v45 = vld [vmem:[%s12141_s1 + $0x2090] sm:$0xff]  ;;  %v1102_v55 = vld [vmem:[%s12141_s1 + $0x2108] sm:$0xff]  ;;  %v1085_v56 = vld [vmem:[%s12141_s1 + $0x2080] sm:$0xff] }
 0x225   :  { %6706 = vmatpush3.msra.mxu0 %v1084_v57  ;;  %6741 = vmatpush3.msra.mxu1 %v1116_v58  ;;  %v1117_v57 = vld [vmem:[%s12141_s1 + $0x2180] sm:$0xff]  ;;  %v1899_v58 = vcombine.high %v1891_v47, %v1891_v47  ;;  %v38_v42 = vld [vmem:[%s12140_s0 + $0x88] sm:$0xff] }
 0x226   :  { %6707 = vmatprep.subr.mxu0 %v1099_v59  ;;  %6742 = vmatprep.subr.mxu1 %v1131_v60  ;;  %v1069_v59 = vld [vmem:[%s12141_s1 + $0x2000] sm:$0xff] }
 0x227   :  { %6708 = vmatpush3.msra.mxu0 %v1083_v61  ;;  %6743 = vmatpush3.msra.mxu1 %v1115_v62  ;;  %v1101_v60 = vld [vmem:[%s12141_s1 + $0x2100] sm:$0xff]  ;;  %v1900_v61 = vcombine.high %v1898_v53, %v1898_v53  ;;  %v1164_v62 = vld [vmem:[%s12141_s1 + $0x22f8] sm:$0xff] }
 0x228   :  { %6709 = vmatprep.subr.mxu0 %v1098_v63  ;;  %6744 = vmatprep.subr.mxu1 %v1130_v0  ;;  %v1196_v63 = vld [vmem:[%s12141_s1 + $0x23f8] sm:$0xff] }
 0x229   :  { %6710 = vmatpush3.msra.mxu0 %v1082_v1  ;;  %6745 = vmatpush3.msra.mxu1 %v1114_v2  ;;  %v1148_v0 = vld [vmem:[%s12141_s1 + $0x2278] sm:$0xff]  ;;  %v1163_v2 = vld [vmem:[%s12141_s1 + $0x22f0] sm:$0xff] }
 0x22a   :  { %6711 = vmatprep.subr.mxu0 %v1097_v3  ;;  %6746 = vmatprep.subr.mxu1 %v1129_v4  ;;  %v1180_v1 = vld [vmem:[%s12141_s1 + $0x2378] sm:$0xff]  ;;  %v1195_v3 = vld [vmem:[%s12141_s1 + $0x23f0] sm:$0xff] }
 0x22b   :  { %6712 = vmatpush3.msra.mxu0 %v1081_v5  ;;  %6747 = vmatpush3.msra.mxu1 %v1113_v6  ;;  %v1147_v4 = vld [vmem:[%s12141_s1 + $0x2270] sm:$0xff]  ;;  %v1162_v6 = vld [vmem:[%s12141_s1 + $0x22e8] sm:$0xff] }
 0x22c   :  { %6713 = vmatprep.subr.mxu0 %v1096_v7  ;;  %6748 = vmatprep.subr.mxu1 %v1128_v8  ;;  %v1179_v5 = vld [vmem:[%s12141_s1 + $0x2370] sm:$0xff]  ;;  %v1194_v7 = vld [vmem:[%s12141_s1 + $0x23e8] sm:$0xff] }
 0x22d   :  { %6714 = vmatpush3.msra.mxu0 %v1080_v9  ;;  %6749 = vmatpush3.msra.mxu1 %v1112_v10  ;;  %v1146_v8 = vld [vmem:[%s12141_s1 + $0x2268] sm:$0xff]  ;;  %v1161_v10 = vld [vmem:[%s12141_s1 + $0x22e0] sm:$0xff] }
 0x22e   :  { %6715 = vmatprep.subr.mxu0 %v1095_v11  ;;  %6750 = vmatprep.subr.mxu1 %v1127_v12  ;;  %v1178_v9 = vld [vmem:[%s12141_s1 + $0x2368] sm:$0xff]  ;;  %v1193_v11 = vld [vmem:[%s12141_s1 + $0x23e0] sm:$0xff] }
 0x22f   :  { %6716 = vmatpush3.msra.mxu0 %v1079_v13  ;;  %6751 = vmatpush3.msra.mxu1 %v1111_v14  ;;  %v1145_v12 = vld [vmem:[%s12141_s1 + $0x2260] sm:$0xff]  ;;  %v1160_v14 = vld [vmem:[%s12141_s1 + $0x22d8] sm:$0xff] }
 0x230   :  { %6717 = vmatprep.subr.mxu0 %v1094_v15  ;;  %6752 = vmatprep.subr.mxu1 %v1126_v16  ;;  %v1177_v13 = vld [vmem:[%s12141_s1 + $0x2360] sm:$0xff]  ;;  %v1192_v15 = vld [vmem:[%s12141_s1 + $0x23d8] sm:$0xff] }
 0x231   :  { %6718 = vmatpush3.msra.mxu0 %v1078_v17  ;;  %6753 = vmatpush3.msra.mxu1 %v1110_v18  ;;  %v1144_v16 = vld [vmem:[%s12141_s1 + $0x2258] sm:$0xff]  ;;  %v1159_v18 = vld [vmem:[%s12141_s1 + $0x22d0] sm:$0xff] }
 0x232   :  { %6719 = vmatprep.subr.mxu0 %v1093_v19  ;;  %6754 = vmatprep.subr.mxu1 %v1125_v20  ;;  %v1176_v17 = vld [vmem:[%s12141_s1 + $0x2358] sm:$0xff]  ;;  %v1191_v19 = vld [vmem:[%s12141_s1 + $0x23d0] sm:$0xff] }
 0x233   :  { %6720 = vmatpush3.msra.mxu0 %v1077_v21  ;;  %6755 = vmatpush3.msra.mxu1 %v1109_v22  ;;  %v1143_v20 = vld [vmem:[%s12141_s1 + $0x2250] sm:$0xff]  ;;  %v1158_v22 = vld [vmem:[%s12141_s1 + $0x22c8] sm:$0xff] }
 0x234   :  { %6721 = vmatprep.subr.mxu0 %v1092_v23  ;;  %6756 = vmatprep.subr.mxu1 %v1124_v24  ;;  %v1175_v21 = vld [vmem:[%s12141_s1 + $0x2350] sm:$0xff]  ;;  %v1190_v23 = vld [vmem:[%s12141_s1 + $0x23c8] sm:$0xff] }
 0x235   :  { %6722 = vmatpush3.msra.mxu0 %v1076_v25  ;;  %6757 = vmatpush3.msra.mxu1 %v1108_v26  ;;  %v1142_v24 = vld [vmem:[%s12141_s1 + $0x2248] sm:$0xff]  ;;  %v1157_v26 = vld [vmem:[%s12141_s1 + $0x22c0] sm:$0xff] }
 0x236   :  { %6723 = vmatprep.subr.mxu0 %v1091_v27  ;;  %6758 = vmatprep.subr.mxu1 %v1123_v28  ;;  %v1174_v25 = vld [vmem:[%s12141_s1 + $0x2348] sm:$0xff]  ;;  %v1189_v27 = vld [vmem:[%s12141_s1 + $0x23c0] sm:$0xff] }
 0x237   :  { %6724 = vmatpush3.msra.mxu0 %v1075_v29  ;;  %6759 = vmatpush3.msra.mxu1 %v1107_v30  ;;  %v1141_v28 = vld [vmem:[%s12141_s1 + $0x2240] sm:$0xff]  ;;  %v1156_v30 = vld [vmem:[%s12141_s1 + $0x22b8] sm:$0xff] }
 0x238   :  { %6725 = vmatprep.subr.mxu0 %v1090_v31  ;;  %6760 = vmatprep.subr.mxu1 %v1122_v32  ;;  %v1173_v29 = vld [vmem:[%s12141_s1 + $0x2340] sm:$0xff]  ;;  %v1188_v31 = vld [vmem:[%s12141_s1 + $0x23b8] sm:$0xff] }
 0x239   :  { %6726 = vmatpush3.msra.mxu0 %v1074_v33  ;;  %6761 = vmatpush3.msra.mxu1 %v1106_v34  ;;  %v1140_v32 = vld [vmem:[%s12141_s1 + $0x2238] sm:$0xff]  ;;  %v1155_v34 = vld [vmem:[%s12141_s1 + $0x22b0] sm:$0xff] }
 0x23a   :  { %6727 = vmatprep.subr.mxu0 %v1089_v36  ;;  %6762 = vmatprep.subr.mxu1 %v1121_v37  ;;  %v1172_v33 = vld [vmem:[%s12141_s1 + $0x2338] sm:$0xff]  ;;  %v1139_v36 = vld [vmem:[%s12141_s1 + $0x2230] sm:$0xff] }
 0x23b   :  { %6728 = vmatpush3.msra.mxu0 %v1073_v38  ;;  %6763 = vmatpush3.msra.mxu1 %v1105_v39  ;;  %v1171_v37 = vld [vmem:[%s12141_s1 + $0x2330] sm:$0xff]  ;;  %v1154_v38 = vld [vmem:[%s12141_s1 + $0x22a8] sm:$0xff] }
 0x23c   :  { %6729 = vmatprep.subr.mxu0 %v1088_v40  ;;  %6764 = vmatprep.subr.mxu1 %v1120_v41  ;;  %v1186_v39 = vld [vmem:[%s12141_s1 + $0x23a8] sm:$0xff] }
 0x23d   :  { %6730 = vmatpush3.msra.mxu0 %v1072_v43  ;;  %6765 = vmatpush3.msra.mxu1 %v1104_v44  ;;  %v1138_v40 = vld [vmem:[%s12141_s1 + $0x2228] sm:$0xff]  ;;  %v1153_v43 = vld [vmem:[%s12141_s1 + $0x22a0] sm:$0xff] }
 0x23e   :  { %6731 = vmatprep.subr.mxu0 %v1087_v45  ;;  %6766 = vmatprep.subr.mxu1 %v1119_v46  ;;  %v1170_v41 = vld [vmem:[%s12141_s1 + $0x2328] sm:$0xff]  ;;  %v1185_v44 = vld [vmem:[%s12141_s1 + $0x23a0] sm:$0xff] }
 0x23f   :  { %6732 = vmatpush3.msra.mxu0 %v1071_v48  ;;  %6767 = vmatpush3.msra.mxu1 %v1103_v49  ;;  %v1137_v45 = vld [vmem:[%s12141_s1 + $0x2220] sm:$0xff]  ;;  %v1184_v48 = vld [vmem:[%s12141_s1 + $0x2398] sm:$0xff]  ;;  %v1901_v49 = vcombine.high %v38_v42, %v38_v42 }
 0x240   :  { %6733 = vmatprep.subr.mxu0 %v1086_v50  ;;  %6768 = vmatprep.subr.mxu1 %v1118_v52  ;;  %v1169_v46 = vld [vmem:[%s12141_s1 + $0x2320] sm:$0xff]  ;;  %v1136_v50 = vld [vmem:[%s12141_s1 + $0x2218] sm:$0xff] }
 0x241   :  { %6734 = vmatpush3.msra.mxu0 %v1070_v54  ;;  %6769 = vmatpush3.msra.mxu1 %v1102_v55  ;;  %v1168_v52 = vld [vmem:[%s12141_s1 + $0x2318] sm:$0xff]  ;;  %v1183_v54 = vld [vmem:[%s12141_s1 + $0x2390] sm:$0xff]  ;;  %v1908_v55 = vrot.slane %v38_v42, %v7515_v51 }
 0x242   :  { %6735 = vmatprep.subr.mxu0 %v1085_v56  ;;  %6770 = vmatprep.subr.mxu1 %v1117_v57  ;;  %v1135_v56 = vld [vmem:[%s12141_s1 + $0x2210] sm:$0xff] }
 0x243   :  { %6736 = vmatpush3.msra.mxu0 %v1069_v59  ;;  %4420 = vmatprep.mubr.f32.mxu0 %v1899_v58  ;;  %v1167_v57 = vld [vmem:[%s12141_s1 + $0x2310] sm:$0xff]  ;;  %v1150_v58 = vld [vmem:[%s12141_s1 + $0x2288] sm:$0xff] }
 0x244   :  { %6771 = vmatpush3.msra.mxu1 %v1101_v60  ;;  %4421 = vmatmul.mubr.f32.vlgmr.msra.gmra.mxu0 %v1891_v47  ;;  %v1152_v47 = vld [vmem:[%s12141_s1 + $0x2298] sm:$0xff]  ;;  %v1182_v59 = vld [vmem:[%s12141_s1 + $0x2388] sm:$0xff]  ;;  %v1915_v60 = vrot.slane %v1901_v49, %v7515_v51  ;;  %v1251_v42 = vld [vmem:[%s12141_s1 + $0x25b0] sm:$0xff] }
 0x245   :  { %4490 = vmatprep.mubr.f32.mxu1 %v1900_v61  ;;  %6775 = vmatprep.subr.mxu0 %v1164_v62  ;;  %v1134_v61 = vld [vmem:[%s12141_s1 + $0x2208] sm:$0xff]  ;;  %v39_v49 = vld [vmem:[%s12140_s0 + $0x90] sm:$0xff] }
 0x246   :  { %6810 = vmatprep.subr.mxu1 %v1196_v63  ;;  %4491 = vmatmul.mubr.f32.vlgmr.msra.gmra.mxu1 %v1898_v53  ;;  %v1151_v53 = vld [vmem:[%s12141_s1 + $0x2290] sm:$0xff]  ;;  %v1166_v62 = vld [vmem:[%s12141_s1 + $0x2308] sm:$0xff]  ;;  %v1149_v63 = vld [vmem:[%s12141_s1 + $0x2280] sm:$0xff] }
 0x247   :  { %6776 = vmatpush3.msra.mxu0 %v1148_v0  ;;  %6811 = vmatpush3.msra.mxu1 %v1180_v1  ;;  %v1181_v0 = vld [vmem:[%s12141_s1 + $0x2380] sm:$0xff]  ;;  %v1916_v1 = vcombine.high %v1908_v55, %v1908_v55 }
 0x248   :  { %6777 = vmatprep.subr.mxu0 %v1163_v2  ;;  %6812 = vmatprep.subr.mxu1 %v1195_v3  ;;  %v1133_v2 = vld [vmem:[%s12141_s1 + $0x2200] sm:$0xff] }
 0x249   :  { %6778 = vmatpush3.msra.mxu0 %v1147_v4  ;;  %6813 = vmatpush3.msra.mxu1 %v1179_v5  ;;  %v1165_v3 = vld [vmem:[%s12141_s1 + $0x2300] sm:$0xff]  ;;  %v1917_v4 = vcombine.high %v1915_v60, %v1915_v60  ;;  %v1228_v5 = vld [vmem:[%s12141_s1 + $0x24f8] sm:$0xff] }
 0x24a   :  { %6779 = vmatprep.subr.mxu0 %v1162_v6  ;;  %6814 = vmatprep.subr.mxu1 %v1194_v7  ;;  %v1260_v6 = vld [vmem:[%s12141_s1 + $0x25f8] sm:$0xff] }
 0x24b   :  { %6780 = vmatpush3.msra.mxu0 %v1146_v8  ;;  %6815 = vmatpush3.msra.mxu1 %v1178_v9  ;;  %v1212_v7 = vld [vmem:[%s12141_s1 + $0x2478] sm:$0xff]  ;;  %v1227_v9 = vld [vmem:[%s12141_s1 + $0x24f0] sm:$0xff] }
 0x24c   :  { %6781 = vmatprep.subr.mxu0 %v1161_v10  ;;  %6816 = vmatprep.subr.mxu1 %v1193_v11  ;;  %v1244_v8 = vld [vmem:[%s12141_s1 + $0x2578] sm:$0xff]  ;;  %v1259_v10 = vld [vmem:[%s12141_s1 + $0x25f0] sm:$0xff] }
 0x24d   :  { %6782 = vmatpush3.msra.mxu0 %v1145_v12  ;;  %6817 = vmatpush3.msra.mxu1 %v1177_v13  ;;  %v1211_v11 = vld [vmem:[%s12141_s1 + $0x2470] sm:$0xff]  ;;  %v1226_v13 = vld [vmem:[%s12141_s1 + $0x24e8] sm:$0xff] }
 0x24e   :  { %6783 = vmatprep.subr.mxu0 %v1160_v14  ;;  %6818 = vmatprep.subr.mxu1 %v1192_v15  ;;  %v1243_v12 = vld [vmem:[%s12141_s1 + $0x2570] sm:$0xff]  ;;  %v1258_v14 = vld [vmem:[%s12141_s1 + $0x25e8] sm:$0xff] }
 0x24f   :  { %6784 = vmatpush3.msra.mxu0 %v1144_v16  ;;  %6819 = vmatpush3.msra.mxu1 %v1176_v17  ;;  %v1210_v15 = vld [vmem:[%s12141_s1 + $0x2468] sm:$0xff]  ;;  %v1225_v17 = vld [vmem:[%s12141_s1 + $0x24e0] sm:$0xff] }
 0x250   :  { %6785 = vmatprep.subr.mxu0 %v1159_v18  ;;  %6820 = vmatprep.subr.mxu1 %v1191_v19  ;;  %v1242_v16 = vld [vmem:[%s12141_s1 + $0x2568] sm:$0xff]  ;;  %v1257_v18 = vld [vmem:[%s12141_s1 + $0x25e0] sm:$0xff] }
 0x251   :  { %6786 = vmatpush3.msra.mxu0 %v1143_v20  ;;  %6821 = vmatpush3.msra.mxu1 %v1175_v21  ;;  %v1209_v19 = vld [vmem:[%s12141_s1 + $0x2460] sm:$0xff]  ;;  %v1224_v21 = vld [vmem:[%s12141_s1 + $0x24d8] sm:$0xff] }
 0x252   :  { %6787 = vmatprep.subr.mxu0 %v1158_v22  ;;  %6822 = vmatprep.subr.mxu1 %v1190_v23  ;;  %v1241_v20 = vld [vmem:[%s12141_s1 + $0x2560] sm:$0xff]  ;;  %v1256_v22 = vld [vmem:[%s12141_s1 + $0x25d8] sm:$0xff] }
 0x253   :  { %6788 = vmatpush3.msra.mxu0 %v1142_v24  ;;  %6823 = vmatpush3.msra.mxu1 %v1174_v25  ;;  %v1208_v23 = vld [vmem:[%s12141_s1 + $0x2458] sm:$0xff]  ;;  %v1223_v25 = vld [vmem:[%s12141_s1 + $0x24d0] sm:$0xff] }
 0x254   :  { %6789 = vmatprep.subr.mxu0 %v1157_v26  ;;  %6824 = vmatprep.subr.mxu1 %v1189_v27  ;;  %v1240_v24 = vld [vmem:[%s12141_s1 + $0x2558] sm:$0xff]  ;;  %v1255_v26 = vld [vmem:[%s12141_s1 + $0x25d0] sm:$0xff] }
 0x255   :  { %6790 = vmatpush3.msra.mxu0 %v1141_v28  ;;  %6825 = vmatpush3.msra.mxu1 %v1173_v29  ;;  %v1207_v27 = vld [vmem:[%s12141_s1 + $0x2450] sm:$0xff]  ;;  %v1222_v29 = vld [vmem:[%s12141_s1 + $0x24c8] sm:$0xff] }
 0x256   :  { %6791 = vmatprep.subr.mxu0 %v1156_v30  ;;  %6826 = vmatprep.subr.mxu1 %v1188_v31  ;;  %v1239_v28 = vld [vmem:[%s12141_s1 + $0x2550] sm:$0xff]  ;;  %v1254_v30 = vld [vmem:[%s12141_s1 + $0x25c8] sm:$0xff] }
 0x257   :  { %6792 = vmatpush3.msra.mxu0 %v1140_v32  ;;  %6827 = vmatpush3.msra.mxu1 %v1172_v33  ;;  %v1206_v31 = vld [vmem:[%s12141_s1 + $0x2448] sm:$0xff]  ;;  %v1221_v33 = vld [vmem:[%s12141_s1 + $0x24c0] sm:$0xff] }
 0x258   :  { %6793 = vmatprep.subr.mxu0 %v1155_v34  ;;  %6828 = vmatprep.subr.mxu1 %v1187_v35  ;;  %v1238_v32 = vld [vmem:[%s12141_s1 + $0x2548] sm:$0xff]  ;;  %v1253_v34 = vld [vmem:[%s12141_s1 + $0x25c0] sm:$0xff] }
 0x259   :  { %6794 = vmatpush3.msra.mxu0 %v1139_v36  ;;  %6829 = vmatpush3.msra.mxu1 %v1171_v37  ;;  %v1205_v35 = vld [vmem:[%s12141_s1 + $0x2440] sm:$0xff]  ;;  %v1220_v37 = vld [vmem:[%s12141_s1 + $0x24b8] sm:$0xff] }
 0x25a   :  { %6795 = vmatprep.subr.mxu0 %v1154_v38  ;;  %6830 = vmatprep.subr.mxu1 %v1186_v39  ;;  %v1237_v36 = vld [vmem:[%s12141_s1 + $0x2540] sm:$0xff]  ;;  %v1252_v38 = vld [vmem:[%s12141_s1 + $0x25b8] sm:$0xff] }
 0x25b   :  { %6796 = vmatpush3.msra.mxu0 %v1138_v40  ;;  %6831 = vmatpush3.msra.mxu1 %v1170_v41  ;;  %v1204_v39 = vld [vmem:[%s12141_s1 + $0x2438] sm:$0xff]  ;;  %v1219_v41 = vld [vmem:[%s12141_s1 + $0x24b0] sm:$0xff] }
 0x25c   :  { %6797 = vmatprep.subr.mxu0 %v1153_v43  ;;  %6832 = vmatprep.subr.mxu1 %v1185_v44  ;;  %v1236_v40 = vld [vmem:[%s12141_s1 + $0x2538] sm:$0xff]  ;;  %v1203_v43 = vld [vmem:[%s12141_s1 + $0x2430] sm:$0xff] }
 0x25d   :  { %6798 = vmatpush3.msra.mxu0 %v1137_v45  ;;  %6833 = vmatpush3.msra.mxu1 %v1169_v46  ;;  %v1235_v44 = vld [vmem:[%s12141_s1 + $0x2530] sm:$0xff]  ;;  %v1218_v45 = vld [vmem:[%s12141_s1 + $0x24a8] sm:$0xff] }
 0x25e   :  { %6799 = vmatprep.subr.mxu0 %v1152_v47  ;;  %6834 = vmatprep.subr.mxu1 %v1184_v48  ;;  %v1250_v46 = vld [vmem:[%s12141_s1 + $0x25a8] sm:$0xff] }
 0x25f   :  { %6800 = vmatpush3.msra.mxu0 %v1136_v50  ;;  %6835 = vmatpush3.msra.mxu1 %v1168_v52  ;;  %v1202_v47 = vld [vmem:[%s12141_s1 + $0x2428] sm:$0xff]  ;;  %v1217_v50 = vld [vmem:[%s12141_s1 + $0x24a0] sm:$0xff] }
 0x260   :  { %6801 = vmatprep.subr.mxu0 %v1151_v53  ;;  %6836 = vmatprep.subr.mxu1 %v1183_v54  ;;  %v1234_v48 = vld [vmem:[%s12141_s1 + $0x2528] sm:$0xff]  ;;  %v1249_v52 = vld [vmem:[%s12141_s1 + $0x25a0] sm:$0xff] }
 0x261   :  { %6802 = vmatpush3.msra.mxu0 %v1135_v56  ;;  %6837 = vmatpush3.msra.mxu1 %v1167_v57  ;;  %v1201_v53 = vld [vmem:[%s12141_s1 + $0x2420] sm:$0xff]  ;;  %v1248_v56 = vld [vmem:[%s12141_s1 + $0x2598] sm:$0xff]  ;;  %v1918_v57 = vcombine.high %v39_v49, %v39_v49 }
 0x262   :  { %6803 = vmatprep.subr.mxu0 %v1150_v58  ;;  %6838 = vmatprep.subr.mxu1 %v1182_v59  ;;  %v1233_v54 = vld [vmem:[%s12141_s1 + $0x2520] sm:$0xff]  ;;  %v1200_v58 = vld [vmem:[%s12141_s1 + $0x2418] sm:$0xff] }
 0x263   :  { %6804 = vmatpush3.msra.mxu0 %v1134_v61  ;;  %6839 = vmatpush3.msra.mxu1 %v1166_v62  ;;  %v1232_v59 = vld [vmem:[%s12141_s1 + $0x2518] sm:$0xff]  ;;  %v1247_v61 = vld [vmem:[%s12141_s1 + $0x2590] sm:$0xff]  ;;  %v1925_v62 = vrot.slane %v39_v49, %v7515_v51 }
 0x264   :  { %6805 = vmatprep.subr.mxu0 %v1149_v63  ;;  %6840 = vmatprep.subr.mxu1 %v1181_v0  ;;  %v1199_v63 = vld [vmem:[%s12141_s1 + $0x2410] sm:$0xff] }
 0x265   :  { %6806 = vmatpush3.msra.mxu0 %v1133_v2  ;;  %4560 = vmatprep.mubr.f32.mxu0 %v1916_v1  ;;  %v1231_v0 = vld [vmem:[%s12141_s1 + $0x2510] sm:$0xff]  ;;  %v1214_v1 = vld [vmem:[%s12141_s1 + $0x2488] sm:$0xff] }
 0x266   :  { %6841 = vmatpush3.msra.mxu1 %v1165_v3  ;;  %4561 = vmatmul.mubr.f32.vlgmr.msra.gmra.mxu0 %v1908_v55  ;;  %v1216_v55 = vld [vmem:[%s12141_s1 + $0x2498] sm:$0xff]  ;;  %v1246_v2 = vld [vmem:[%s12141_s1 + $0x2588] sm:$0xff]  ;;  %v1932_v3 = vrot.slane %v1918_v57, %v7515_v51  ;;  %v1315_v49 = vld [vmem:[%s12141_s1 + $0x27b0] sm:$0xff] }
 0x267   :  { %4630 = vmatprep.mubr.f32.mxu1 %v1917_v4  ;;  %6845 = vmatprep.subr.mxu0 %v1228_v5  ;;  %v1198_v4 = vld [vmem:[%s12141_s1 + $0x2408] sm:$0xff]  ;;  %v40_v57 = vld [vmem:[%s12140_s0 + $0x98] sm:$0xff] }
 0x268   :  { %6880 = vmatprep.subr.mxu1 %v1260_v6  ;;  %4631 = vmatmul.mubr.f32.vlgmr.msra.gmra.mxu1 %v1915_v60  ;;  %v1215_v60 = vld [vmem:[%s12141_s1 + $0x2490] sm:$0xff]  ;;  %v1230_v5 = vld [vmem:[%s12141_s1 + $0x2508] sm:$0xff]  ;;  %v1213_v6 = vld [vmem:[%s12141_s1 + $0x2480] sm:$0xff] }
 0x269   :  { %6846 = vmatpush3.msra.mxu0 %v1212_v7  ;;  %6881 = vmatpush3.msra.mxu1 %v1244_v8  ;;  %v1245_v7 = vld [vmem:[%s12141_s1 + $0x2580] sm:$0xff]  ;;  %v1933_v8 = vcombine.high %v1925_v62, %v1925_v62 }
 0x26a   :  { %6847 = vmatprep.subr.mxu0 %v1227_v9  ;;  %6882 = vmatprep.subr.mxu1 %v1259_v10  ;;  %v1197_v9 = vld [vmem:[%s12141_s1 + $0x2400] sm:$0xff] }
 0x26b   :  { %6848 = vmatpush3.msra.mxu0 %v1211_v11  ;;  %6883 = vmatpush3.msra.mxu1 %v1243_v12  ;;  %v1229_v10 = vld [vmem:[%s12141_s1 + $0x2500] sm:$0xff]  ;;  %v1934_v11 = vcombine.high %v1932_v3, %v1932_v3  ;;  %v1292_v12 = vld [vmem:[%s12141_s1 + $0x26f8] sm:$0xff] }
 0x26c   :  { %6849 = vmatprep.subr.mxu0 %v1226_v13  ;;  %6884 = vmatprep.subr.mxu1 %v1258_v14  ;;  %v1324_v13 = vld [vmem:[%s12141_s1 + $0x27f8] sm:$0xff] }
 0x26d   :  { %6850 = vmatpush3.msra.mxu0 %v1210_v15  ;;  %6885 = vmatpush3.msra.mxu1 %v1242_v16  ;;  %v1276_v14 = vld [vmem:[%s12141_s1 + $0x2678] sm:$0xff]  ;;  %v1291_v16 = vld [vmem:[%s12141_s1 + $0x26f0] sm:$0xff] }
 0x26e   :  { %6851 = vmatprep.subr.mxu0 %v1225_v17  ;;  %6886 = vmatprep.subr.mxu1 %v1257_v18  ;;  %v1308_v15 = vld [vmem:[%s12141_s1 + $0x2778] sm:$0xff]  ;;  %v1323_v17 = vld [vmem:[%s12141_s1 + $0x27f0] sm:$0xff] }
 0x26f   :  { %6852 = vmatpush3.msra.mxu0 %v1209_v19  ;;  %6887 = vmatpush3.msra.mxu1 %v1241_v20  ;;  %v1275_v18 = vld [vmem:[%s12141_s1 + $0x2670] sm:$0xff]  ;;  %v1290_v20 = vld [vmem:[%s12141_s1 + $0x26e8] sm:$0xff] }
 0x270   :  { %6853 = vmatprep.subr.mxu0 %v1224_v21  ;;  %6888 = vmatprep.subr.mxu1 %v1256_v22  ;;  %v1307_v19 = vld [vmem:[%s12141_s1 + $0x2770] sm:$0xff]  ;;  %v1322_v21 = vld [vmem:[%s12141_s1 + $0x27e8] sm:$0xff] }
 0x271   :  { %6854 = vmatpush3.msra.mxu0 %v1208_v23  ;;  %6889 = vmatpush3.msra.mxu1 %v1240_v24  ;;  %v1274_v22 = vld [vmem:[%s12141_s1 + $0x2668] sm:$0xff]  ;;  %v1289_v24 = vld [vmem:[%s12141_s1 + $0x26e0] sm:$0xff] }
 0x272   :  { %6855 = vmatprep.subr.mxu0 %v1223_v25  ;;  %6890 = vmatprep.subr.mxu1 %v1255_v26  ;;  %v1306_v23 = vld [vmem:[%s12141_s1 + $0x2768] sm:$0xff]  ;;  %v1321_v25 = vld [vmem:[%s12141_s1 + $0x27e0] sm:$0xff] }
 0x273   :  { %6856 = vmatpush3.msra.mxu0 %v1207_v27  ;;  %6891 = vmatpush3.msra.mxu1 %v1239_v28  ;;  %v1273_v26 = vld [vmem:[%s12141_s1 + $0x2660] sm:$0xff]  ;;  %v1288_v28 = vld [vmem:[%s12141_s1 + $0x26d8] sm:$0xff] }
 0x274   :  { %6857 = vmatprep.subr.mxu0 %v1222_v29  ;;  %6892 = vmatprep.subr.mxu1 %v1254_v30  ;;  %v1305_v27 = vld [vmem:[%s12141_s1 + $0x2760] sm:$0xff]  ;;  %v1320_v29 = vld [vmem:[%s12141_s1 + $0x27d8] sm:$0xff] }
 0x275   :  { %6858 = vmatpush3.msra.mxu0 %v1206_v31  ;;  %6893 = vmatpush3.msra.mxu1 %v1238_v32  ;;  %v1272_v30 = vld [vmem:[%s12141_s1 + $0x2658] sm:$0xff]  ;;  %v1287_v32 = vld [vmem:[%s12141_s1 + $0x26d0] sm:$0xff] }
 0x276   :  { %6859 = vmatprep.subr.mxu0 %v1221_v33  ;;  %6894 = vmatprep.subr.mxu1 %v1253_v34  ;;  %v1304_v31 = vld [vmem:[%s12141_s1 + $0x2758] sm:$0xff]  ;;  %v1319_v33 = vld [vmem:[%s12141_s1 + $0x27d0] sm:$0xff] }
 0x277   :  { %6860 = vmatpush3.msra.mxu0 %v1205_v35  ;;  %6895 = vmatpush3.msra.mxu1 %v1237_v36  ;;  %v1271_v34 = vld [vmem:[%s12141_s1 + $0x2650] sm:$0xff]  ;;  %v1286_v36 = vld [vmem:[%s12141_s1 + $0x26c8] sm:$0xff] }
 0x278   :  { %6861 = vmatprep.subr.mxu0 %v1220_v37  ;;  %6896 = vmatprep.subr.mxu1 %v1252_v38  ;;  %v1303_v35 = vld [vmem:[%s12141_s1 + $0x2750] sm:$0xff]  ;;  %v1318_v37 = vld [vmem:[%s12141_s1 + $0x27c8] sm:$0xff] }
 0x279   :  { %6862 = vmatpush3.msra.mxu0 %v1204_v39  ;;  %6897 = vmatpush3.msra.mxu1 %v1236_v40  ;;  %v1270_v38 = vld [vmem:[%s12141_s1 + $0x2648] sm:$0xff]  ;;  %v1285_v40 = vld [vmem:[%s12141_s1 + $0x26c0] sm:$0xff] }
 0x27a   :  { %6863 = vmatprep.subr.mxu0 %v1219_v41  ;;  %6898 = vmatprep.subr.mxu1 %v1251_v42  ;;  %v1302_v39 = vld [vmem:[%s12141_s1 + $0x2748] sm:$0xff]  ;;  %v1317_v41 = vld [vmem:[%s12141_s1 + $0x27c0] sm:$0xff] }
 0x27b   :  { %6864 = vmatpush3.msra.mxu0 %v1203_v43  ;;  %6899 = vmatpush3.msra.mxu1 %v1235_v44  ;;  %v1269_v42 = vld [vmem:[%s12141_s1 + $0x2640] sm:$0xff]  ;;  %v1284_v44 = vld [vmem:[%s12141_s1 + $0x26b8] sm:$0xff] }
 0x27c   :  { %6865 = vmatprep.subr.mxu0 %v1218_v45  ;;  %6900 = vmatprep.subr.mxu1 %v1250_v46  ;;  %v1301_v43 = vld [vmem:[%s12141_s1 + $0x2740] sm:$0xff]  ;;  %v1316_v45 = vld [vmem:[%s12141_s1 + $0x27b8] sm:$0xff] }
 0x27d   :  { %6866 = vmatpush3.msra.mxu0 %v1202_v47  ;;  %6901 = vmatpush3.msra.mxu1 %v1234_v48  ;;  %v1268_v46 = vld [vmem:[%s12141_s1 + $0x2638] sm:$0xff]  ;;  %v1283_v48 = vld [vmem:[%s12141_s1 + $0x26b0] sm:$0xff] }
 0x27e   :  { %6867 = vmatprep.subr.mxu0 %v1217_v50  ;;  %6902 = vmatprep.subr.mxu1 %v1249_v52  ;;  %v1300_v47 = vld [vmem:[%s12141_s1 + $0x2738] sm:$0xff]  ;;  %v1267_v50 = vld [vmem:[%s12141_s1 + $0x2630] sm:$0xff] }
 0x27f   :  { %6868 = vmatpush3.msra.mxu0 %v1201_v53  ;;  %6903 = vmatpush3.msra.mxu1 %v1233_v54  ;;  %v1299_v52 = vld [vmem:[%s12141_s1 + $0x2730] sm:$0xff]  ;;  %v1282_v53 = vld [vmem:[%s12141_s1 + $0x26a8] sm:$0xff] }
 0x280   :  { %6869 = vmatprep.subr.mxu0 %v1216_v55  ;;  %6904 = vmatprep.subr.mxu1 %v1248_v56  ;;  %v1314_v54 = vld [vmem:[%s12141_s1 + $0x27a8] sm:$0xff] }
 0x281   :  { %6870 = vmatpush3.msra.mxu0 %v1200_v58  ;;  %6905 = vmatpush3.msra.mxu1 %v1232_v59  ;;  %v1266_v55 = vld [vmem:[%s12141_s1 + $0x2628] sm:$0xff]  ;;  %v1281_v58 = vld [vmem:[%s12141_s1 + $0x26a0] sm:$0xff] }
 0x282   :  { %6871 = vmatprep.subr.mxu0 %v1215_v60  ;;  %6906 = vmatprep.subr.mxu1 %v1247_v61  ;;  %v1298_v56 = vld [vmem:[%s12141_s1 + $0x2728] sm:$0xff]  ;;  %v1313_v59 = vld [vmem:[%s12141_s1 + $0x27a0] sm:$0xff] }
 0x283   :  { %6872 = vmatpush3.msra.mxu0 %v1199_v63  ;;  %6907 = vmatpush3.msra.mxu1 %v1231_v0  ;;  %v1265_v60 = vld [vmem:[%s12141_s1 + $0x2620] sm:$0xff]  ;;  %v1312_v63 = vld [vmem:[%s12141_s1 + $0x2798] sm:$0xff]  ;;  %v1935_v0 = vcombine.high %v40_v57, %v40_v57 }
 0x284   :  { %6873 = vmatprep.subr.mxu0 %v1214_v1  ;;  %6908 = vmatprep.subr.mxu1 %v1246_v2  ;;  %v1297_v61 = vld [vmem:[%s12141_s1 + $0x2720] sm:$0xff]  ;;  %v1264_v1 = vld [vmem:[%s12141_s1 + $0x2618] sm:$0xff] }
 0x285   :  { %6874 = vmatpush3.msra.mxu0 %v1198_v4  ;;  %6909 = vmatpush3.msra.mxu1 %v1230_v5  ;;  %v1296_v2 = vld [vmem:[%s12141_s1 + $0x2718] sm:$0xff]  ;;  %v1311_v4 = vld [vmem:[%s12141_s1 + $0x2790] sm:$0xff]  ;;  %v1942_v5 = vrot.slane %v40_v57, %v7515_v51 }
 0x286   :  { %6875 = vmatprep.subr.mxu0 %v1213_v6  ;;  %6910 = vmatprep.subr.mxu1 %v1245_v7  ;;  %v1263_v6 = vld [vmem:[%s12141_s1 + $0x2610] sm:$0xff] }
 0x287   :  { %6876 = vmatpush3.msra.mxu0 %v1197_v9  ;;  %4700 = vmatprep.mubr.f32.mxu0 %v1933_v8  ;;  %v1295_v7 = vld [vmem:[%s12141_s1 + $0x2710] sm:$0xff]  ;;  %v1278_v8 = vld [vmem:[%s12141_s1 + $0x2688] sm:$0xff] }
 0x288   :  { %6911 = vmatpush3.msra.mxu1 %v1229_v10  ;;  %4701 = vmatmul.mubr.f32.vlgmr.msra.gmra.mxu0 %v1925_v62  ;;  %v1280_v62 = vld [vmem:[%s12141_s1 + $0x2698] sm:$0xff]  ;;  %v1310_v9 = vld [vmem:[%s12141_s1 + $0x2788] sm:$0xff]  ;;  %v1949_v10 = vrot.slane %v1935_v0, %v7515_v51  ;;  %v1379_v57 = vld [vmem:[%s12141_s1 + $0x29b0] sm:$0xff] }
 0x289   :  { %4770 = vmatprep.mubr.f32.mxu1 %v1934_v11  ;;  %6915 = vmatprep.subr.mxu0 %v1292_v12  ;;  %v1262_v11 = vld [vmem:[%s12141_s1 + $0x2608] sm:$0xff]  ;;  %v41_v0 = vld [vmem:[%s12140_s0 + $0xa0] sm:$0xff] }
 0x28a   :  { %6950 = vmatprep.subr.mxu1 %v1324_v13  ;;  %4771 = vmatmul.mubr.f32.vlgmr.msra.gmra.mxu1 %v1932_v3  ;;  %v1279_v3 = vld [vmem:[%s12141_s1 + $0x2690] sm:$0xff]  ;;  %v1294_v12 = vld [vmem:[%s12141_s1 + $0x2708] sm:$0xff]  ;;  %v1277_v13 = vld [vmem:[%s12141_s1 + $0x2680] sm:$0xff] }
 0x28b   :  { %6916 = vmatpush3.msra.mxu0 %v1276_v14  ;;  %6951 = vmatpush3.msra.mxu1 %v1308_v15  ;;  %v1309_v14 = vld [vmem:[%s12141_s1 + $0x2780] sm:$0xff]  ;;  %v1950_v15 = vcombine.high %v1942_v5, %v1942_v5 }
 0x28c   :  { %6917 = vmatprep.subr.mxu0 %v1291_v16  ;;  %6952 = vmatprep.subr.mxu1 %v1323_v17  ;;  %v1261_v16 = vld [vmem:[%s12141_s1 + $0x2600] sm:$0xff] }
 0x28d   :  { %6918 = vmatpush3.msra.mxu0 %v1275_v18  ;;  %6953 = vmatpush3.msra.mxu1 %v1307_v19  ;;  %v1293_v17 = vld [vmem:[%s12141_s1 + $0x2700] sm:$0xff]  ;;  %v1951_v18 = vcombine.high %v1949_v10, %v1949_v10  ;;  %v1356_v19 = vld [vmem:[%s12141_s1 + $0x28f8] sm:$0xff] }
 0x28e   :  { %6919 = vmatprep.subr.mxu0 %v1290_v20  ;;  %6954 = vmatprep.subr.mxu1 %v1322_v21  ;;  %v1388_v20 = vld [vmem:[%s12141_s1 + $0x29f8] sm:$0xff] }
 0x28f   :  { %6920 = vmatpush3.msra.mxu0 %v1274_v22  ;;  %6955 = vmatpush3.msra.mxu1 %v1306_v23  ;;  %v1340_v21 = vld [vmem:[%s12141_s1 + $0x2878] sm:$0xff]  ;;  %v1355_v23 = vld [vmem:[%s12141_s1 + $0x28f0] sm:$0xff] }
 0x290   :  { %6921 = vmatprep.subr.mxu0 %v1289_v24  ;;  %6956 = vmatprep.subr.mxu1 %v1321_v25  ;;  %v1372_v22 = vld [vmem:[%s12141_s1 + $0x2978] sm:$0xff]  ;;  %v1387_v24 = vld [vmem:[%s12141_s1 + $0x29f0] sm:$0xff] }
 0x291   :  { %6922 = vmatpush3.msra.mxu0 %v1273_v26  ;;  %6957 = vmatpush3.msra.mxu1 %v1305_v27  ;;  %v1339_v25 = vld [vmem:[%s12141_s1 + $0x2870] sm:$0xff]  ;;  %v1354_v27 = vld [vmem:[%s12141_s1 + $0x28e8] sm:$0xff] }
 0x292   :  { %6923 = vmatprep.subr.mxu0 %v1288_v28  ;;  %6958 = vmatprep.subr.mxu1 %v1320_v29  ;;  %v1371_v26 = vld [vmem:[%s12141_s1 + $0x2970] sm:$0xff]  ;;  %v1386_v28 = vld [vmem:[%s12141_s1 + $0x29e8] sm:$0xff] }
 0x293   :  { %6924 = vmatpush3.msra.mxu0 %v1272_v30  ;;  %6959 = vmatpush3.msra.mxu1 %v1304_v31  ;;  %v1338_v29 = vld [vmem:[%s12141_s1 + $0x2868] sm:$0xff]  ;;  %v1353_v31 = vld [vmem:[%s12141_s1 + $0x28e0] sm:$0xff] }
 0x294   :  { %6925 = vmatprep.subr.mxu0 %v1287_v32  ;;  %6960 = vmatprep.subr.mxu1 %v1319_v33  ;;  %v1370_v30 = vld [vmem:[%s12141_s1 + $0x2968] sm:$0xff]  ;;  %v1385_v32 = vld [vmem:[%s12141_s1 + $0x29e0] sm:$0xff] }
 0x295   :  { %6926 = vmatpush3.msra.mxu0 %v1271_v34  ;;  %6961 = vmatpush3.msra.mxu1 %v1303_v35  ;;  %v1337_v33 = vld [vmem:[%s12141_s1 + $0x2860] sm:$0xff]  ;;  %v1352_v35 = vld [vmem:[%s12141_s1 + $0x28d8] sm:$0xff] }
 0x296   :  { %6927 = vmatprep.subr.mxu0 %v1286_v36  ;;  %6962 = vmatprep.subr.mxu1 %v1318_v37  ;;  %v1369_v34 = vld [vmem:[%s12141_s1 + $0x2960] sm:$0xff]  ;;  %v1384_v36 = vld [vmem:[%s12141_s1 + $0x29d8] sm:$0xff] }
 0x297   :  { %6928 = vmatpush3.msra.mxu0 %v1270_v38  ;;  %6963 = vmatpush3.msra.mxu1 %v1302_v39  ;;  %v1336_v37 = vld [vmem:[%s12141_s1 + $0x2858] sm:$0xff]  ;;  %v1351_v39 = vld [vmem:[%s12141_s1 + $0x28d0] sm:$0xff] }
 0x298   :  { %6929 = vmatprep.subr.mxu0 %v1285_v40  ;;  %6964 = vmatprep.subr.mxu1 %v1317_v41  ;;  %v1368_v38 = vld [vmem:[%s12141_s1 + $0x2958] sm:$0xff]  ;;  %v1383_v40 = vld [vmem:[%s12141_s1 + $0x29d0] sm:$0xff] }
 0x299   :  { %6930 = vmatpush3.msra.mxu0 %v1269_v42  ;;  %6965 = vmatpush3.msra.mxu1 %v1301_v43  ;;  %v1335_v41 = vld [vmem:[%s12141_s1 + $0x2850] sm:$0xff]  ;;  %v1350_v43 = vld [vmem:[%s12141_s1 + $0x28c8] sm:$0xff] }
 0x29a   :  { %6931 = vmatprep.subr.mxu0 %v1284_v44  ;;  %6966 = vmatprep.subr.mxu1 %v1316_v45  ;;  %v1367_v42 = vld [vmem:[%s12141_s1 + $0x2950] sm:$0xff]  ;;  %v1382_v44 = vld [vmem:[%s12141_s1 + $0x29c8] sm:$0xff] }
 0x29b   :  { %6932 = vmatpush3.msra.mxu0 %v1268_v46  ;;  %6967 = vmatpush3.msra.mxu1 %v1300_v47  ;;  %v1334_v45 = vld [vmem:[%s12141_s1 + $0x2848] sm:$0xff]  ;;  %v1349_v47 = vld [vmem:[%s12141_s1 + $0x28c0] sm:$0xff] }
 0x29c   :  { %6933 = vmatprep.subr.mxu0 %v1283_v48  ;;  %6968 = vmatprep.subr.mxu1 %v1315_v49  ;;  %v1366_v46 = vld [vmem:[%s12141_s1 + $0x2948] sm:$0xff]  ;;  %v1381_v48 = vld [vmem:[%s12141_s1 + $0x29c0] sm:$0xff] }
 0x29d   :  { %6934 = vmatpush3.msra.mxu0 %v1267_v50  ;;  %6969 = vmatpush3.msra.mxu1 %v1299_v52  ;;  %v1333_v49 = vld [vmem:[%s12141_s1 + $0x2840] sm:$0xff]  ;;  %v1348_v52 = vld [vmem:[%s12141_s1 + $0x28b8] sm:$0xff] }
 0x29e   :  { %6935 = vmatprep.subr.mxu0 %v1282_v53  ;;  %6970 = vmatprep.subr.mxu1 %v1314_v54  ;;  %v1365_v50 = vld [vmem:[%s12141_s1 + $0x2940] sm:$0xff]  ;;  %v1380_v53 = vld [vmem:[%s12141_s1 + $0x29b8] sm:$0xff] }
 0x29f   :  { %6936 = vmatpush3.msra.mxu0 %v1266_v55  ;;  %6971 = vmatpush3.msra.mxu1 %v1298_v56  ;;  %v1332_v54 = vld [vmem:[%s12141_s1 + $0x2838] sm:$0xff]  ;;  %v1347_v56 = vld [vmem:[%s12141_s1 + $0x28b0] sm:$0xff] }
 0x2a0   :  { %6937 = vmatprep.subr.mxu0 %v1281_v58  ;;  %6972 = vmatprep.subr.mxu1 %v1313_v59  ;;  %v1364_v55 = vld [vmem:[%s12141_s1 + $0x2938] sm:$0xff]  ;;  %v1331_v58 = vld [vmem:[%s12141_s1 + $0x2830] sm:$0xff] }
 0x2a1   :  { %6938 = vmatpush3.msra.mxu0 %v1265_v60  ;;  %6973 = vmatpush3.msra.mxu1 %v1297_v61  ;;  %v1363_v59 = vld [vmem:[%s12141_s1 + $0x2930] sm:$0xff]  ;;  %v1346_v60 = vld [vmem:[%s12141_s1 + $0x28a8] sm:$0xff] }
 0x2a2   :  { %6939 = vmatprep.subr.mxu0 %v1280_v62  ;;  %6974 = vmatprep.subr.mxu1 %v1312_v63  ;;  %v1378_v61 = vld [vmem:[%s12141_s1 + $0x29a8] sm:$0xff] }
 0x2a3   :  { %6940 = vmatpush3.msra.mxu0 %v1264_v1  ;;  %6975 = vmatpush3.msra.mxu1 %v1296_v2  ;;  %v1330_v62 = vld [vmem:[%s12141_s1 + $0x2828] sm:$0xff]  ;;  %v1345_v1 = vld [vmem:[%s12141_s1 + $0x28a0] sm:$0xff] }
 0x2a4   :  { %6941 = vmatprep.subr.mxu0 %v1279_v3  ;;  %6976 = vmatprep.subr.mxu1 %v1311_v4  ;;  %v1362_v63 = vld [vmem:[%s12141_s1 + $0x2928] sm:$0xff]  ;;  %v1377_v2 = vld [vmem:[%s12141_s1 + $0x29a0] sm:$0xff] }
 0x2a5   :  { %6942 = vmatpush3.msra.mxu0 %v1263_v6  ;;  %6977 = vmatpush3.msra.mxu1 %v1295_v7  ;;  %v1329_v3 = vld [vmem:[%s12141_s1 + $0x2820] sm:$0xff]  ;;  %v1376_v6 = vld [vmem:[%s12141_s1 + $0x2998] sm:$0xff]  ;;  %v1952_v7 = vcombine.high %v41_v0, %v41_v0 }
 0x2a6   :  { %6943 = vmatprep.subr.mxu0 %v1278_v8  ;;  %6978 = vmatprep.subr.mxu1 %v1310_v9  ;;  %v1361_v4 = vld [vmem:[%s12141_s1 + $0x2920] sm:$0xff]  ;;  %v1328_v8 = vld [vmem:[%s12141_s1 + $0x2818] sm:$0xff] }
 0x2a7   :  { %6944 = vmatpush3.msra.mxu0 %v1262_v11  ;;  %6979 = vmatpush3.msra.mxu1 %v1294_v12  ;;  %v1360_v9 = vld [vmem:[%s12141_s1 + $0x2918] sm:$0xff]  ;;  %v1375_v11 = vld [vmem:[%s12141_s1 + $0x2990] sm:$0xff]  ;;  %v1959_v12 = vrot.slane %v41_v0, %v7515_v51 }
 0x2a8   :  { %6945 = vmatprep.subr.mxu0 %v1277_v13  ;;  %6980 = vmatprep.subr.mxu1 %v1309_v14  ;;  %v1327_v13 = vld [vmem:[%s12141_s1 + $0x2810] sm:$0xff] }
 0x2a9   :  { %6946 = vmatpush3.msra.mxu0 %v1261_v16  ;;  %4840 = vmatprep.mubr.f32.mxu0 %v1950_v15  ;;  %v1359_v14 = vld [vmem:[%s12141_s1 + $0x2910] sm:$0xff]  ;;  %v1342_v15 = vld [vmem:[%s12141_s1 + $0x2888] sm:$0xff] }
 0x2aa   :  { %6981 = vmatpush3.msra.mxu1 %v1293_v17  ;;  %4841 = vmatmul.mubr.f32.vlgmr.msra.gmra.mxu0 %v1942_v5  ;;  %v1344_v5 = vld [vmem:[%s12141_s1 + $0x2898] sm:$0xff]  ;;  %v1374_v16 = vld [vmem:[%s12141_s1 + $0x2988] sm:$0xff]  ;;  %v1966_v17 = vrot.slane %v1952_v7, %v7515_v51  ;;  %v1443_v0 = vld [vmem:[%s12141_s1 + $0x2bb0] sm:$0xff] }
 0x2ab   :  { %4910 = vmatprep.mubr.f32.mxu1 %v1951_v18  ;;  %6985 = vmatprep.subr.mxu0 %v1356_v19  ;;  %v1326_v18 = vld [vmem:[%s12141_s1 + $0x2808] sm:$0xff] }
 0x2ac   :  { %7020 = vmatprep.subr.mxu1 %v1388_v20  ;;  %4911 = vmatmul.mubr.f32.vlgmr.msra.gmra.mxu1 %v1949_v10  ;;  %v1343_v10 = vld [vmem:[%s12141_s1 + $0x2890] sm:$0xff]  ;;  %v1358_v19 = vld [vmem:[%s12141_s1 + $0x2908] sm:$0xff]  ;;  %v1341_v20 = vld [vmem:[%s12141_s1 + $0x2880] sm:$0xff] }
 0x2ad   :  { %6986 = vmatpush3.msra.mxu0 %v1340_v21  ;;  %7021 = vmatpush3.msra.mxu1 %v1372_v22  ;;  %v1373_v21 = vld [vmem:[%s12141_s1 + $0x2980] sm:$0xff]  ;;  %v1967_v22 = vcombine.high %v1959_v12, %v1959_v12  ;;  %v42_v7 = vld [vmem:[%s12140_s0 + $0xa8] sm:$0xff] }
 0x2ae   :  { %6987 = vmatprep.subr.mxu0 %v1355_v23  ;;  %7022 = vmatprep.subr.mxu1 %v1387_v24  ;;  %v1325_v23 = vld [vmem:[%s12141_s1 + $0x2800] sm:$0xff] }
 0x2af   :  { %6988 = vmatpush3.msra.mxu0 %v1339_v25  ;;  %7023 = vmatpush3.msra.mxu1 %v1371_v26  ;;  %v1357_v24 = vld [vmem:[%s12141_s1 + $0x2900] sm:$0xff]  ;;  %v1968_v25 = vcombine.high %v1966_v17, %v1966_v17  ;;  %v1420_v26 = vld [vmem:[%s12141_s1 + $0x2af8] sm:$0xff] }
 0x2b0   :  { %6989 = vmatprep.subr.mxu0 %v1354_v27  ;;  %7024 = vmatprep.subr.mxu1 %v1386_v28  ;;  %v1452_v27 = vld [vmem:[%s12141_s1 + $0x2bf8] sm:$0xff] }
 0x2b1   :  { %6990 = vmatpush3.msra.mxu0 %v1338_v29  ;;  %7025 = vmatpush3.msra.mxu1 %v1370_v30  ;;  %v1404_v28 = vld [vmem:[%s12141_s1 + $0x2a78] sm:$0xff]  ;;  %v1419_v30 = vld [vmem:[%s12141_s1 + $0x2af0] sm:$0xff] }
 0x2b2   :  { %6991 = vmatprep.subr.mxu0 %v1353_v31  ;;  %7026 = vmatprep.subr.mxu1 %v1385_v32  ;;  %v1436_v29 = vld [vmem:[%s12141_s1 + $0x2b78] sm:$0xff]  ;;  %v1451_v31 = vld [vmem:[%s12141_s1 + $0x2bf0] sm:$0xff] }
 0x2b3   :  { %6992 = vmatpush3.msra.mxu0 %v1337_v33  ;;  %7027 = vmatpush3.msra.mxu1 %v1369_v34  ;;  %v1403_v32 = vld [vmem:[%s12141_s1 + $0x2a70] sm:$0xff]  ;;  %v1418_v34 = vld [vmem:[%s12141_s1 + $0x2ae8] sm:$0xff] }
 0x2b4   :  { %6993 = vmatprep.subr.mxu0 %v1352_v35  ;;  %7028 = vmatprep.subr.mxu1 %v1384_v36  ;;  %v1435_v33 = vld [vmem:[%s12141_s1 + $0x2b70] sm:$0xff]  ;;  %v1450_v35 = vld [vmem:[%s12141_s1 + $0x2be8] sm:$0xff] }
 0x2b5   :  { %6994 = vmatpush3.msra.mxu0 %v1336_v37  ;;  %7029 = vmatpush3.msra.mxu1 %v1368_v38  ;;  %v1402_v36 = vld [vmem:[%s12141_s1 + $0x2a68] sm:$0xff]  ;;  %v1417_v38 = vld [vmem:[%s12141_s1 + $0x2ae0] sm:$0xff] }
 0x2b6   :  { %6995 = vmatprep.subr.mxu0 %v1351_v39  ;;  %7030 = vmatprep.subr.mxu1 %v1383_v40  ;;  %v1434_v37 = vld [vmem:[%s12141_s1 + $0x2b68] sm:$0xff]  ;;  %v1449_v39 = vld [vmem:[%s12141_s1 + $0x2be0] sm:$0xff] }
 0x2b7   :  { %6996 = vmatpush3.msra.mxu0 %v1335_v41  ;;  %7031 = vmatpush3.msra.mxu1 %v1367_v42  ;;  %v1401_v40 = vld [vmem:[%s12141_s1 + $0x2a60] sm:$0xff]  ;;  %v1416_v42 = vld [vmem:[%s12141_s1 + $0x2ad8] sm:$0xff] }
 0x2b8   :  { %6997 = vmatprep.subr.mxu0 %v1350_v43  ;;  %7032 = vmatprep.subr.mxu1 %v1382_v44  ;;  %v1433_v41 = vld [vmem:[%s12141_s1 + $0x2b60] sm:$0xff]  ;;  %v1448_v43 = vld [vmem:[%s12141_s1 + $0x2bd8] sm:$0xff] }
 0x2b9   :  { %6998 = vmatpush3.msra.mxu0 %v1334_v45  ;;  %7033 = vmatpush3.msra.mxu1 %v1366_v46  ;;  %v1400_v44 = vld [vmem:[%s12141_s1 + $0x2a58] sm:$0xff]  ;;  %v1415_v46 = vld [vmem:[%s12141_s1 + $0x2ad0] sm:$0xff] }
 0x2ba   :  { %6999 = vmatprep.subr.mxu0 %v1349_v47  ;;  %7034 = vmatprep.subr.mxu1 %v1381_v48  ;;  %v1432_v45 = vld [vmem:[%s12141_s1 + $0x2b58] sm:$0xff]  ;;  %v1447_v47 = vld [vmem:[%s12141_s1 + $0x2bd0] sm:$0xff] }
 0x2bb   :  { %7000 = vmatpush3.msra.mxu0 %v1333_v49  ;;  %7035 = vmatpush3.msra.mxu1 %v1365_v50  ;;  %v1399_v48 = vld [vmem:[%s12141_s1 + $0x2a50] sm:$0xff]  ;;  %v1414_v50 = vld [vmem:[%s12141_s1 + $0x2ac8] sm:$0xff] }
 0x2bc   :  { %7001 = vmatprep.subr.mxu0 %v1348_v52  ;;  %7036 = vmatprep.subr.mxu1 %v1380_v53  ;;  %v1431_v49 = vld [vmem:[%s12141_s1 + $0x2b50] sm:$0xff]  ;;  %v1446_v52 = vld [vmem:[%s12141_s1 + $0x2bc8] sm:$0xff] }
 0x2bd   :  { %7002 = vmatpush3.msra.mxu0 %v1332_v54  ;;  %7037 = vmatpush3.msra.mxu1 %v1364_v55  ;;  %v1398_v53 = vld [vmem:[%s12141_s1 + $0x2a48] sm:$0xff]  ;;  %v1413_v55 = vld [vmem:[%s12141_s1 + $0x2ac0] sm:$0xff] }
 0x2be   :  { %7003 = vmatprep.subr.mxu0 %v1347_v56  ;;  %7038 = vmatprep.subr.mxu1 %v1379_v57  ;;  %v1430_v54 = vld [vmem:[%s12141_s1 + $0x2b48] sm:$0xff]  ;;  %v1445_v56 = vld [vmem:[%s12141_s1 + $0x2bc0] sm:$0xff] }
 0x2bf   :  { %7004 = vmatpush3.msra.mxu0 %v1331_v58  ;;  %7039 = vmatpush3.msra.mxu1 %v1363_v59  ;;  %v1397_v57 = vld [vmem:[%s12141_s1 + $0x2a40] sm:$0xff]  ;;  %v1412_v59 = vld [vmem:[%s12141_s1 + $0x2ab8] sm:$0xff] }
 0x2c0   :  { %7005 = vmatprep.subr.mxu0 %v1346_v60  ;;  %7040 = vmatprep.subr.mxu1 %v1378_v61  ;;  %v1429_v58 = vld [vmem:[%s12141_s1 + $0x2b40] sm:$0xff]  ;;  %v1444_v60 = vld [vmem:[%s12141_s1 + $0x2bb8] sm:$0xff] }
 0x2c1   :  { %7006 = vmatpush3.msra.mxu0 %v1330_v62  ;;  %7041 = vmatpush3.msra.mxu1 %v1362_v63  ;;  %v1396_v61 = vld [vmem:[%s12141_s1 + $0x2a38] sm:$0xff]  ;;  %v1411_v63 = vld [vmem:[%s12141_s1 + $0x2ab0] sm:$0xff] }
 0x2c2   :  { %7007 = vmatprep.subr.mxu0 %v1345_v1  ;;  %7042 = vmatprep.subr.mxu1 %v1377_v2  ;;  %v1428_v62 = vld [vmem:[%s12141_s1 + $0x2b38] sm:$0xff]  ;;  %v1395_v1 = vld [vmem:[%s12141_s1 + $0x2a30] sm:$0xff] }
 0x2c3   :  { %7008 = vmatpush3.msra.mxu0 %v1329_v3  ;;  %7043 = vmatpush3.msra.mxu1 %v1361_v4  ;;  %v1427_v2 = vld [vmem:[%s12141_s1 + $0x2b30] sm:$0xff]  ;;  %v1410_v3 = vld [vmem:[%s12141_s1 + $0x2aa8] sm:$0xff] }
 0x2c4   :  { %7009 = vmatprep.subr.mxu0 %v1344_v5  ;;  %7044 = vmatprep.subr.mxu1 %v1376_v6  ;;  %v1442_v4 = vld [vmem:[%s12141_s1 + $0x2ba8] sm:$0xff] }
 0x2c5   :  { %7010 = vmatpush3.msra.mxu0 %v1328_v8  ;;  %7045 = vmatpush3.msra.mxu1 %v1360_v9  ;;  %v1394_v5 = vld [vmem:[%s12141_s1 + $0x2a28] sm:$0xff]  ;;  %v1409_v8 = vld [vmem:[%s12141_s1 + $0x2aa0] sm:$0xff] }
 0x2c6   :  { %7011 = vmatprep.subr.mxu0 %v1343_v10  ;;  %7046 = vmatprep.subr.mxu1 %v1375_v11  ;;  %v1426_v6 = vld [vmem:[%s12141_s1 + $0x2b28] sm:$0xff]  ;;  %v1441_v9 = vld [vmem:[%s12141_s1 + $0x2ba0] sm:$0xff] }
 0x2c7   :  { %7012 = vmatpush3.msra.mxu0 %v1327_v13  ;;  %7047 = vmatpush3.msra.mxu1 %v1359_v14  ;;  %v1393_v10 = vld [vmem:[%s12141_s1 + $0x2a20] sm:$0xff]  ;;  %v1440_v13 = vld [vmem:[%s12141_s1 + $0x2b98] sm:$0xff]  ;;  %v1969_v14 = vcombine.high %v42_v7, %v42_v7 }
 0x2c8   :  { %7013 = vmatprep.subr.mxu0 %v1342_v15  ;;  %7048 = vmatprep.subr.mxu1 %v1374_v16  ;;  %v1425_v11 = vld [vmem:[%s12141_s1 + $0x2b20] sm:$0xff]  ;;  %v1392_v15 = vld [vmem:[%s12141_s1 + $0x2a18] sm:$0xff] }
 0x2c9   :  { %7014 = vmatpush3.msra.mxu0 %v1326_v18  ;;  %7049 = vmatpush3.msra.mxu1 %v1358_v19  ;;  %v1424_v16 = vld [vmem:[%s12141_s1 + $0x2b18] sm:$0xff]  ;;  %v1439_v18 = vld [vmem:[%s12141_s1 + $0x2b90] sm:$0xff]  ;;  %v1976_v19 = vrot.slane %v42_v7, %v7515_v51 }
 0x2ca   :  { %7015 = vmatprep.subr.mxu0 %v1341_v20  ;;  %7050 = vmatprep.subr.mxu1 %v1373_v21  ;;  %v1391_v20 = vld [vmem:[%s12141_s1 + $0x2a10] sm:$0xff] }
 0x2cb   :  { %7016 = vmatpush3.msra.mxu0 %v1325_v23  ;;  %4980 = vmatprep.mubr.f32.mxu0 %v1967_v22  ;;  %v1423_v21 = vld [vmem:[%s12141_s1 + $0x2b10] sm:$0xff]  ;;  %v1406_v22 = vld [vmem:[%s12141_s1 + $0x2a88] sm:$0xff] }
 0x2cc   :  { %7051 = vmatpush3.msra.mxu1 %v1357_v24  ;;  %4981 = vmatmul.mubr.f32.vlgmr.msra.gmra.mxu0 %v1959_v12  ;;  %v1408_v12 = vld [vmem:[%s12141_s1 + $0x2a98] sm:$0xff]  ;;  %v1438_v23 = vld [vmem:[%s12141_s1 + $0x2b88] sm:$0xff]  ;;  %v1983_v24 = vrot.slane %v1969_v14, %v7515_v51  ;;  %v1507_v7 = vld [vmem:[%s12141_s1 + $0x2db0] sm:$0xff] }
 0x2cd   :  { %5050 = vmatprep.mubr.f32.mxu1 %v1968_v25  ;;  %7055 = vmatprep.subr.mxu0 %v1420_v26  ;;  %v1390_v25 = vld [vmem:[%s12141_s1 + $0x2a08] sm:$0xff]  ;;  %v43_v14 = vld [vmem:[%s12140_s0 + $0xb0] sm:$0xff] }
 0x2ce   :  { %7090 = vmatprep.subr.mxu1 %v1452_v27  ;;  %5051 = vmatmul.mubr.f32.vlgmr.msra.gmra.mxu1 %v1966_v17  ;;  %v1407_v17 = vld [vmem:[%s12141_s1 + $0x2a90] sm:$0xff]  ;;  %v1422_v26 = vld [vmem:[%s12141_s1 + $0x2b08] sm:$0xff]  ;;  %v1405_v27 = vld [vmem:[%s12141_s1 + $0x2a80] sm:$0xff] }
 0x2cf   :  { %7056 = vmatpush3.msra.mxu0 %v1404_v28  ;;  %7091 = vmatpush3.msra.mxu1 %v1436_v29  ;;  %v1437_v28 = vld [vmem:[%s12141_s1 + $0x2b80] sm:$0xff]  ;;  %v1984_v29 = vcombine.high %v1976_v19, %v1976_v19 }
 0x2d0   :  { %7057 = vmatprep.subr.mxu0 %v1419_v30  ;;  %7092 = vmatprep.subr.mxu1 %v1451_v31  ;;  %v1389_v30 = vld [vmem:[%s12141_s1 + $0x2a00] sm:$0xff] }
 0x2d1   :  { %7058 = vmatpush3.msra.mxu0 %v1403_v32  ;;  %7093 = vmatpush3.msra.mxu1 %v1435_v33  ;;  %v1421_v31 = vld [vmem:[%s12141_s1 + $0x2b00] sm:$0xff]  ;;  %v1985_v32 = vcombine.high %v1983_v24, %v1983_v24  ;;  %v1484_v33 = vld [vmem:[%s12141_s1 + $0x2cf8] sm:$0xff] }
 0x2d2   :  { %7059 = vmatprep.subr.mxu0 %v1418_v34  ;;  %7094 = vmatprep.subr.mxu1 %v1450_v35  ;;  %v1516_v34 = vld [vmem:[%s12141_s1 + $0x2df8] sm:$0xff] }
 0x2d3   :  { %7060 = vmatpush3.msra.mxu0 %v1402_v36  ;;  %7095 = vmatpush3.msra.mxu1 %v1434_v37  ;;  %v1468_v35 = vld [vmem:[%s12141_s1 + $0x2c78] sm:$0xff]  ;;  %v1483_v37 = vld [vmem:[%s12141_s1 + $0x2cf0] sm:$0xff] }
 0x2d4   :  { %7061 = vmatprep.subr.mxu0 %v1417_v38  ;;  %7096 = vmatprep.subr.mxu1 %v1449_v39  ;;  %v1500_v36 = vld [vmem:[%s12141_s1 + $0x2d78] sm:$0xff]  ;;  %v1515_v38 = vld [vmem:[%s12141_s1 + $0x2df0] sm:$0xff] }
 0x2d5   :  { %7062 = vmatpush3.msra.mxu0 %v1401_v40  ;;  %7097 = vmatpush3.msra.mxu1 %v1433_v41  ;;  %v1467_v39 = vld [vmem:[%s12141_s1 + $0x2c70] sm:$0xff]  ;;  %v1482_v41 = vld [vmem:[%s12141_s1 + $0x2ce8] sm:$0xff] }
 0x2d6   :  { %7063 = vmatprep.subr.mxu0 %v1416_v42  ;;  %7098 = vmatprep.subr.mxu1 %v1448_v43  ;;  %v1499_v40 = vld [vmem:[%s12141_s1 + $0x2d70] sm:$0xff]  ;;  %v1514_v42 = vld [vmem:[%s12141_s1 + $0x2de8] sm:$0xff] }
 0x2d7   :  { %7064 = vmatpush3.msra.mxu0 %v1400_v44  ;;  %7099 = vmatpush3.msra.mxu1 %v1432_v45  ;;  %v1466_v43 = vld [vmem:[%s12141_s1 + $0x2c68] sm:$0xff]  ;;  %v1481_v45 = vld [vmem:[%s12141_s1 + $0x2ce0] sm:$0xff] }
 0x2d8   :  { %7065 = vmatprep.subr.mxu0 %v1415_v46  ;;  %7100 = vmatprep.subr.mxu1 %v1447_v47  ;;  %v1498_v44 = vld [vmem:[%s12141_s1 + $0x2d68] sm:$0xff]  ;;  %v1513_v46 = vld [vmem:[%s12141_s1 + $0x2de0] sm:$0xff] }
 0x2d9   :  { %7066 = vmatpush3.msra.mxu0 %v1399_v48  ;;  %7101 = vmatpush3.msra.mxu1 %v1431_v49  ;;  %v1465_v47 = vld [vmem:[%s12141_s1 + $0x2c60] sm:$0xff]  ;;  %v1480_v49 = vld [vmem:[%s12141_s1 + $0x2cd8] sm:$0xff] }
 0x2da   :  { %7067 = vmatprep.subr.mxu0 %v1414_v50  ;;  %7102 = vmatprep.subr.mxu1 %v1446_v52  ;;  %v1497_v48 = vld [vmem:[%s12141_s1 + $0x2d60] sm:$0xff]  ;;  %v1512_v50 = vld [vmem:[%s12141_s1 + $0x2dd8] sm:$0xff] }
 0x2db   :  { %7068 = vmatpush3.msra.mxu0 %v1398_v53  ;;  %7103 = vmatpush3.msra.mxu1 %v1430_v54  ;;  %v1464_v52 = vld [vmem:[%s12141_s1 + $0x2c58] sm:$0xff]  ;;  %v1479_v54 = vld [vmem:[%s12141_s1 + $0x2cd0] sm:$0xff] }
 0x2dc   :  { %7069 = vmatprep.subr.mxu0 %v1413_v55  ;;  %7104 = vmatprep.subr.mxu1 %v1445_v56  ;;  %v1496_v53 = vld [vmem:[%s12141_s1 + $0x2d58] sm:$0xff]  ;;  %v1511_v55 = vld [vmem:[%s12141_s1 + $0x2dd0] sm:$0xff] }
 0x2dd   :  { %7070 = vmatpush3.msra.mxu0 %v1397_v57  ;;  %7105 = vmatpush3.msra.mxu1 %v1429_v58  ;;  %v1463_v56 = vld [vmem:[%s12141_s1 + $0x2c50] sm:$0xff]  ;;  %v1478_v58 = vld [vmem:[%s12141_s1 + $0x2cc8] sm:$0xff] }
 0x2de   :  { %7071 = vmatprep.subr.mxu0 %v1412_v59  ;;  %7106 = vmatprep.subr.mxu1 %v1444_v60  ;;  %v1495_v57 = vld [vmem:[%s12141_s1 + $0x2d50] sm:$0xff]  ;;  %v1510_v59 = vld [vmem:[%s12141_s1 + $0x2dc8] sm:$0xff] }
 0x2df   :  { %7072 = vmatpush3.msra.mxu0 %v1396_v61  ;;  %7107 = vmatpush3.msra.mxu1 %v1428_v62  ;;  %v1462_v60 = vld [vmem:[%s12141_s1 + $0x2c48] sm:$0xff]  ;;  %v1477_v62 = vld [vmem:[%s12141_s1 + $0x2cc0] sm:$0xff] }
 0x2e0   :  { %7073 = vmatprep.subr.mxu0 %v1411_v63  ;;  %7108 = vmatprep.subr.mxu1 %v1443_v0  ;;  %v1494_v61 = vld [vmem:[%s12141_s1 + $0x2d48] sm:$0xff]  ;;  %v1509_v63 = vld [vmem:[%s12141_s1 + $0x2dc0] sm:$0xff] }
 0x2e1   :  { %7074 = vmatpush3.msra.mxu0 %v1395_v1  ;;  %7109 = vmatpush3.msra.mxu1 %v1427_v2  ;;  %v1461_v0 = vld [vmem:[%s12141_s1 + $0x2c40] sm:$0xff]  ;;  %v1476_v2 = vld [vmem:[%s12141_s1 + $0x2cb8] sm:$0xff] }
 0x2e2   :  { %7075 = vmatprep.subr.mxu0 %v1410_v3  ;;  %7110 = vmatprep.subr.mxu1 %v1442_v4  ;;  %v1493_v1 = vld [vmem:[%s12141_s1 + $0x2d40] sm:$0xff]  ;;  %v1508_v3 = vld [vmem:[%s12141_s1 + $0x2db8] sm:$0xff] }
 0x2e3   :  { %7076 = vmatpush3.msra.mxu0 %v1394_v5  ;;  %7111 = vmatpush3.msra.mxu1 %v1426_v6  ;;  %v1460_v4 = vld [vmem:[%s12141_s1 + $0x2c38] sm:$0xff]  ;;  %v1475_v6 = vld [vmem:[%s12141_s1 + $0x2cb0] sm:$0xff] }
 0x2e4   :  { %7077 = vmatprep.subr.mxu0 %v1409_v8  ;;  %7112 = vmatprep.subr.mxu1 %v1441_v9  ;;  %v1492_v5 = vld [vmem:[%s12141_s1 + $0x2d38] sm:$0xff]  ;;  %v1459_v8 = vld [vmem:[%s12141_s1 + $0x2c30] sm:$0xff] }
 0x2e5   :  { %7078 = vmatpush3.msra.mxu0 %v1393_v10  ;;  %7113 = vmatpush3.msra.mxu1 %v1425_v11  ;;  %v1491_v9 = vld [vmem:[%s12141_s1 + $0x2d30] sm:$0xff]  ;;  %v1474_v10 = vld [vmem:[%s12141_s1 + $0x2ca8] sm:$0xff] }
 0x2e6   :  { %7079 = vmatprep.subr.mxu0 %v1408_v12  ;;  %7114 = vmatprep.subr.mxu1 %v1440_v13  ;;  %v1506_v11 = vld [vmem:[%s12141_s1 + $0x2da8] sm:$0xff] }
 0x2e7   :  { %7080 = vmatpush3.msra.mxu0 %v1392_v15  ;;  %7115 = vmatpush3.msra.mxu1 %v1424_v16  ;;  %v1458_v12 = vld [vmem:[%s12141_s1 + $0x2c28] sm:$0xff]  ;;  %v1473_v15 = vld [vmem:[%s12141_s1 + $0x2ca0] sm:$0xff] }
 0x2e8   :  { %7081 = vmatprep.subr.mxu0 %v1407_v17  ;;  %7116 = vmatprep.subr.mxu1 %v1439_v18  ;;  %v1490_v13 = vld [vmem:[%s12141_s1 + $0x2d28] sm:$0xff]  ;;  %v1505_v16 = vld [vmem:[%s12141_s1 + $0x2da0] sm:$0xff] }
 0x2e9   :  { %7082 = vmatpush3.msra.mxu0 %v1391_v20  ;;  %7117 = vmatpush3.msra.mxu1 %v1423_v21  ;;  %v1457_v17 = vld [vmem:[%s12141_s1 + $0x2c20] sm:$0xff]  ;;  %v1504_v20 = vld [vmem:[%s12141_s1 + $0x2d98] sm:$0xff]  ;;  %v1986_v21 = vcombine.high %v43_v14, %v43_v14 }
 0x2ea   :  { %7083 = vmatprep.subr.mxu0 %v1406_v22  ;;  %7118 = vmatprep.subr.mxu1 %v1438_v23  ;;  %v1489_v18 = vld [vmem:[%s12141_s1 + $0x2d20] sm:$0xff]  ;;  %v1456_v22 = vld [vmem:[%s12141_s1 + $0x2c18] sm:$0xff] }
 0x2eb   :  { %7084 = vmatpush3.msra.mxu0 %v1390_v25  ;;  %7119 = vmatpush3.msra.mxu1 %v1422_v26  ;;  %v1488_v23 = vld [vmem:[%s12141_s1 + $0x2d18] sm:$0xff]  ;;  %v1503_v25 = vld [vmem:[%s12141_s1 + $0x2d90] sm:$0xff]  ;;  %v1993_v26 = vrot.slane %v43_v14, %v7515_v51 }
 0x2ec   :  { %7085 = vmatprep.subr.mxu0 %v1405_v27  ;;  %7120 = vmatprep.subr.mxu1 %v1437_v28  ;;  %v1455_v27 = vld [vmem:[%s12141_s1 + $0x2c10] sm:$0xff] }
 0x2ed   :  { %7086 = vmatpush3.msra.mxu0 %v1389_v30  ;;  %5120 = vmatprep.mubr.f32.mxu0 %v1984_v29  ;;  %v1487_v28 = vld [vmem:[%s12141_s1 + $0x2d10] sm:$0xff]  ;;  %v1470_v29 = vld [vmem:[%s12141_s1 + $0x2c88] sm:$0xff] }
 0x2ee   :  { %7121 = vmatpush3.msra.mxu1 %v1421_v31  ;;  %5121 = vmatmul.mubr.f32.vlgmr.msra.gmra.mxu0 %v1976_v19  ;;  %v1472_v19 = vld [vmem:[%s12141_s1 + $0x2c98] sm:$0xff]  ;;  %v1502_v30 = vld [vmem:[%s12141_s1 + $0x2d88] sm:$0xff]  ;;  %v2000_v31 = vrot.slane %v1986_v21, %v7515_v51  ;;  %v1571_v14 = vld [vmem:[%s12141_s1 + $0x2fb0] sm:$0xff] }
 0x2ef   :  { %5190 = vmatprep.mubr.f32.mxu1 %v1985_v32  ;;  %7125 = vmatprep.subr.mxu0 %v1484_v33  ;;  %v1454_v32 = vld [vmem:[%s12141_s1 + $0x2c08] sm:$0xff] }
 0x2f0   :  { %7160 = vmatprep.subr.mxu1 %v1516_v34  ;;  %5191 = vmatmul.mubr.f32.vlgmr.msra.gmra.mxu1 %v1983_v24  ;;  %v1471_v24 = vld [vmem:[%s12141_s1 + $0x2c90] sm:$0xff]  ;;  %v1486_v33 = vld [vmem:[%s12141_s1 + $0x2d08] sm:$0xff]  ;;  %v1469_v34 = vld [vmem:[%s12141_s1 + $0x2c80] sm:$0xff] }
 0x2f1   :  { %7126 = vmatpush3.msra.mxu0 %v1468_v35  ;;  %7161 = vmatpush3.msra.mxu1 %v1500_v36  ;;  %v1501_v35 = vld [vmem:[%s12141_s1 + $0x2d80] sm:$0xff]  ;;  %v2001_v36 = vcombine.high %v1993_v26, %v1993_v26  ;;  %v1554_v21 = vld [vmem:[%s12141_s1 + $0x2f28] sm:$0xff] }
 0x2f2   :  { %7127 = vmatprep.subr.mxu0 %v1483_v37  ;;  %7162 = vmatprep.subr.mxu1 %v1515_v38  ;;  %v1453_v37 = vld [vmem:[%s12141_s1 + $0x2c00] sm:$0xff] }
 0x2f3   :  { %7128 = vmatpush3.msra.mxu0 %v1467_v39  ;;  %7163 = vmatpush3.msra.mxu1 %v1499_v40  ;;  %v1485_v38 = vld [vmem:[%s12141_s1 + $0x2d00] sm:$0xff]  ;;  %v2002_v39 = vcombine.high %v2000_v31, %v2000_v31  ;;  %v1548_v40 = vld [vmem:[%s12141_s1 + $0x2ef8] sm:$0xff] }
 0x2f4   :  { %7129 = vmatprep.subr.mxu0 %v1482_v41  ;;  %7164 = vmatprep.subr.mxu1 %v1514_v42  ;;  %v1580_v41 = vld [vmem:[%s12141_s1 + $0x2ff8] sm:$0xff] }
 0x2f5   :  { %7130 = vmatpush3.msra.mxu0 %v1466_v43  ;;  %7165 = vmatpush3.msra.mxu1 %v1498_v44  ;;  %v1532_v42 = vld [vmem:[%s12141_s1 + $0x2e78] sm:$0xff]  ;;  %v1547_v44 = vld [vmem:[%s12141_s1 + $0x2ef0] sm:$0xff] }
 0x2f6   :  { %7131 = vmatprep.subr.mxu0 %v1481_v45  ;;  %7166 = vmatprep.subr.mxu1 %v1513_v46  ;;  %v1564_v43 = vld [vmem:[%s12141_s1 + $0x2f78] sm:$0xff]  ;;  %v1579_v45 = vld [vmem:[%s12141_s1 + $0x2ff0] sm:$0xff] }
 0x2f7   :  { %7132 = vmatpush3.msra.mxu0 %v1465_v47  ;;  %7167 = vmatpush3.msra.mxu1 %v1497_v48  ;;  %v1531_v46 = vld [vmem:[%s12141_s1 + $0x2e70] sm:$0xff]  ;;  %v1546_v48 = vld [vmem:[%s12141_s1 + $0x2ee8] sm:$0xff] }
 0x2f8   :  { %7133 = vmatprep.subr.mxu0 %v1480_v49  ;;  %7168 = vmatprep.subr.mxu1 %v1512_v50  ;;  %v1563_v47 = vld [vmem:[%s12141_s1 + $0x2f70] sm:$0xff]  ;;  %v1578_v49 = vld [vmem:[%s12141_s1 + $0x2fe8] sm:$0xff] }
 0x2f9   :  { %7134 = vmatpush3.msra.mxu0 %v1464_v52  ;;  %7169 = vmatpush3.msra.mxu1 %v1496_v53  ;;  %v1530_v50 = vld [vmem:[%s12141_s1 + $0x2e68] sm:$0xff]  ;;  %v1545_v53 = vld [vmem:[%s12141_s1 + $0x2ee0] sm:$0xff] }
 0x2fa   :  { %7135 = vmatprep.subr.mxu0 %v1479_v54  ;;  %7170 = vmatprep.subr.mxu1 %v1511_v55  ;;  %v1562_v52 = vld [vmem:[%s12141_s1 + $0x2f68] sm:$0xff]  ;;  %v1577_v54 = vld [vmem:[%s12141_s1 + $0x2fe0] sm:$0xff] }
 0x2fb   :  { %7136 = vmatpush3.msra.mxu0 %v1463_v56  ;;  %7171 = vmatpush3.msra.mxu1 %v1495_v57  ;;  %v1529_v55 = vld [vmem:[%s12141_s1 + $0x2e60] sm:$0xff]  ;;  %v1544_v57 = vld [vmem:[%s12141_s1 + $0x2ed8] sm:$0xff] }
 0x2fc   :  { %7137 = vmatprep.subr.mxu0 %v1478_v58  ;;  %7172 = vmatprep.subr.mxu1 %v1510_v59  ;;  %v1561_v56 = vld [vmem:[%s12141_s1 + $0x2f60] sm:$0xff]  ;;  %v1576_v58 = vld [vmem:[%s12141_s1 + $0x2fd8] sm:$0xff] }
 0x2fd   :  { %7138 = vmatpush3.msra.mxu0 %v1462_v60  ;;  %7173 = vmatpush3.msra.mxu1 %v1494_v61  ;;  %v1528_v59 = vld [vmem:[%s12141_s1 + $0x2e58] sm:$0xff]  ;;  %v1543_v61 = vld [vmem:[%s12141_s1 + $0x2ed0] sm:$0xff] }
 0x2fe   :  { %7139 = vmatprep.subr.mxu0 %v1477_v62  ;;  %7174 = vmatprep.subr.mxu1 %v1509_v63  ;;  %v1560_v60 = vld [vmem:[%s12141_s1 + $0x2f58] sm:$0xff]  ;;  %v1575_v62 = vld [vmem:[%s12141_s1 + $0x2fd0] sm:$0xff] }
 0x2ff   :  { %7140 = vmatpush3.msra.mxu0 %v1461_v0  ;;  %7175 = vmatpush3.msra.mxu1 %v1493_v1  ;;  %v1527_v63 = vld [vmem:[%s12141_s1 + $0x2e50] sm:$0xff]  ;;  %v1542_v1 = vld [vmem:[%s12141_s1 + $0x2ec8] sm:$0xff] }
 0x300   :  { %7141 = vmatprep.subr.mxu0 %v1476_v2  ;;  %7176 = vmatprep.subr.mxu1 %v1508_v3  ;;  %v1559_v0 = vld [vmem:[%s12141_s1 + $0x2f50] sm:$0xff]  ;;  %v1574_v2 = vld [vmem:[%s12141_s1 + $0x2fc8] sm:$0xff] }
 0x301   :  { %7142 = vmatpush3.msra.mxu0 %v1460_v4  ;;  %7177 = vmatpush3.msra.mxu1 %v1492_v5  ;;  %v1526_v3 = vld [vmem:[%s12141_s1 + $0x2e48] sm:$0xff]  ;;  %v1541_v5 = vld [vmem:[%s12141_s1 + $0x2ec0] sm:$0xff] }
 0x302   :  { %7143 = vmatprep.subr.mxu0 %v1475_v6  ;;  %7178 = vmatprep.subr.mxu1 %v1507_v7  ;;  %v1558_v4 = vld [vmem:[%s12141_s1 + $0x2f48] sm:$0xff]  ;;  %v1573_v6 = vld [vmem:[%s12141_s1 + $0x2fc0] sm:$0xff] }
 0x303   :  { %7144 = vmatpush3.msra.mxu0 %v1459_v8  ;;  %7179 = vmatpush3.msra.mxu1 %v1491_v9  ;;  %v1525_v7 = vld [vmem:[%s12141_s1 + $0x2e40] sm:$0xff]  ;;  %v1540_v9 = vld [vmem:[%s12141_s1 + $0x2eb8] sm:$0xff] }
 0x304   :  { %7145 = vmatprep.subr.mxu0 %v1474_v10  ;;  %7180 = vmatprep.subr.mxu1 %v1506_v11  ;;  %v1557_v8 = vld [vmem:[%s12141_s1 + $0x2f40] sm:$0xff]  ;;  %v1572_v10 = vld [vmem:[%s12141_s1 + $0x2fb8] sm:$0xff] }
 0x305   :  { %7146 = vmatpush3.msra.mxu0 %v1458_v12  ;;  %7181 = vmatpush3.msra.mxu1 %v1490_v13  ;;  %v1524_v11 = vld [vmem:[%s12141_s1 + $0x2e38] sm:$0xff]  ;;  %v1539_v13 = vld [vmem:[%s12141_s1 + $0x2eb0] sm:$0xff] }
 0x306   :  { %7147 = vmatprep.subr.mxu0 %v1473_v15  ;;  %7182 = vmatprep.subr.mxu1 %v1505_v16  ;;  %v1556_v12 = vld [vmem:[%s12141_s1 + $0x2f38] sm:$0xff]  ;;  %v1523_v15 = vld [vmem:[%s12141_s1 + $0x2e30] sm:$0xff] }
 0x307   :  { %7148 = vmatpush3.msra.mxu0 %v1457_v17  ;;  %7183 = vmatpush3.msra.mxu1 %v1489_v18  ;;  %v1555_v16 = vld [vmem:[%s12141_s1 + $0x2f30] sm:$0xff]  ;;  %v1538_v17 = vld [vmem:[%s12141_s1 + $0x2ea8] sm:$0xff] }
 0x308   :  { %7149 = vmatprep.subr.mxu0 %v1472_v19  ;;  %7184 = vmatprep.subr.mxu1 %v1504_v20  ;;  %v1570_v18 = vld [vmem:[%s12141_s1 + $0x2fa8] sm:$0xff]  ;;  %v44_v19 = vld [vmem:[%s12140_s0 + $0xb8] sm:$0xff] }
 0x309   :  { %7150 = vmatpush3.msra.mxu0 %v1456_v22  ;;  %7185 = vmatpush3.msra.mxu1 %v1488_v23  ;;  %v1522_v20 = vld [vmem:[%s12141_s1 + $0x2e28] sm:$0xff]  ;;  %v1537_v22 = vld [vmem:[%s12141_s1 + $0x2ea0] sm:$0xff] }
 0x30a   :  { %7151 = vmatprep.subr.mxu0 %v1471_v24  ;;  %7186 = vmatprep.subr.mxu1 %v1503_v25  ;;  %v1569_v23 = vld [vmem:[%s12141_s1 + $0x2fa0] sm:$0xff] }
 0x30b   :  { %7152 = vmatpush3.msra.mxu0 %v1455_v27  ;;  %7187 = vmatpush3.msra.mxu1 %v1487_v28  ;;  %v1521_v24 = vld [vmem:[%s12141_s1 + $0x2e20] sm:$0xff]  ;;  %v1536_v27 = vld [vmem:[%s12141_s1 + $0x2e98] sm:$0xff] }
 0x30c   :  { %7153 = vmatprep.subr.mxu0 %v1470_v29  ;;  %7188 = vmatprep.subr.mxu1 %v1502_v30  ;;  %v1553_v25 = vld [vmem:[%s12141_s1 + $0x2f20] sm:$0xff]  ;;  %v1568_v28 = vld [vmem:[%s12141_s1 + $0x2f98] sm:$0xff] }
 0x30d   :  { %7154 = vmatpush3.msra.mxu0 %v1454_v32  ;;  %7189 = vmatpush3.msra.mxu1 %v1486_v33  ;;  %v1520_v29 = vld [vmem:[%s12141_s1 + $0x2e18] sm:$0xff]  ;;  %v1567_v32 = vld [vmem:[%s12141_s1 + $0x2f90] sm:$0xff]  ;;  %v2010_v33 = vrot.slane %v44_v19, %v7515_v51 }
 0x30e   :  { %7155 = vmatprep.subr.mxu0 %v1469_v34  ;;  %7190 = vmatprep.subr.mxu1 %v1501_v35  ;;  %v1552_v30 = vld [vmem:[%s12141_s1 + $0x2f18] sm:$0xff]  ;;  %v1519_v34 = vld [vmem:[%s12141_s1 + $0x2e10] sm:$0xff] }
 0x30f   :  { %7156 = vmatpush3.msra.mxu0 %v1453_v37  ;;  %5260 = vmatprep.mubr.f32.mxu0 %v2001_v36  ;;  %v1551_v35 = vld [vmem:[%s12141_s1 + $0x2f10] sm:$0xff]  ;;  %v1534_v37 = vld [vmem:[%s12141_s1 + $0x2e88] sm:$0xff] }
 0x310   :  { %7191 = vmatpush3.msra.mxu1 %v1485_v38  ;;  %5261 = vmatmul.mubr.f32.vlgmr.msra.gmra.mxu0 %v1993_v26  ;;  %v2003_v26 = vcombine.high %v44_v19, %v44_v19  ;;  %v1566_v38 = vld [vmem:[%s12141_s1 + $0x2f88] sm:$0xff] }
 0x311   :  { %5330 = vmatprep.mubr.f32.mxu1 %v2002_v39  ;;  %7195 = vmatprep.subr.mxu0 %v1548_v40  ;;  %v1518_v39 = vld [vmem:[%s12141_s1 + $0x2e08] sm:$0xff]  ;;  %v1533_v40 = vld [vmem:[%s12141_s1 + $0x2e80] sm:$0xff] }
 0x312   :  { %7230 = vmatprep.subr.mxu1 %v1580_v41  ;;  %5331 = vmatmul.mubr.f32.vlgmr.msra.gmra.mxu1 %v2000_v31  ;;  %v1535_v31 = vld [vmem:[%s12141_s1 + $0x2e90] sm:$0xff]  ;;  %v2017_v36 = vrot.slane %v2003_v26, %v7515_v51  ;;  %v1550_v51 = vld [vmem:[%s12141_s1 + $0x2f08] sm:$0xff]  ;;  %v1565_v41 = vld [vmem:[%s12141_s1 + $0x2f80] sm:$0xff] }
 0x313   :  { %7196 = vmatpush3.msra.mxu0 %v1532_v42  ;;  %7231 = vmatpush3.msra.mxu1 %v1564_v43  ;;  %v2018_v42 = vcombine.high %v2010_v33, %v2010_v33  ;;  %v1517_v43 = vld [vmem:[%s12141_s1 + $0x2e00] sm:$0xff] }
 0x314   :  { %7197 = vmatprep.subr.mxu0 %v1547_v44  ;;  %7232 = vmatprep.subr.mxu1 %v1579_v45  ;;  %v2019_v44 = vcombine.high %v2017_v36, %v2017_v36  ;;  %v1549_v45 = vld [vmem:[%s12141_s1 + $0x2f00] sm:$0xff] }
 0x315   :  { %7198 = vmatpush3.msra.mxu0 %v1531_v46  ;;  %7233 = vmatpush3.msra.mxu1 %v1563_v47  ;;  %v5484_v46 = vld [vmem:[%s12143_s3 + $0x38] sm:$0xff]  ;;  %v7344_v47 = vmov 0.0  }
 0x316   :  { %7199 = vmatprep.subr.mxu0 %v1546_v48  ;;  %7234 = vmatprep.subr.mxu1 %v1578_v49  ;;  %v5483_v48 = vld [vmem:[%s12143_s3 + $0x30] sm:$0xff]  ;;  %v5617_v49 = vpop.f32.mrf.mxu0 }
 0x317   :  { %7200 = vmatpush3.msra.mxu0 %v1530_v50  ;;  %7235 = vmatpush3.msra.mxu1 %v1562_v52  ;;  %v5652_v50 = vpop.f32.mrf.mxu1 }
 0x318   :  { %7201 = vmatprep.subr.mxu0 %v1545_v53  ;;  %7236 = vmatprep.subr.mxu1 %v1577_v54  ;;  %v5618_v52 = vpop.f32.mrf.mxu0 }
 0x319   :  { %7202 = vmatpush3.msra.mxu0 %v1529_v55  ;;  %7237 = vmatpush3.msra.mxu1 %v1561_v56  ;;  %v5619_v54 = vadd.f32 %v5618_v52, %v5617_v49  ;;  %v5582_v55 = vld [vmem:[%s12142_s2] ss:$0 sm:$0xff]  ;;  %v5653_v56 = vpop.f32.mrf.mxu1 }
 0x31a   :  { %7203 = vmatprep.subr.mxu0 %v1544_v57  ;;  %7238 = vmatprep.subr.mxu1 %v1576_v58  ;;  %v5687_v53 = vpop.f32.mrf.mxu0 }
 0x31b   :  { %7204 = vmatpush3.msra.mxu0 %v1528_v59  ;;  %7239 = vmatpush3.msra.mxu1 %v1560_v60  ;;  %v5722_v57 = vpop.f32.mrf.mxu1  ;;  %v2183_v59 = vadd.f32 %v5619_v54, %v5582_v55  ;;  %v5654_v60 = vadd.f32 %v5653_v56, %v5652_v50 }
 0x31c   :  { %7205 = vmatprep.subr.mxu0 %v1543_v61  ;;  %7240 = vmatprep.subr.mxu1 %v1575_v62  ;;  %v5688_v58 = vpop.f32.mrf.mxu0 }
 0x31d   :  { %7206 = vmatpush3.msra.mxu0 %v1527_v63  ;;  %7241 = vmatpush3.msra.mxu1 %v1559_v0  ;;  %v5689_v62 = vadd.f32 %v5688_v58, %v5687_v53  ;;  %v5723_v63 = vpop.f32.mrf.mxu1  ;;  %v2253_v0 = vadd.f32 %v5654_v60, %v2183_v59 }
 0x31e   :  { %7207 = vmatprep.subr.mxu0 %v1542_v1  ;;  %7242 = vmatprep.subr.mxu1 %v1574_v2  ;;  %v5757_v61 = vpop.f32.mrf.mxu0  ;;  %v5482_v1 = vld [vmem:[%s12143_s3 + $0x28] sm:$0xff] }
 0x31f   :  { %7208 = vmatpush3.msra.mxu0 %v1526_v3  ;;  %7243 = vmatpush3.msra.mxu1 %v1558_v4  ;;  %v5792_v2 = vpop.f32.mrf.mxu1  ;;  %v2323_v4 = vadd.f32 %v5689_v62, %v2253_v0 }
 0x320   :  { %7209 = vmatprep.subr.mxu0 %v1541_v5  ;;  %7244 = vmatprep.subr.mxu1 %v1573_v6  ;;  %v5758_v3 = vpop.f32.mrf.mxu0  ;;  %v5724_v5 = vadd.f32 %v5723_v63, %v5722_v57  ;;  %v5481_v6 = vld [vmem:[%s12143_s3 + $0x20] sm:$0xff] }
 0x321   :  { %7210 = vmatpush3.msra.mxu0 %v1525_v7  ;;  %7245 = vmatpush3.msra.mxu1 %v1557_v8  ;;  %v5759_v8 = vadd.f32 %v5758_v3, %v5757_v61 }
 0x322   :  { %7211 = vmatprep.subr.mxu0 %v1540_v9  ;;  %7246 = vmatprep.subr.mxu1 %v1572_v10  ;;  %v5827_v7 = vpop.f32.mrf.mxu0  ;;  %v5480_v9 = vld [vmem:[%s12143_s3 + $0x18] sm:$0xff]  ;;  %v5793_v10 = vpop.f32.mrf.mxu1 }
 0x323   :  { %7212 = vmatpush3.msra.mxu0 %v1524_v11  ;;  %7247 = vmatpush3.msra.mxu1 %v1556_v12  ;;  %v2393_v11 = vadd.f32 %v5724_v5, %v2323_v4  ;;  %v5479_v12 = vld [vmem:[%s12143_s3 + $0x10] sm:$0xff] }
 0x324   :  { %7213 = vmatprep.subr.mxu0 %v1539_v13  ;;  %7248 = vmatprep.subr.mxu1 %v1571_v14  ;;  %v5862_v13 = vpop.f32.mrf.mxu1  ;;  %v5828_v14 = vpop.f32.mrf.mxu0 }
 0x325   :  { %7214 = vmatpush3.msra.mxu0 %v1523_v15  ;;  %7249 = vmatpush3.msra.mxu1 %v1555_v16  ;;  %v2463_v15 = vadd.f32 %v5759_v8, %v2393_v11  ;;  %v5794_v16 = vadd.f32 %v5793_v10, %v5792_v2  ;;  %v5829_v19 = vadd.f32 %v5828_v14, %v5827_v7 }
 0x326   :  { %7215 = vmatprep.subr.mxu0 %v1538_v17  ;;  %7250 = vmatprep.subr.mxu1 %v1570_v18  ;;  %v5478_v17 = vld [vmem:[%s12143_s3 + $0x8] sm:$0xff]  ;;  %v5897_v18 = vpop.f32.mrf.mxu0 }
 0x327   :  { %7216 = vmatpush3.msra.mxu0 %v1522_v20  ;;  %7251 = vmatpush3.msra.mxu1 %v1554_v21  ;;  %v5477_v20 = vld [vmem:[%s12143_s3] sm:$0xff]  ;;  %v5863_v21 = vpop.f32.mrf.mxu1 }
 0x328   :  { %7217 = vmatprep.subr.mxu0 %v1537_v22  ;;  %7252 = vmatprep.subr.mxu1 %v1569_v23  ;;  %v2533_v22 = vadd.f32 %v5794_v16, %v2463_v15  ;;  %v5864_v26 = vadd.f32 %v5863_v21, %v5862_v13 }
 0x329   :  { %7218 = vmatpush3.msra.mxu0 %v1521_v24  ;;  %7253 = vmatpush3.msra.mxu1 %v1553_v25  ;;  %v5932_v23 = vpop.f32.mrf.mxu1  ;;  %v5898_v24 = vpop.f32.mrf.mxu0 }
 0x32a   :  { %7219 = vmatprep.subr.mxu0 %v1536_v27  ;;  %7254 = vmatprep.subr.mxu1 %v1568_v28  ;;  %v2603_v25 = vadd.f32 %v5829_v19, %v2533_v22  ;;  %v5899_v28 = vadd.f32 %v5898_v24, %v5897_v18 }
 0x32b   :  { %7220 = vmatpush3.msra.mxu0 %v1520_v29  ;;  %7255 = vmatpush3.msra.mxu1 %v1552_v30  ;;  %v5967_v27 = vpop.f32.mrf.mxu0  ;;  %v5933_v29 = vpop.f32.mrf.mxu1 }
 0x32c   :  { %7221 = vmatprep.subr.mxu0 %v1535_v31  ;;  %7256 = vmatprep.subr.mxu1 %v1567_v32  ;;  %v2673_v30 = vadd.f32 %v5864_v26, %v2603_v25 }
 0x32d   :  { %7222 = vmatpush3.msra.mxu0 %v1519_v34  ;;  %7257 = vmatpush3.msra.mxu1 %v1551_v35  ;;  %v6002_v31 = vpop.f32.mrf.mxu1  ;;  %v5968_v32 = vpop.f32.mrf.mxu0  ;;  %v5934_v34 = vadd.f32 %v5933_v29, %v5932_v23 }
 0x32e   :  { %7223 = vmatprep.subr.mxu0 %v1534_v37  ;;  %7258 = vmatprep.subr.mxu1 %v1566_v38 }
 0x32f   :  { %7224 = vmatpush3.msra.mxu0 %v1518_v39  ;;  %7259 = vmatpush3.msra.mxu1 %v1550_v51  ;;  %v6037_v35 = vpop.f32.mrf.mxu0  ;;  %v6003_v37 = vpop.f32.mrf.mxu1 }
 0x330   :  { %7225 = vmatprep.subr.mxu0 %v1533_v40  ;;  %7260 = vmatprep.subr.mxu1 %v1565_v41  ;;  %v6004_v41 = vadd.f32 %v6003_v37, %v6002_v31 }
 0x331   :  { %7226 = vmatpush3.msra.mxu0 %v1517_v43  ;;  %5400 = vmatprep.mubr.f32.mxu0 %v2018_v42  ;;  %v6072_v39 = vpop.f32.mrf.mxu1  ;;  %v6038_v51 = vpop.f32.mrf.mxu0 }
 0x332   :  { %7261 = vmatpush3.msra.mxu1 %v1549_v45  ;;  %5470 = vmatprep.mubr.f32.mxu1 %v2019_v44  ;;  %v6039_v43 = vadd.f32 %v6038_v51, %v6037_v35 }
 0x333   :  { %5401 = vmatmul.mubr.f32.vlgmr.msra.gmra.mxu0 %v2010_v33  ;;  %5471 = vmatmul.mubr.f32.vlgmr.msra.gmra.mxu1 %v2017_v36  ;;  %v2743_v33 = vadd.f32 %v5899_v28, %v2673_v30  ;;  %v5969_v36 = vadd.f32 %v5968_v32, %v5967_v27  ;;  %v6107_v42 = vpop.f32.mrf.mxu0  ;;  %v6073_v44 = vpop.f32.mrf.mxu1 }
 0x334   :  { %7274 = vmatprep.subr.mxu0 %v7344_v47  ;;  %7290 = vmatprep.mubr.msk.f32.mxu0 %vm7345_vm0, %v7344_v47  ;;  %v6074_v49 = vadd.f32 %v6073_v44, %v6072_v39 }
 0x335   :  { %7275 = vmatpush3.msra.mxu0 %v5484_v46  ;;  %v2813_v38 = vadd.f32 %v5934_v34, %v2743_v33  ;;  %v6142_v46 = vpop.f32.mrf.mxu1 }
 0x336   :  { %7276 = vmatprep.subr.mxu0 %v7344_v47 }
 0x337   :  { %7277 = vmatpush3.msra.mxu0 %v5483_v48  ;;  %v2883_v40 = vadd.f32 %v5969_v36, %v2813_v38  ;;  %v6143_v53 = vpop.f32.mrf.mxu1 }
 0x338   :  { %7278 = vmatprep.subr.mxu0 %v7344_v47  ;;  %v6144_v58 = vadd.f32 %v6143_v53, %v6142_v46 }
 0x339   :  { %7279 = vmatpush3.msra.mxu0 %v5482_v1  ;;  %v2953_v45 = vadd.f32 %v6004_v41, %v2883_v40  ;;  %v6212_v55 = vpop.f32.mrf.mxu1 }
 0x33a   :  { %7280 = vmatprep.subr.mxu0 %v7344_v47 }
 0x33b   :  { %7281 = vmatpush3.msra.mxu0 %v5481_v6  ;;  %v3023_v48 = vadd.f32 %v6039_v43, %v2953_v45  ;;  %v6213_v61 = vpop.f32.mrf.mxu1 }
 0x33c   :  { %7282 = vmatprep.subr.mxu0 %v7344_v47  ;;  %v6214_v2 = vadd.f32 %v6213_v61, %v6212_v55 }
 0x33d   :  { %7283 = vmatpush3.msra.mxu0 %v5480_v9  ;;  %v3093_v54 = vadd.f32 %v6074_v49, %v3023_v48  ;;  %v6282_v63 = vpop.f32.mrf.mxu1 }
 0x33e   :  { %7284 = vmatprep.subr.mxu0 %v7344_v47 }
 0x33f   :  { %7285 = vmatpush3.msra.mxu0 %v5479_v12  ;;  %v6283_v5 = vpop.f32.mrf.mxu1 }
 0x340   :  { %7286 = vmatprep.subr.mxu0 %v7344_v47  ;;  %v6284_v10 = vadd.f32 %v6283_v5, %v6282_v63 }
 0x341   :  { %7287 = vmatpush3.msra.mxu0 %v5478_v17  ;;  %v6352_v7 = vpop.f32.mrf.mxu1 }
 0x342   :  { %7288 = vmatprep.subr.mxu0 %v7344_v47  ;;  %v6108_v47 = vpop.f32.mrf.mxu0 }
 0x343   :  { %7289 = vmatpush3.msra.mxu0 %v5477_v20  ;;  %v6109_v52 = vadd.f32 %v6108_v47, %v6107_v42  ;;  %v6353_v13 = vpop.f32.mrf.mxu1 }
 0x344   :  { %v6177_v50 = vpop.f32.mrf.mxu0  ;;  %v6354_v18 = vadd.f32 %v6353_v13, %v6352_v7 }
 0x345   :  { %v3163_v57 = vadd.f32 %v6109_v52, %v3093_v54  ;;  %v6422_v15 = vpop.f32.mrf.mxu1 }
 0x346   :  { %v6178_v56 = vpop.f32.mrf.mxu0 }
 0x347   :  { %v6179_v60 = vadd.f32 %v6178_v56, %v6177_v50  ;;  %v3233_v62 = vadd.f32 %v6144_v58, %v3163_v57  ;;  %v6423_v21 = vpop.f32.mrf.mxu1 }
 0x348   :  { %v6247_v59 = vpop.f32.mrf.mxu0  ;;  %v6424_v26 = vadd.f32 %v6423_v21, %v6422_v15 }
 0x349   :  { %v3303_v1 = vadd.f32 %v6179_v60, %v3233_v62  ;;  %v6492_v23 = vpop.f32.mrf.mxu1 }
 0x34a   :  { %v6248_v0 = vpop.f32.mrf.mxu0 }
 0x34b   :  { %v6249_v4 = vadd.f32 %v6248_v0, %v6247_v59  ;;  %v3373_v6 = vadd.f32 %v6214_v2, %v3303_v1  ;;  %v6493_v29 = vpop.f32.mrf.mxu1 }
 0x34c   :  { %v6317_v3 = vpop.f32.mrf.mxu0  ;;  %v6494_v34 = vadd.f32 %v6493_v29, %v6492_v23 }
 0x34d   :  { %v3443_v9 = vadd.f32 %v6249_v4, %v3373_v6  ;;  %v6562_v31 = vpop.f32.mrf.mxu1 }
 0x34e   :  { %v6318_v8 = vpop.f32.mrf.mxu0 }
 0x34f   :  { %v6319_v12 = vadd.f32 %v6318_v8, %v6317_v3  ;;  %v3513_v14 = vadd.f32 %v6284_v10, %v3443_v9  ;;  %v6563_v37 = vpop.f32.mrf.mxu1 }
 0x350   :  { %v6387_v11 = vpop.f32.mrf.mxu0  ;;  %v6564_v41 = vadd.f32 %v6563_v37, %v6562_v31 }
 0x351   :  { %v3583_v17 = vadd.f32 %v6319_v12, %v3513_v14  ;;  %v6632_v39 = vpop.f32.mrf.mxu1 }
 0x352   :  { %v6388_v16 = vpop.f32.mrf.mxu0 }
 0x353   :  { %v6389_v20 = vadd.f32 %v6388_v16, %v6387_v11  ;;  %v3653_v22 = vadd.f32 %v6354_v18, %v3583_v17  ;;  %v6633_v44 = vpop.f32.mrf.mxu1 }
 0x354   :  { %v6457_v19 = vpop.f32.mrf.mxu0  ;;  %v6634_v49 = vadd.f32 %v6633_v44, %v6632_v39 }
 0x355   :  { %v3723_v25 = vadd.f32 %v6389_v20, %v3653_v22  ;;  %v6702_v46 = vpop.f32.mrf.mxu1 }
 0x356   :  { %v6458_v24 = vpop.f32.mrf.mxu0 }
 0x357   :  { %v6459_v28 = vadd.f32 %v6458_v24, %v6457_v19  ;;  %v3793_v30 = vadd.f32 %v6424_v26, %v3723_v25  ;;  %v6703_v53 = vpop.f32.mrf.mxu1 }
 0x358   :  { %v6527_v27 = vpop.f32.mrf.mxu0  ;;  %v6704_v58 = vadd.f32 %v6703_v53, %v6702_v46 }
 0x359   :  { %v3863_v33 = vadd.f32 %v6459_v28, %v3793_v30  ;;  %v6772_v55 = vpop.f32.mrf.mxu1 }
 0x35a   :  { %v6528_v32 = vpop.f32.mrf.mxu0 }
 0x35b   :  { %v6529_v36 = vadd.f32 %v6528_v32, %v6527_v27  ;;  %v3933_v38 = vadd.f32 %v6494_v34, %v3863_v33  ;;  %v6773_v61 = vpop.f32.mrf.mxu1 }
 0x35c   :  { %v6597_v35 = vpop.f32.mrf.mxu0  ;;  %v6774_v2 = vadd.f32 %v6773_v61, %v6772_v55 }
 0x35d   :  { %v4003_v40 = vadd.f32 %v6529_v36, %v3933_v38  ;;  %v6842_v63 = vpop.f32.mrf.mxu1 }
 0x35e   :  { %v6598_v51 = vpop.f32.mrf.mxu0 }
 0x35f   :  { %v6599_v43 = vadd.f32 %v6598_v51, %v6597_v35  ;;  %v4073_v45 = vadd.f32 %v6564_v41, %v4003_v40  ;;  %v6843_v5 = vpop.f32.mrf.mxu1 }
 0x360   :  { %v6667_v42 = vpop.f32.mrf.mxu0  ;;  %v6844_v10 = vadd.f32 %v6843_v5, %v6842_v63 }
 0x361   :  { %v4143_v48 = vadd.f32 %v6599_v43, %v4073_v45  ;;  %v6912_v7 = vpop.f32.mrf.mxu1 }
 0x362   :  { %v6668_v47 = vpop.f32.mrf.mxu0 }
 0x363   :  { %v6669_v52 = vadd.f32 %v6668_v47, %v6667_v42  ;;  %v4213_v54 = vadd.f32 %v6634_v49, %v4143_v48  ;;  %v6913_v13 = vpop.f32.mrf.mxu1 }
 0x364   :  { %v6737_v50 = vpop.f32.mrf.mxu0  ;;  %v6914_v18 = vadd.f32 %v6913_v13, %v6912_v7 }
 0x365   :  { %v4283_v57 = vadd.f32 %v6669_v52, %v4213_v54 }
 0x366   :  { %v6738_v56 = vpop.f32.mrf.mxu0 }
 0x367   :  { %v6739_v60 = vadd.f32 %v6738_v56, %v6737_v50  ;;  %v4353_v62 = vadd.f32 %v6704_v58, %v4283_v57  ;;  %v5583_v58 = vld [vmem:[%s12144_s4] ss:$0 sm:$0xff] }
 0x368   :  { %v6807_v59 = vpop.f32.mrf.mxu0 }
 0x369   :  { %v4423_v1 = vadd.f32 %v6739_v60, %v4353_v62 }
 0x36a   :  { %v6808_v0 = vpop.f32.mrf.mxu0 }
 0x36b   :  { %v6809_v4 = vadd.f32 %v6808_v0, %v6807_v59  ;;  %v4493_v6 = vadd.f32 %v6774_v2, %v4423_v1 }
 0x36c   :  { %v6877_v3 = vpop.f32.mrf.mxu0  ;;  %v6982_v15 = vpop.f32.mrf.mxu1 }
 0x36d   :  { %v4563_v9 = vadd.f32 %v6809_v4, %v4493_v6 }
 0x36e   :  { %v6878_v8 = vpop.f32.mrf.mxu0  ;;  %v6983_v21 = vpop.f32.mrf.mxu1 }
 0x36f   :  { %v6879_v12 = vadd.f32 %v6878_v8, %v6877_v3  ;;  %v4633_v14 = vadd.f32 %v6844_v10, %v4563_v9  ;;  %v6984_v26 = vadd.f32 %v6983_v21, %v6982_v15 }
 0x370   :  { %v6947_v11 = vpop.f32.mrf.mxu0 }
 0x371   :  { %v4703_v17 = vadd.f32 %v6879_v12, %v4633_v14 }
 0x372   :  { %v6948_v16 = vpop.f32.mrf.mxu0 }
 0x373   :  { %v6949_v20 = vadd.f32 %v6948_v16, %v6947_v11  ;;  %v4773_v22 = vadd.f32 %v6914_v18, %v4703_v17 }
 0x375   :  { %v4843_v25 = vadd.f32 %v6949_v20, %v4773_v22 }
 0x377   :  { %v4913_v30 = vadd.f32 %v6984_v26, %v4843_v25 }
 0x38c   :  { %v7017_v19 = vpop.f32.mrf.mxu0 }
 0x38e   :  { %v7052_v23 = vpop.f32.mrf.mxu1  ;;  %v7018_v24 = vpop.f32.mrf.mxu0 }
 0x38f   :  { %v7019_v28 = vadd.f32 %v7018_v24, %v7017_v19 }
 0x390   :  { %v7053_v29 = vpop.f32.mrf.mxu1 }
 0x391   :  { %v4983_v33 = vadd.f32 %v7019_v28, %v4913_v30  ;;  %v7054_v34 = vadd.f32 %v7053_v29, %v7052_v23 }
 0x393   :  { %v5053_v38 = vadd.f32 %v7054_v34, %v4983_v33 }
 0x3ae   :  { %v7087_v27 = vpop.f32.mrf.mxu0 }
 0x3b0   :  { %v7122_v31 = vpop.f32.mrf.mxu1  ;;  %v7088_v32 = vpop.f32.mrf.mxu0 }
 0x3b1   :  { %v7089_v36 = vadd.f32 %v7088_v32, %v7087_v27 }
 0x3b2   :  { %v7123_v37 = vpop.f32.mrf.mxu1 }
 0x3b3   :  { %v5123_v40 = vadd.f32 %v7089_v36, %v5053_v38  ;;  %v7124_v41 = vadd.f32 %v7123_v37, %v7122_v31 }
 0x3b5   :  { %v5193_v44 = vadd.f32 %v7124_v41, %v5123_v40 }
 0x3d0   :  { %v7157_v35 = vpop.f32.mrf.mxu0 }
 0x3d2   :  { %v7192_v39 = vpop.f32.mrf.mxu1  ;;  %v7158_v51 = vpop.f32.mrf.mxu0 }
 0x3d3   :  { %v7159_v42 = vadd.f32 %v7158_v51, %v7157_v35 }
 0x3d4   :  { %v7193_v43 = vpop.f32.mrf.mxu1 }
 0x3d5   :  { %v5263_v45 = vadd.f32 %v7159_v42, %v5193_v44  ;;  %v7194_v46 = vadd.f32 %v7193_v43, %v7192_v39 }
 0x3d7   :  { %v5333_v52 = vadd.f32 %v7194_v46, %v5263_v45 }
 0x3f3   :  { %v7227_v47 = vpop.f32.mrf.mxu0  ;;  %v7262_v48 = vpop.f32.mrf.mxu1 }
 0x3f5   :  { %v7228_v49 = vpop.f32.mrf.mxu0  ;;  %v7263_v50 = vpop.f32.mrf.mxu1 }
 0x3f6   :  { %v7229_v53 = vadd.f32 %v7228_v49, %v7227_v47  ;;  %v7264_v55 = vadd.f32 %v7263_v50, %v7262_v48 }
 0x3f8   :  { %v5403_v54 = vadd.f32 %v7229_v53, %v5333_v52 }
 0x3fa   :  { %v5473_v56 = vadd.f32 %v7264_v55, %v5403_v54 }
 0x3fc   :  { %v5476_v57 = vmax.f32 %v5473_v56, 0.0 }
 0x3fe   :  { %7291 = vmatmul.mubr.msk.f32.vlgmr.msra.gmra.mxu0 %vm5492_vm1, %v5476_v57 }
 0x4be   :  { %v5562_v59 = vpop.f32.mrf.mxu0 }
 0x4bf   :  { %v5563_v60 = vadd.f32 %v5583_v58, %v5562_v59 }
 0x4c0   :  { %v7292_v61 = vpop.f32.mrf.mxu0 }
 0x4c1   :  { %5567 = vst.msk [vmem:[#allocation2] sm:$0x3] %vm5566_vm2, %v5563_v60 }
 0x4c2   :  { %7332 = shalt.err (!%p7329_p4)
}
 0x4c3   :  { %5577 = dma.vmem_to_hbm [thread:$0]  %s5575_s28, 32, %s12145_s5, [#allocation3]  }
 0x4c4   :  { %7341 = dma.done.wait [#allocation3], 32  }
 0x4c5   :  { %7342 = vsyncadd [#allocation3], 4294967264 }
 0x4c6   :  { %5581 = vsyncpa [#allocation3], 1 }

</bundles_post_ra>
